<compile_context>
chip_gen: v7x
topology: tpu7x:2x2x1
jax: 0.10.0
libtpu: 0.0.40
codegen_flags: <defaults>
</compile_context>

<pallas_src>
import math

import jax
import jax.numpy as jnp
from jax.experimental import pallas as pl
from jax.experimental.pallas import tpu as pltpu

VOCAB_EN = 37            # 'english' vocab size (from pickle in original code)
HIDDEN = 256
NUM_LAYERS = 3
NUM_HEADS = 8
HEAD_DIM = HIDDEN // NUM_HEADS
FF_SIZE = 512
MAX_LEN = 100
LN_EPS = 1e-5


# ----------------------------------------------------------------------------
# Fused encoder-stack kernel: one grid step = one (batch element, layer)
# ----------------------------------------------------------------------------
def _encoder_stack_kernel(x_ref, wqkv_ref, bqkv_ref, wo_ref, bo_ref,
                          g1_ref, be1_ref, w1_ref, bf1_ref,
                          w2_ref, bf2_ref, g2_ref, be2_ref, o_ref):
    layer = pl.program_id(1)

    # Layer 0: seed the resident activation block from the embedded input.
    @pl.when(layer == 0)
    def _():
        o_ref[...] = x_ref[...]

    x = o_ref[0]                                           # (S, H), carried across layers

    # ---- fused QKV projection (Wq/bq pre-scaled by 1/sqrt(head_dim)) ----
    qkv = jnp.dot(x, wqkv_ref[0], preferred_element_type=jnp.float32) + bqkv_ref[0]

    # ---- multi-head self-attention, all heads inside the kernel ----
    head_outs = []
    for h in range(NUM_HEADS):                             # static unroll (8 heads)
        lo = h * HEAD_DIM
        q = qkv[:, lo:lo + HEAD_DIM]                       # (S, hd), already scaled
        k = qkv[:, HIDDEN + lo:HIDDEN + lo + HEAD_DIM]
        v = qkv[:, 2 * HIDDEN + lo:2 * HIDDEN + lo + HEAD_DIM]
        # scores = q @ k.T  (contract last dims, no explicit transpose)
        s = jax.lax.dot_general(q, k, (((1,), (1,)), ((), ())),
                                preferred_element_type=jnp.float32)
        m = jnp.max(s, axis=-1, keepdims=True)
        p = jnp.exp(s - m)
        attn = p * pl.reciprocal(jnp.sum(p, axis=-1, keepdims=True), approx=True)
        head_outs.append(jnp.dot(attn, v, preferred_element_type=jnp.float32))
    att = jnp.concatenate(head_outs, axis=-1)              # (S, H) lane-dense merge
    att = jnp.dot(att, wo_ref[0], preferred_element_type=jnp.float32) + bo_ref[0]

    # ---- residual + LayerNorm 1 ----
    z = x + att
    mu = jnp.mean(z, axis=-1, keepdims=True)
    var = jnp.mean(jnp.square(z - mu), axis=-1, keepdims=True)
    x1 = (z - mu) * jax.lax.rsqrt(var + LN_EPS) * g1_ref[0] + be1_ref[0]

    # ---- feed-forward: fc1 + ReLU + fc2 (512-wide intermediate stays on-chip) ----
    hmid = jnp.dot(x1, w1_ref[0], preferred_element_type=jnp.float32) + bf1_ref[0]
    hmid = jnp.maximum(hmid, 0.0)
    ff = jnp.dot(hmid, w2_ref[0], preferred_element_type=jnp.float32) + bf2_ref[0]

    # ---- residual + LayerNorm 2 -> carried activation for next layer ----
    z2 = x1 + ff
    mu2 = jnp.mean(z2, axis=-1, keepdims=True)
    var2 = jnp.mean(jnp.square(z2 - mu2), axis=-1, keepdims=True)
    o_ref[0] = (z2 - mu2) * jax.lax.rsqrt(var2 + LN_EPS) * g2_ref[0] + be2_ref[0]


def encoder_forward(params, src):
    """src: (B, S) int32 tokens -> (B, S, HIDDEN) float32."""
    B, S = src.shape
    # Embedding lookup + positional encoding (plain-JAX glue).
    x = params["emb"][src] + params["pos"][:, :S, :]       # (B, S, H) f32
    w = params["layers"]

    H, F, H3 = HIDDEN, FF_SIZE, 3 * HIDDEN
    wmap = lambda b, l: (l, 0, 0)                          # per-layer weight blocks
    xmap = lambda b, l: (b, 0, 0)                          # per-batch activation block

    return pl.pallas_call(
        _encoder_stack_kernel,
        out_shape=jax.ShapeDtypeStruct((B, S, H), jnp.float32),
        grid=(B, NUM_LAYERS),
        in_specs=[
            pl.BlockSpec((1, S, H), xmap),                 # embedded input
            pl.BlockSpec((1, H, H3), wmap),                # wqkv (Wq pre-scaled)
            pl.BlockSpec((1, 1, H3), wmap),                # bqkv
            pl.BlockSpec((1, H, H), wmap),                 # wo
            pl.BlockSpec((1, 1, H), wmap),                 # bo
            pl.BlockSpec((1, 1, H), wmap),                 # ln1 gamma
            pl.BlockSpec((1, 1, H), wmap),                 # ln1 beta
            pl.BlockSpec((1, H, F), wmap),                 # fc1 w
            pl.BlockSpec((1, 1, F), wmap),                 # fc1 b
            pl.BlockSpec((1, F, H), wmap),                 # fc2 w
            pl.BlockSpec((1, 1, H), wmap),                 # fc2 b
            pl.BlockSpec((1, 1, H), wmap),                 # ln2 gamma
            pl.BlockSpec((1, 1, H), wmap),                 # ln2 beta
        ],
        out_specs=pl.BlockSpec((1, S, H), xmap),           # resident across layer axis
        compiler_params=pltpu.CompilerParams(
            dimension_semantics=("parallel", "arbitrary")),
    )(x, w["wqkv"], w["bqkv"], w["wo"], w["bo"],
      w["g1"], w["be1"], w["w1"], w["bf1"], w["w2"], w["bf2"],
      w["g2"], w["be2"])


# ----------------------------------------------------------------------------
# Deterministic parameter init (mimics PyTorch defaults), in kernel layout
# ----------------------------------------------------------------------------
def _init_linear(key, din, dout):
    kw, kb = jax.random.split(key)
    lim = 1.0 / math.sqrt(din)
    w = jax.random.uniform(kw, (din, dout), jnp.float32, -lim, lim)
    b = jax.random.uniform(kb, (dout,), jnp.float32, -lim, lim)
    return w, b


def init_params(key):
    k_emb, k_layers = jax.random.split(key)
    scale = 1.0 / math.sqrt(HEAD_DIM)
    acc = {k: [] for k in ["wqkv", "bqkv", "wo", "bo", "g1", "be1",
                           "w1", "bf1", "w2", "bf2", "g2", "be2"]}
    for lk in jax.random.split(k_layers, NUM_LAYERS):
        ks = jax.random.split(lk, 6)
        wq, bq = _init_linear(ks[0], HIDDEN, HIDDEN)
        wk, bk = _init_linear(ks[1], HIDDEN, HIDDEN)
        wv, bv = _init_linear(ks[2], HIDDEN, HIDDEN)
        wo, bo = _init_linear(ks[3], HIDDEN, HIDDEN)
        w1, b1 = _init_linear(ks[4], HIDDEN, FF_SIZE)
        w2, b2 = _init_linear(ks[5], FF_SIZE, HIDDEN)
        # Fuse Q/K/V projections; fold 1/sqrt(head_dim) into the Q part.
        acc["wqkv"].append(jnp.concatenate([wq * scale, wk, wv], axis=1))
        acc["bqkv"].append(jnp.concatenate([bq * scale, bk, bv])[None, :])
        acc["wo"].append(wo)
        acc["bo"].append(bo[None, :])
        acc["g1"].append(jnp.ones((1, HIDDEN), jnp.float32))
        acc["be1"].append(jnp.zeros((1, HIDDEN), jnp.float32))
        acc["w1"].append(w1)
        acc["bf1"].append(b1[None, :])
        acc["w2"].append(w2)
        acc["bf2"].append(b2[None, :])
        acc["g2"].append(jnp.ones((1, HIDDEN), jnp.float32))
        acc["be2"].append(jnp.zeros((1, HIDDEN), jnp.float32))
    layers = {k: jnp.stack(v) for k, v in acc.items()}
    return {
        "emb": jax.random.normal(k_emb, (VOCAB_EN + 1, HIDDEN), jnp.float32),
        "pos": jnp.zeros((1, MAX_LEN, HIDDEN), jnp.float32),   # nn.Parameter(zeros)
        "layers": layers,
    }


# ----------------------------------------------------------------------------
if __name__ == "__main__":
    key = jax.random.PRNGKey(0)
    k_params, k_src = jax.random.split(key)

    params = init_params(k_params)

    B, S = 2, 8
    src = jax.random.randint(k_src, (B, S), 0, VOCAB_EN + 1, dtype=jnp.int32)

    fwd = jax.jit(encoder_forward)
    out = fwd(params, src)
    jax.block_until_ready(out)

    assert out.shape == (B, S, HIDDEN)
    assert bool(jnp.all(jnp.isfinite(out)))
    print("KERNEL_OK")
</pallas_src>

<mosaic_0001>
module attributes {stable_mosaic.version = 11 : i64} {
  func.func @_encoder_stack_kernel(%arg0: i32, %arg1: i32, %arg2: memref<1x8x256xf32, #tpu.memory_space<vmem>>, %arg3: memref<1x256x768xf32, #tpu.memory_space<vmem>>, %arg4: memref<1x1x768xf32, #tpu.memory_space<vmem>>, %arg5: memref<1x256x256xf32, #tpu.memory_space<vmem>>, %arg6: memref<1x1x256xf32, #tpu.memory_space<vmem>>, %arg7: memref<1x1x256xf32, #tpu.memory_space<vmem>>, %arg8: memref<1x1x256xf32, #tpu.memory_space<vmem>>, %arg9: memref<1x256x512xf32, #tpu.memory_space<vmem>>, %arg10: memref<1x1x512xf32, #tpu.memory_space<vmem>>, %arg11: memref<1x512x256xf32, #tpu.memory_space<vmem>>, %arg12: memref<1x1x256xf32, #tpu.memory_space<vmem>>, %arg13: memref<1x1x256xf32, #tpu.memory_space<vmem>>, %arg14: memref<1x1x256xf32, #tpu.memory_space<vmem>>, %arg15: memref<1x8x256xf32, #tpu.memory_space<vmem>>) attributes {dimension_semantics = [#tpu.dimension_semantics<parallel>, #tpu.dimension_semantics<arbitrary>], iteration_bounds = array<i64: 2, 3>, scalar_prefetch = 0 : i64, scratch_operands = 0 : i64, tpu.core_type = #tpu.core_type<tc>, window_params = [{transform_indices = @transform_0, window_bounds = array<i64: 1, 8, 256>}, {transform_indices = @transform_1, window_bounds = array<i64: 1, 256, 768>}, {transform_indices = @transform_2, window_bounds = array<i64: 1, 1, 768>}, {transform_indices = @transform_3, window_bounds = array<i64: 1, 256, 256>}, {transform_indices = @transform_4, window_bounds = array<i64: 1, 1, 256>}, {transform_indices = @transform_5, window_bounds = array<i64: 1, 1, 256>}, {transform_indices = @transform_6, window_bounds = array<i64: 1, 1, 256>}, {transform_indices = @transform_7, window_bounds = array<i64: 1, 256, 512>}, {transform_indices = @transform_8, window_bounds = array<i64: 1, 1, 512>}, {transform_indices = @transform_9, window_bounds = array<i64: 1, 512, 256>}, {transform_indices = @transform_10, window_bounds = array<i64: 1, 1, 256>}, {transform_indices = @transform_11, window_bounds = array<i64: 1, 1, 256>}, {transform_indices = @transform_12, window_bounds = array<i64: 1, 1, 256>}, {transform_indices = @transform_13, window_bounds = array<i64: 1, 8, 256>}]} {
    %c0_i32 = arith.constant 0 : i32
    %0 = arith.cmpi eq, %arg1, %c0_i32 : i32
    %1 = arith.extui %0 : i1 to i32
    %c0_i32_0 = arith.constant 0 : i32
    %2 = arith.cmpi ne, %1, %c0_i32_0 : i32
    scf.if %2 {
      %c0_88 = arith.constant 0 : index
      %c0_89 = arith.constant 0 : index
      %c0_90 = arith.constant 0 : index
      %213 = vector.load %arg2[%c0_88, %c0_89, %c0_90] : memref<1x8x256xf32, #tpu.memory_space<vmem>>, vector<1x8x256xf32>
      %c0_91 = arith.constant 0 : index
      %c0_92 = arith.constant 0 : index
      %c0_93 = arith.constant 0 : index
      %214 = vector.load %arg15[%c0_91, %c0_92, %c0_93] : memref<1x8x256xf32, #tpu.memory_space<vmem>>, vector<1x8x256xf32>
      tpu.vector_store %arg15[%c0_91, %c0_92, %c0_93], %213 {strides = array<i32>} : memref<1x8x256xf32, #tpu.memory_space<vmem>>, vector<1x8x256xf32>,
    } else {
    }
    %c0 = arith.constant 0 : index
    %c0_1 = arith.constant 0 : index
    %c0_2 = arith.constant 0 : index
    %3 = vector.load %arg15[%c0, %c0_1, %c0_2] : memref<1x8x256xf32, #tpu.memory_space<vmem>>, vector<1x8x256xf32>
    %4 = vector.shape_cast %3 : vector<1x8x256xf32> to vector<8x256xf32>
    %c0_3 = arith.constant 0 : index
    %c0_4 = arith.constant 0 : index
    %c0_5 = arith.constant 0 : index
    %5 = vector.load %arg3[%c0_3, %c0_4, %c0_5] : memref<1x256x768xf32, #tpu.memory_space<vmem>>, vector<1x256x768xf32>
    %6 = vector.shape_cast %5 : vector<1x256x768xf32> to vector<256x768xf32>
    %cst = arith.constant dense<0.000000e+00> : vector<8x768xf32>
    %7 = tpu.matmul %4, %6, %cst {dimension_numbers = #tpu.dot_dimension_numbers<[1], [0], [0], [1], [0, 0, 1, 1], [], []>} : vector<8x256xf32>, vector<256x768xf32>, vector<8x768xf32> -> vector<8x768xf32>
    %c0_6 = arith.constant 0 : index
    %c0_7 = arith.constant 0 : index
    %c0_8 = arith.constant 0 : index
    %8 = vector.load %arg4[%c0_6, %c0_7, %c0_8] : memref<1x1x768xf32, #tpu.memory_space<vmem>>, vector<1x1x768xf32>
    %9 = vector.shape_cast %8 : vector<1x1x768xf32> to vector<1x768xf32>
    %10 = vector.broadcast %9 : vector<1x768xf32> to vector<8x768xf32>
    %11 = arith.addf %7, %10 : vector<8x768xf32>
    %12 = vector.extract_strided_slice %11 {offsets = [0, 0], sizes = [8, 32], strides = [1, 1]} : vector<8x768xf32> to vector<8x32xf32>
    %13 = vector.extract_strided_slice %11 {offsets = [0, 256], sizes = [8, 32], strides = [1, 1]} : vector<8x768xf32> to vector<8x32xf32>
    %14 = vector.extract_strided_slice %11 {offsets = [0, 512], sizes = [8, 32], strides = [1, 1]} : vector<8x768xf32> to vector<8x32xf32>
    %cst_9 = arith.constant dense<0.000000e+00> : vector<8x8xf32>
    %15 = tpu.matmul %12, %13, %cst_9 {dimension_numbers = #tpu.dot_dimension_numbers<[1], [1], [0], [0], [0, 0, 1, 0], [], []>} : vector<8x32xf32>, vector<8x32xf32>, vector<8x8xf32> -> vector<8x8xf32>
    %cst_10 = arith.constant dense<0xFF800000> : vector<8xf32>
    %16 = vector.multi_reduction <maximumf>, %15, %cst_10 [1] : vector<8x8xf32> to vector<8xf32>
    %17 = vector.shape_cast %16 : vector<8xf32> to vector<8x1xf32>
    %18 = vector.broadcast %17 : vector<8x1xf32> to vector<8x8xf32>
    %19 = arith.subf %15, %18 : vector<8x8xf32>
    %20 = math.exp %19 : vector<8x8xf32>
    %cst_11 = arith.constant dense<0.000000e+00> : vector<8xf32>
    %21 = vector.multi_reduction <add>, %20, %cst_11 [1] : vector<8x8xf32> to vector<8xf32>
    %22 = vector.shape_cast %21 : vector<8xf32> to vector<8x1xf32>
    %23 = tpu.reciprocal %22 {approx = true} : vector<8x1xf32> -> vector<8x1xf32>
    %24 = vector.broadcast %23 : vector<8x1xf32> to vector<8x8xf32>
    %25 = arith.mulf %20, %24 : vector<8x8xf32>
    %cst_12 = arith.constant dense<0.000000e+00> : vector<8x32xf32>
    %26 = tpu.matmul %25, %14, %cst_12 {dimension_numbers = #tpu.dot_dimension_numbers<[1], [0], [0], [1], [0, 0, 1, 1], [], []>} : vector<8x8xf32>, vector<8x32xf32>, vector<8x32xf32> -> vector<8x32xf32>
    %27 = vector.extract_strided_slice %11 {offsets = [0, 32], sizes = [8, 32], strides = [1, 1]} : vector<8x768xf32> to vector<8x32xf32>
    %28 = vector.extract_strided_slice %11 {offsets = [0, 288], sizes = [8, 32], strides = [1, 1]} : vector<8x768xf32> to vector<8x32xf32>
    %29 = vector.extract_strided_slice %11 {offsets = [0, 544], sizes = [8, 32], strides = [1, 1]} : vector<8x768xf32> to vector<8x32xf32>
    %cst_13 = arith.constant dense<0.000000e+00> : vector<8x8xf32>
    %30 = tpu.matmul %27, %28, %cst_13 {dimension_numbers = #tpu.dot_dimension_numbers<[1], [1], [0], [0], [0, 0, 1, 0], [], []>} : vector<8x32xf32>, vector<8x32xf32>, vector<8x8xf32> -> vector<8x8xf32>
    %cst_14 = arith.constant dense<0xFF800000> : vector<8xf32>
    %31 = vector.multi_reduction <maximumf>, %30, %cst_14 [1] : vector<8x8xf32> to vector<8xf32>
    %32 = vector.shape_cast %31 : vector<8xf32> to vector<8x1xf32>
    %33 = vector.broadcast %32 : vector<8x1xf32> to vector<8x8xf32>
    %34 = arith.subf %30, %33 : vector<8x8xf32>
    %35 = math.exp %34 : vector<8x8xf32>
    %cst_15 = arith.constant dense<0.000000e+00> : vector<8xf32>
    %36 = vector.multi_reduction <add>, %35, %cst_15 [1] : vector<8x8xf32> to vector<8xf32>
    %37 = vector.shape_cast %36 : vector<8xf32> to vector<8x1xf32>
    %38 = tpu.reciprocal %37 {approx = true} : vector<8x1xf32> -> vector<8x1xf32>
    %39 = vector.broadcast %38 : vector<8x1xf32> to vector<8x8xf32>
    %40 = arith.mulf %35, %39 : vector<8x8xf32>
    %cst_16 = arith.constant dense<0.000000e+00> : vector<8x32xf32>
    %41 = tpu.matmul %40, %29, %cst_16 {dimension_numbers = #tpu.dot_dimension_numbers<[1], [0], [0], [1], [0, 0, 1, 1], [], []>} : vector<8x8xf32>, vector<8x32xf32>, vector<8x32xf32> -> vector<8x32xf32>
    %42 = vector.extract_strided_slice %11 {offsets = [0, 64], sizes = [8, 32], strides = [1, 1]} : vector<8x768xf32> to vector<8x32xf32>
    %43 = vector.extract_strided_slice %11 {offsets = [0, 320], sizes = [8, 32], strides = [1, 1]} : vector<8x768xf32> to vector<8x32xf32>
    %44 = vector.extract_strided_slice %11 {offsets = [0, 576], sizes = [8, 32], strides = [1, 1]} : vector<8x768xf32> to vector<8x32xf32>
    %cst_17 = arith.constant dense<0.000000e+00> : vector<8x8xf32>
    %45 = tpu.matmul %42, %43, %cst_17 {dimension_numbers = #tpu.dot_dimension_numbers<[1], [1], [0], [0], [0, 0, 1, 0], [], []>} : vector<8x32xf32>, vector<8x32xf32>, vector<8x8xf32> -> vector<8x8xf32>
    %cst_18 = arith.constant dense<0xFF800000> : vector<8xf32>
    %46 = vector.multi_reduction <maximumf>, %45, %cst_18 [1] : vector<8x8xf32> to vector<8xf32>
    %47 = vector.shape_cast %46 : vector<8xf32> to vector<8x1xf32>
    %48 = vector.broadcast %47 : vector<8x1xf32> to vector<8x8xf32>
    %49 = arith.subf %45, %48 : vector<8x8xf32>
    %50 = math.exp %49 : vector<8x8xf32>
    %cst_19 = arith.constant dense<0.000000e+00> : vector<8xf32>
    %51 = vector.multi_reduction <add>, %50, %cst_19 [1] : vector<8x8xf32> to vector<8xf32>
    %52 = vector.shape_cast %51 : vector<8xf32> to vector<8x1xf32>
    %53 = tpu.reciprocal %52 {approx = true} : vector<8x1xf32> -> vector<8x1xf32>
    %54 = vector.broadcast %53 : vector<8x1xf32> to vector<8x8xf32>
    %55 = arith.mulf %50, %54 : vector<8x8xf32>
    %cst_20 = arith.constant dense<0.000000e+00> : vector<8x32xf32>
    %56 = tpu.matmul %55, %44, %cst_20 {dimension_numbers = #tpu.dot_dimension_numbers<[1], [0], [0], [1], [0, 0, 1, 1], [], []>} : vector<8x8xf32>, vector<8x32xf32>, vector<8x32xf32> -> vector<8x32xf32>
    %57 = vector.extract_strided_slice %11 {offsets = [0, 96], sizes = [8, 32], strides = [1, 1]} : vector<8x768xf32> to vector<8x32xf32>
    %58 = vector.extract_strided_slice %11 {offsets = [0, 352], sizes = [8, 32], strides = [1, 1]} : vector<8x768xf32> to vector<8x32xf32>
    %59 = vector.extract_strided_slice %11 {offsets = [0, 608], sizes = [8, 32], strides = [1, 1]} : vector<8x768xf32> to vector<8x32xf32>
    %cst_21 = arith.constant dense<0.000000e+00> : vector<8x8xf32>
    %60 = tpu.matmul %57, %58, %cst_21 {dimension_numbers = #tpu.dot_dimension_numbers<[1], [1], [0], [0], [0, 0, 1, 0], [], []>} : vector<8x32xf32>, vector<8x32xf32>, vector<8x8xf32> -> vector<8x8xf32>
    %cst_22 = arith.constant dense<0xFF800000> : vector<8xf32>
    %61 = vector.multi_reduction <maximumf>, %60, %cst_22 [1] : vector<8x8xf32> to vector<8xf32>
    %62 = vector.shape_cast %61 : vector<8xf32> to vector<8x1xf32>
    %63 = vector.broadcast %62 : vector<8x1xf32> to vector<8x8xf32>
    %64 = arith.subf %60, %63 : vector<8x8xf32>
    %65 = math.exp %64 : vector<8x8xf32>
    %cst_23 = arith.constant dense<0.000000e+00> : vector<8xf32>
    %66 = vector.multi_reduction <add>, %65, %cst_23 [1] : vector<8x8xf32> to vector<8xf32>
    %67 = vector.shape_cast %66 : vector<8xf32> to vector<8x1xf32>
    %68 = tpu.reciprocal %67 {approx = true} : vector<8x1xf32> -> vector<8x1xf32>
    %69 = vector.broadcast %68 : vector<8x1xf32> to vector<8x8xf32>
    %70 = arith.mulf %65, %69 : vector<8x8xf32>
    %cst_24 = arith.constant dense<0.000000e+00> : vector<8x32xf32>
    %71 = tpu.matmul %70, %59, %cst_24 {dimension_numbers = #tpu.dot_dimension_numbers<[1], [0], [0], [1], [0, 0, 1, 1], [], []>} : vector<8x8xf32>, vector<8x32xf32>, vector<8x32xf32> -> vector<8x32xf32>
    %72 = vector.extract_strided_slice %11 {offsets = [0, 128], sizes = [8, 32], strides = [1, 1]} : vector<8x768xf32> to vector<8x32xf32>
    %73 = vector.extract_strided_slice %11 {offsets = [0, 384], sizes = [8, 32], strides = [1, 1]} : vector<8x768xf32> to vector<8x32xf32>
    %74 = vector.extract_strided_slice %11 {offsets = [0, 640], sizes = [8, 32], strides = [1, 1]} : vector<8x768xf32> to vector<8x32xf32>
    %cst_25 = arith.constant dense<0.000000e+00> : vector<8x8xf32>
    %75 = tpu.matmul %72, %73, %cst_25 {dimension_numbers = #tpu.dot_dimension_numbers<[1], [1], [0], [0], [0, 0, 1, 0], [], []>} : vector<8x32xf32>, vector<8x32xf32>, vector<8x8xf32> -> vector<8x8xf32>
    %cst_26 = arith.constant dense<0xFF800000> : vector<8xf32>
    %76 = vector.multi_reduction <maximumf>, %75, %cst_26 [1] : vector<8x8xf32> to vector<8xf32>
    %77 = vector.shape_cast %76 : vector<8xf32> to vector<8x1xf32>
    %78 = vector.broadcast %77 : vector<8x1xf32> to vector<8x8xf32>
    %79 = arith.subf %75, %78 : vector<8x8xf32>
    %80 = math.exp %79 : vector<8x8xf32>
    %cst_27 = arith.constant dense<0.000000e+00> : vector<8xf32>
    %81 = vector.multi_reduction <add>, %80, %cst_27 [1] : vector<8x8xf32> to vector<8xf32>
    %82 = vector.shape_cast %81 : vector<8xf32> to vector<8x1xf32>
    %83 = tpu.reciprocal %82 {approx = true} : vector<8x1xf32> -> vector<8x1xf32>
    %84 = vector.broadcast %83 : vector<8x1xf32> to vector<8x8xf32>
    %85 = arith.mulf %80, %84 : vector<8x8xf32>
    %cst_28 = arith.constant dense<0.000000e+00> : vector<8x32xf32>
    %86 = tpu.matmul %85, %74, %cst_28 {dimension_numbers = #tpu.dot_dimension_numbers<[1], [0], [0], [1], [0, 0, 1, 1], [], []>} : vector<8x8xf32>, vector<8x32xf32>, vector<8x32xf32> -> vector<8x32xf32>
    %87 = vector.extract_strided_slice %11 {offsets = [0, 160], sizes = [8, 32], strides = [1, 1]} : vector<8x768xf32> to vector<8x32xf32>
    %88 = vector.extract_strided_slice %11 {offsets = [0, 416], sizes = [8, 32], strides = [1, 1]} : vector<8x768xf32> to vector<8x32xf32>
    %89 = vector.extract_strided_slice %11 {offsets = [0, 672], sizes = [8, 32], strides = [1, 1]} : vector<8x768xf32> to vector<8x32xf32>
    %cst_29 = arith.constant dense<0.000000e+00> : vector<8x8xf32>
    %90 = tpu.matmul %87, %88, %cst_29 {dimension_numbers = #tpu.dot_dimension_numbers<[1], [1], [0], [0], [0, 0, 1, 0], [], []>} : vector<8x32xf32>, vector<8x32xf32>, vector<8x8xf32> -> vector<8x8xf32>
    %cst_30 = arith.constant dense<0xFF800000> : vector<8xf32>
    %91 = vector.multi_reduction <maximumf>, %90, %cst_30 [1] : vector<8x8xf32> to vector<8xf32>
    %92 = vector.shape_cast %91 : vector<8xf32> to vector<8x1xf32>
    %93 = vector.broadcast %92 : vector<8x1xf32> to vector<8x8xf32>
    %94 = arith.subf %90, %93 : vector<8x8xf32>
    %95 = math.exp %94 : vector<8x8xf32>
    %cst_31 = arith.constant dense<0.000000e+00> : vector<8xf32>
    %96 = vector.multi_reduction <add>, %95, %cst_31 [1] : vector<8x8xf32> to vector<8xf32>
    %97 = vector.shape_cast %96 : vector<8xf32> to vector<8x1xf32>
    %98 = tpu.reciprocal %97 {approx = true} : vector<8x1xf32> -> vector<8x1xf32>
    %99 = vector.broadcast %98 : vector<8x1xf32> to vector<8x8xf32>
    %100 = arith.mulf %95, %99 : vector<8x8xf32>
    %cst_32 = arith.constant dense<0.000000e+00> : vector<8x32xf32>
    %101 = tpu.matmul %100, %89, %cst_32 {dimension_numbers = #tpu.dot_dimension_numbers<[1], [0], [0], [1], [0, 0, 1, 1], [], []>} : vector<8x8xf32>, vector<8x32xf32>, vector<8x32xf32> -> vector<8x32xf32>
    %102 = vector.extract_strided_slice %11 {offsets = [0, 192], sizes = [8, 32], strides = [1, 1]} : vector<8x768xf32> to vector<8x32xf32>
    %103 = vector.extract_strided_slice %11 {offsets = [0, 448], sizes = [8, 32], strides = [1, 1]} : vector<8x768xf32> to vector<8x32xf32>
    %104 = vector.extract_strided_slice %11 {offsets = [0, 704], sizes = [8, 32], strides = [1, 1]} : vector<8x768xf32> to vector<8x32xf32>
    %cst_33 = arith.constant dense<0.000000e+00> : vector<8x8xf32>
    %105 = tpu.matmul %102, %103, %cst_33 {dimension_numbers = #tpu.dot_dimension_numbers<[1], [1], [0], [0], [0, 0, 1, 0], [], []>} : vector<8x32xf32>, vector<8x32xf32>, vector<8x8xf32> -> vector<8x8xf32>
    %cst_34 = arith.constant dense<0xFF800000> : vector<8xf32>
    %106 = vector.multi_reduction <maximumf>, %105, %cst_34 [1] : vector<8x8xf32> to vector<8xf32>
    %107 = vector.shape_cast %106 : vector<8xf32> to vector<8x1xf32>
    %108 = vector.broadcast %107 : vector<8x1xf32> to vector<8x8xf32>
    %109 = arith.subf %105, %108 : vector<8x8xf32>
    %110 = math.exp %109 : vector<8x8xf32>
    %cst_35 = arith.constant dense<0.000000e+00> : vector<8xf32>
    %111 = vector.multi_reduction <add>, %110, %cst_35 [1] : vector<8x8xf32> to vector<8xf32>
    %112 = vector.shape_cast %111 : vector<8xf32> to vector<8x1xf32>
    %113 = tpu.reciprocal %112 {approx = true} : vector<8x1xf32> -> vector<8x1xf32>
    %114 = vector.broadcast %113 : vector<8x1xf32> to vector<8x8xf32>
    %115 = arith.mulf %110, %114 : vector<8x8xf32>
    %cst_36 = arith.constant dense<0.000000e+00> : vector<8x32xf32>
    %116 = tpu.matmul %115, %104, %cst_36 {dimension_numbers = #tpu.dot_dimension_numbers<[1], [0], [0], [1], [0, 0, 1, 1], [], []>} : vector<8x8xf32>, vector<8x32xf32>, vector<8x32xf32> -> vector<8x32xf32>
    %117 = vector.extract_strided_slice %11 {offsets = [0, 224], sizes = [8, 32], strides = [1, 1]} : vector<8x768xf32> to vector<8x32xf32>
    %118 = vector.extract_strided_slice %11 {offsets = [0, 480], sizes = [8, 32], strides = [1, 1]} : vector<8x768xf32> to vector<8x32xf32>
    %119 = vector.extract_strided_slice %11 {offsets = [0, 736], sizes = [8, 32], strides = [1, 1]} : vector<8x768xf32> to vector<8x32xf32>
    %cst_37 = arith.constant dense<0.000000e+00> : vector<8x8xf32>
    %120 = tpu.matmul %117, %118, %cst_37 {dimension_numbers = #tpu.dot_dimension_numbers<[1], [1], [0], [0], [0, 0, 1, 0], [], []>} : vector<8x32xf32>, vector<8x32xf32>, vector<8x8xf32> -> vector<8x8xf32>
    %cst_38 = arith.constant dense<0xFF800000> : vector<8xf32>
    %121 = vector.multi_reduction <maximumf>, %120, %cst_38 [1] : vector<8x8xf32> to vector<8xf32>
    %122 = vector.shape_cast %121 : vector<8xf32> to vector<8x1xf32>
    %123 = vector.broadcast %122 : vector<8x1xf32> to vector<8x8xf32>
    %124 = arith.subf %120, %123 : vector<8x8xf32>
    %125 = math.exp %124 : vector<8x8xf32>
    %cst_39 = arith.constant dense<0.000000e+00> : vector<8xf32>
    %126 = vector.multi_reduction <add>, %125, %cst_39 [1] : vector<8x8xf32> to vector<8xf32>
    %127 = vector.shape_cast %126 : vector<8xf32> to vector<8x1xf32>
    %128 = tpu.reciprocal %127 {approx = true} : vector<8x1xf32> -> vector<8x1xf32>
    %129 = vector.broadcast %128 : vector<8x1xf32> to vector<8x8xf32>
    %130 = arith.mulf %125, %129 : vector<8x8xf32>
    %cst_40 = arith.constant dense<0.000000e+00> : vector<8x32xf32>
    %131 = tpu.matmul %130, %119, %cst_40 {dimension_numbers = #tpu.dot_dimension_numbers<[1], [0], [0], [1], [0, 0, 1, 1], [], []>} : vector<8x8xf32>, vector<8x32xf32>, vector<8x32xf32> -> vector<8x32xf32>
    %132 = tpu.concatenate %26, %41, %56, %71, %86, %101, %116, %131 in 1 : vector<8x32xf32>, vector<8x32xf32>, vector<8x32xf32>, vector<8x32xf32>, vector<8x32xf32>, vector<8x32xf32>, vector<8x32xf32>, vector<8x32xf32> -> vector<8x256xf32>
    %c0_41 = arith.constant 0 : index
    %c0_42 = arith.constant 0 : index
    %c0_43 = arith.constant 0 : index
    %133 = vector.load %arg5[%c0_41, %c0_42, %c0_43] : memref<1x256x256xf32, #tpu.memory_space<vmem>>, vector<1x256x256xf32>
    %134 = vector.shape_cast %133 : vector<1x256x256xf32> to vector<256x256xf32>
    %cst_44 = arith.constant dense<0.000000e+00> : vector<8x256xf32>
    %135 = tpu.matmul %132, %134, %cst_44 {dimension_numbers = #tpu.dot_dimension_numbers<[1], [0], [0], [1], [0, 0, 1, 1], [], []>} : vector<8x256xf32>, vector<256x256xf32>, vector<8x256xf32> -> vector<8x256xf32>
    %c0_45 = arith.constant 0 : index
    %c0_46 = arith.constant 0 : index
    %c0_47 = arith.constant 0 : index
    %136 = vector.load %arg6[%c0_45, %c0_46, %c0_47] : memref<1x1x256xf32, #tpu.memory_space<vmem>>, vector<1x1x256xf32>
    %137 = vector.shape_cast %136 : vector<1x1x256xf32> to vector<1x256xf32>
    %138 = vector.broadcast %137 : vector<1x256xf32> to vector<8x256xf32>
    %139 = arith.addf %135, %138 : vector<8x256xf32>
    %140 = arith.addf %4, %139 : vector<8x256xf32>
    %cst_48 = arith.constant dense<0.000000e+00> : vector<8xf32>
    %141 = vector.multi_reduction <add>, %140, %cst_48 [1] : vector<8x256xf32> to vector<8xf32>
    %142 = vector.shape_cast %141 : vector<8xf32> to vector<8x1xf32>
    %cst_49 = arith.constant 2.560000e+02 : f32
    %143 = vector.broadcast %cst_49 : f32 to vector<8x1xf32>
    %144 = arith.divf %142, %143 : vector<8x1xf32>
    %145 = vector.broadcast %144 : vector<8x1xf32> to vector<8x256xf32>
    %146 = arith.subf %140, %145 : vector<8x256xf32>
    %147 = arith.mulf %146, %146 : vector<8x256xf32>
    %cst_50 = arith.constant dense<0.000000e+00> : vector<8xf32>
    %148 = vector.multi_reduction <add>, %147, %cst_50 [1] : vector<8x256xf32> to vector<8xf32>
    %149 = vector.shape_cast %148 : vector<8xf32> to vector<8x1xf32>
    %cst_51 = arith.constant 2.560000e+02 : f32
    %150 = vector.broadcast %cst_51 : f32 to vector<8x1xf32>
    %151 = arith.divf %149, %150 : vector<8x1xf32>
    %152 = vector.broadcast %144 : vector<8x1xf32> to vector<8x256xf32>
    %153 = arith.subf %140, %152 : vector<8x256xf32>
    %cst_52 = arith.constant 9.99999974E-6 : f32
    %154 = vector.broadcast %cst_52 : f32 to vector<8x1xf32>
    %155 = arith.addf %151, %154 : vector<8x1xf32>
    %156 = math.rsqrt %155 : vector<8x1xf32>
    %157 = vector.broadcast %156 : vector<8x1xf32> to vector<8x256xf32>
    %158 = arith.mulf %153, %157 : vector<8x256xf32>
    %c0_53 = arith.constant 0 : index
    %c0_54 = arith.constant 0 : index
    %c0_55 = arith.constant 0 : index
    %159 = vector.load %arg7[%c0_53, %c0_54, %c0_55] : memref<1x1x256xf32, #tpu.memory_space<vmem>>, vector<1x1x256xf32>
    %160 = vector.shape_cast %159 : vector<1x1x256xf32> to vector<1x256xf32>
    %161 = vector.broadcast %160 : vector<1x256xf32> to vector<8x256xf32>
    %162 = arith.mulf %158, %161 : vector<8x256xf32>
    %c0_56 = arith.constant 0 : index
    %c0_57 = arith.constant 0 : index
    %c0_58 = arith.constant 0 : index
    %163 = vector.load %arg8[%c0_56, %c0_57, %c0_58] : memref<1x1x256xf32, #tpu.memory_space<vmem>>, vector<1x1x256xf32>
    %164 = vector.shape_cast %163 : vector<1x1x256xf32> to vector<1x256xf32>
    %165 = vector.broadcast %164 : vector<1x256xf32> to vector<8x256xf32>
    %166 = arith.addf %162, %165 : vector<8x256xf32>
    %c0_59 = arith.constant 0 : index
    %c0_60 = arith.constant 0 : index
    %c0_61 = arith.constant 0 : index
    %167 = vector.load %arg9[%c0_59, %c0_60, %c0_61] : memref<1x256x512xf32, #tpu.memory_space<vmem>>, vector<1x256x512xf32>
    %168 = vector.shape_cast %167 : vector<1x256x512xf32> to vector<256x512xf32>
    %cst_62 = arith.constant dense<0.000000e+00> : vector<8x512xf32>
    %169 = tpu.matmul %166, %168, %cst_62 {dimension_numbers = #tpu.dot_dimension_numbers<[1], [0], [0], [1], [0, 0, 1, 1], [], []>} : vector<8x256xf32>, vector<256x512xf32>, vector<8x512xf32> -> vector<8x512xf32>
    %c0_63 = arith.constant 0 : index
    %c0_64 = arith.constant 0 : index
    %c0_65 = arith.constant 0 : index
    %170 = vector.load %arg10[%c0_63, %c0_64, %c0_65] : memref<1x1x512xf32, #tpu.memory_space<vmem>>, vector<1x1x512xf32>
    %171 = vector.shape_cast %170 : vector<1x1x512xf32> to vector<1x512xf32>
    %172 = vector.broadcast %171 : vector<1x512xf32> to vector<8x512xf32>
    %173 = arith.addf %169, %172 : vector<8x512xf32>
    %cst_66 = arith.constant 0.000000e+00 : f32
    %174 = vector.broadcast %cst_66 : f32 to vector<8x512xf32>
    %175 = arith.maximumf %173, %174 : vector<8x512xf32>
    %c0_67 = arith.constant 0 : index
    %c0_68 = arith.constant 0 : index
    %c0_69 = arith.constant 0 : index
    %176 = vector.load %arg11[%c0_67, %c0_68, %c0_69] : memref<1x512x256xf32, #tpu.memory_space<vmem>>, vector<1x512x256xf32>
    %177 = vector.shape_cast %176 : vector<1x512x256xf32> to vector<512x256xf32>
    %cst_70 = arith.constant dense<0.000000e+00> : vector<8x256xf32>
    %178 = tpu.matmul %175, %177, %cst_70 {dimension_numbers = #tpu.dot_dimension_numbers<[1], [0], [0], [1], [0, 0, 1, 1], [], []>} : vector<8x512xf32>, vector<512x256xf32>, vector<8x256xf32> -> vector<8x256xf32>
    %c0_71 = arith.constant 0 : index
    %c0_72 = arith.constant 0 : index
    %c0_73 = arith.constant 0 : index
    %179 = vector.load %arg12[%c0_71, %c0_72, %c0_73] : memref<1x1x256xf32, #tpu.memory_space<vmem>>, vector<1x1x256xf32>
    %180 = vector.shape_cast %179 : vector<1x1x256xf32> to vector<1x256xf32>
    %181 = vector.broadcast %180 : vector<1x256xf32> to vector<8x256xf32>
    %182 = arith.addf %178, %181 : vector<8x256xf32>
    %183 = arith.addf %166, %182 : vector<8x256xf32>
    %cst_74 = arith.constant dense<0.000000e+00> : vector<8xf32>
    %184 = vector.multi_reduction <add>, %183, %cst_74 [1] : vector<8x256xf32> to vector<8xf32>
    %185 = vector.shape_cast %184 : vector<8xf32> to vector<8x1xf32>
    %cst_75 = arith.constant 2.560000e+02 : f32
    %186 = vector.broadcast %cst_75 : f32 to vector<8x1xf32>
    %187 = arith.divf %185, %186 : vector<8x1xf32>
    %188 = vector.broadcast %187 : vector<8x1xf32> to vector<8x256xf32>
    %189 = arith.subf %183, %188 : vector<8x256xf32>
    %190 = arith.mulf %189, %189 : vector<8x256xf32>
    %cst_76 = arith.constant dense<0.000000e+00> : vector<8xf32>
    %191 = vector.multi_reduction <add>, %190, %cst_76 [1] : vector<8x256xf32> to vector<8xf32>
    %192 = vector.shape_cast %191 : vector<8xf32> to vector<8x1xf32>
    %cst_77 = arith.constant 2.560000e+02 : f32
    %193 = vector.broadcast %cst_77 : f32 to vector<8x1xf32>
    %194 = arith.divf %192, %193 : vector<8x1xf32>
    %195 = vector.broadcast %187 : vector<8x1xf32> to vector<8x256xf32>
    %196 = arith.subf %183, %195 : vector<8x256xf32>
    %cst_78 = arith.constant 9.99999974E-6 : f32
    %197 = vector.broadcast %cst_78 : f32 to vector<8x1xf32>
    %198 = arith.addf %194, %197 : vector<8x1xf32>
    %199 = math.rsqrt %198 : vector<8x1xf32>
    %200 = vector.broadcast %199 : vector<8x1xf32> to vector<8x256xf32>
    %201 = arith.mulf %196, %200 : vector<8x256xf32>
    %c0_79 = arith.constant 0 : index
    %c0_80 = arith.constant 0 : index
    %c0_81 = arith.constant 0 : index
    %202 = vector.load %arg13[%c0_79, %c0_80, %c0_81] : memref<1x1x256xf32, #tpu.memory_space<vmem>>, vector<1x1x256xf32>
    %203 = vector.shape_cast %202 : vector<1x1x256xf32> to vector<1x256xf32>
    %204 = vector.broadcast %203 : vector<1x256xf32> to vector<8x256xf32>
    %205 = arith.mulf %201, %204 : vector<8x256xf32>
    %c0_82 = arith.constant 0 : index
    %c0_83 = arith.constant 0 : index
    %c0_84 = arith.constant 0 : index
    %206 = vector.load %arg14[%c0_82, %c0_83, %c0_84] : memref<1x1x256xf32, #tpu.memory_space<vmem>>, vector<1x1x256xf32>
    %207 = vector.shape_cast %206 : vector<1x1x256xf32> to vector<1x256xf32>
    %208 = vector.broadcast %207 : vector<1x256xf32> to vector<8x256xf32>
    %209 = arith.addf %205, %208 : vector<8x256xf32>
    %c0_85 = arith.constant 0 : index
    %c0_86 = arith.constant 0 : index
    %c0_87 = arith.constant 0 : index
    %210 = vector.load %arg15[%c0_85, %c0_86, %c0_87] : memref<1x8x256xf32, #tpu.memory_space<vmem>>, vector<1x8x256xf32>
    %211 = vector.shape_cast %210 : vector<1x8x256xf32> to vector<8x256xf32>
    %212 = vector.shape_cast %209 : vector<8x256xf32> to vector<1x8x256xf32>
    tpu.vector_store %arg15[%c0_85, %c0_86, %c0_87], %212 {strides = array<i32>} : memref<1x8x256xf32, #tpu.memory_space<vmem>>, vector<1x8x256xf32>,
    return
  }
  func.func @transform_0(%arg0: i32, %arg1: i32) -> (i32, i32, i32) {
    %c0_i32 = arith.constant 0 : i32
    %c0_i32_0 = arith.constant 0 : i32
    %c0_i32_1 = arith.constant 0 : i32
    return %arg0, %c0_i32, %c0_i32_0 : i32, i32, i32
  }
  func.func @transform_1(%arg0: i32, %arg1: i32) -> (i32, i32, i32) {
    %c0_i32 = arith.constant 0 : i32
    %c0_i32_0 = arith.constant 0 : i32
    %c0_i32_1 = arith.constant 0 : i32
    return %arg1, %c0_i32, %c0_i32_0 : i32, i32, i32
  }
  func.func @transform_2(%arg0: i32, %arg1: i32) -> (i32, i32, i32) {
    %c0_i32 = arith.constant 0 : i32
    %c0_i32_0 = arith.constant 0 : i32
    %c0_i32_1 = arith.constant 0 : i32
    return %arg1, %c0_i32, %c0_i32_0 : i32, i32, i32
  }
  func.func @transform_3(%arg0: i32, %arg1: i32) -> (i32, i32, i32) {
    %c0_i32 = arith.constant 0 : i32
    %c0_i32_0 = arith.constant 0 : i32
    %c0_i32_1 = arith.constant 0 : i32
    return %arg1, %c0_i32, %c0_i32_0 : i32, i32, i32
  }
  func.func @transform_4(%arg0: i32, %arg1: i32) -> (i32, i32, i32) {
    %c0_i32 = arith.constant 0 : i32
    %c0_i32_0 = arith.constant 0 : i32
    %c0_i32_1 = arith.constant 0 : i32
    return %arg1, %c0_i32, %c0_i32_0 : i32, i32, i32
  }
  func.func @transform_5(%arg0: i32, %arg1: i32) -> (i32, i32, i32) {
    %c0_i32 = arith.constant 0 : i32
    %c0_i32_0 = arith.constant 0 : i32
    %c0_i32_1 = arith.constant 0 : i32
    return %arg1, %c0_i32, %c0_i32_0 : i32, i32, i32
  }
  func.func @transform_6(%arg0: i32, %arg1: i32) -> (i32, i32, i32) {
    %c0_i32 = arith.constant 0 : i32
    %c0_i32_0 = arith.constant 0 : i32
    %c0_i32_1 = arith.constant 0 : i32
    return %arg1, %c0_i32, %c0_i32_0 : i32, i32, i32
  }
  func.func @transform_7(%arg0: i32, %arg1: i32) -> (i32, i32, i32) {
    %c0_i32 = arith.constant 0 : i32
    %c0_i32_0 = arith.constant 0 : i32
    %c0_i32_1 = arith.constant 0 : i32
    return %arg1, %c0_i32, %c0_i32_0 : i32, i32, i32
  }
  func.func @transform_8(%arg0: i32, %arg1: i32) -> (i32, i32, i32) {
    %c0_i32 = arith.constant 0 : i32
    %c0_i32_0 = arith.constant 0 : i32
    %c0_i32_1 = arith.constant 0 : i32
    return %arg1, %c0_i32, %c0_i32_0 : i32, i32, i32
  }
  func.func @transform_9(%arg0: i32, %arg1: i32) -> (i32, i32, i32) {
    %c0_i32 = arith.constant 0 : i32
    %c0_i32_0 = arith.constant 0 : i32
    %c0_i32_1 = arith.constant 0 : i32
    return %arg1, %c0_i32, %c0_i32_0 : i32, i32, i32
  }
  func.func @transform_10(%arg0: i32, %arg1: i32) -> (i32, i32, i32) {
    %c0_i32 = arith.constant 0 : i32
    %c0_i32_0 = arith.constant 0 : i32
    %c0_i32_1 = arith.constant 0 : i32
    return %arg1, %c0_i32, %c0_i32_0 : i32, i32, i32
  }
  func.func @transform_11(%arg0: i32, %arg1: i32) -> (i32, i32, i32) {
    %c0_i32 = arith.constant 0 : i32
    %c0_i32_0 = arith.constant 0 : i32
    %c0_i32_1 = arith.constant 0 : i32
    return %arg1, %c0_i32, %c0_i32_0 : i32, i32, i32
  }
  func.func @transform_12(%arg0: i32, %arg1: i32) -> (i32, i32, i32) {
    %c0_i32 = arith.constant 0 : i32
    %c0_i32_0 = arith.constant 0 : i32
    %c0_i32_1 = arith.constant 0 : i32
    return %arg1, %c0_i32, %c0_i32_0 : i32, i32, i32
  }
  func.func @transform_13(%arg0: i32, %arg1: i32) -> (i32, i32, i32) {
    %c0_i32 = arith.constant 0 : i32
    %c0_i32_0 = arith.constant 0 : i32
    %c0_i32_1 = arith.constant 0 : i32
    return %arg0, %c0_i32, %c0_i32_0 : i32, i32, i32
  }
}

</mosaic_0001>

<bundles_post_ra>
// kernel: encoder_forward.1
= control target key start
LH: loop header
LB: loop body
LE: loop exit
PB: predicated region body
PF: predicated region fallthrough
CT: control target
= control target key end

     0   :  { %s6838_s0 = inlined_call_operand.vmem [shape: f32[2,8,256], index: 0, kind: input, shape index: {}]   ;;  %s6839_s1 = inlined_call_operand.hbm [shape: f32[3,256,768], index: 1, kind: input, shape index: {}]   ;;  %s6840_s2 = inlined_call_operand.hbm [shape: f32[3,1,768], index: 2, kind: input, shape index: {}]   ;;  %s6841_s3 = inlined_call_operand.hbm [shape: f32[3,256,256], index: 3, kind: input, shape index: {}]   ;;  %s6842_s4 = inlined_call_operand.hbm [shape: f32[3,1,256], index: 4, kind: input, shape index: {}]   ;;  %s6843_s5 = inlined_call_operand.hbm [shape: f32[3,1,256], index: 5, kind: input, shape index: {}]   ;;  %s6844_s6 = inlined_call_operand.hbm [shape: f32[3,1,256], index: 6, kind: input, shape index: {}]   ;;  %s6845_s7 = inlined_call_operand.hbm [shape: f32[3,256,512], index: 7, kind: input, shape index: {}]   ;;  %s6846_s8 = inlined_call_operand.hbm [shape: f32[3,1,512], index: 8, kind: input, shape index: {}]   ;;  %s6847_s9 = inlined_call_operand.hbm [shape: f32[3,512,256], index: 9, kind: input, shape index: {}]   ;;  %s6848_s10 = inlined_call_operand.hbm [shape: f32[3,1,256], index: 10, kind: input, shape index: {}]   ;;  %s6849_s11 = inlined_call_operand.hbm [shape: f32[3,1,256], index: 11, kind: input, shape index: {}]   ;;  %s6850_s12 = inlined_call_operand.hbm [shape: f32[3,1,256], index: 12, kind: input, shape index: {}]   ;;  %s6851_s13 = inlined_call_operand.hbm [shape: f32[2,8,256], index: 13, kind: output, shape index: {}]  }
   0x1   :  { %6882 = sst [smem:[#allocation47_spill]] %s6838_s0 }
   0x2   :  { %6883 = sst [smem:[#allocation48_spill]] %s6840_s2 }
   0x3   :  { %6884 = sst [smem:[#allocation49_spill]] %s6842_s4 }
   0x4   :  { %6885 = sst [smem:[#allocation50_spill]] %s6844_s6 }
   0x5   :  { %6886 = sst [smem:[#allocation51_spill]] %s6851_s13 }
   0x6   :  { %18 = vsyncpa [#allocation3], 0 }
   0x7   :  { %20 = vsyncpa [#allocation3 + $0x1], 0 }
   0x8   :  { %21 = vsyncpa [#allocation6], 0 }
   0x9   :  { %23 = vsyncpa [#allocation6 + $0x1], 0 }
   0xa   :  { %24 = vsyncpa [#allocation9], 0 }
   0xb   :  { %26 = vsyncpa [#allocation9 + $0x1], 0 }
   0xc   :  { %27 = vsyncpa [#allocation12], 0 }
   0xd   :  { %29 = vsyncpa [#allocation12 + $0x1], 0 }
   0xe   :  { %30 = vsyncpa [#allocation15], 0 }
   0xf   :  { %32 = vsyncpa [#allocation15 + $0x1], 0 }
  0x10   :  { %33 = vsyncpa [#allocation18], 0 }
  0x11   :  { %35 = vsyncpa [#allocation18 + $0x1], 0 }
  0x12   :  { %36 = vsyncpa [#allocation21], 0 }
  0x13   :  { %38 = vsyncpa [#allocation21 + $0x1], 0 }
  0x14   :  { %39 = vsyncpa [#allocation4], 0 }
  0x15   :  { %41 = vsyncpa [#allocation4 + $0x1], 0  ;;  %s5408_s25 = smov 0   ;;  %s5410_s26 = smov 0  }
  0x16   :  { %s5412_s27 = smov 0   ;;  %s5414_s28 = smov 0  }
  0x17   :  { %s5416_s29 = smov 0   ;;  %s5418_s30 = smov 0  }
  0x18   :  { %s5420_s14 = smov 0   ;;  %s5422_s15 = smov 0  }
  0x19   :  { %s5424_s16 = smov 0   ;;  %s5426_s17 = smov 0  }
  0x1a   :  { %s5428_s18 = smov 0  }
  0x1b LB: > { %6887 = sst [smem:[#allocation31_spill]] %s5272_s25  ;;  %s5462_s19 = sadd.s32 4294967295, %s5312_s18   ;;  %s5312_s18 = sphi %s5428_s18, %s47_s18   ;;  %s5308_s17 = sphi %s5426_s17, %s6964_s17   ;;  %s5304_s16 = sphi %s5424_s16, %s6963_s16   ;;  %s5300_s15 = sphi %s5422_s15, %s6957_s15   ;;  %s5296_s14 = sphi %s5420_s14, %s6962_s14   ;;  %s5292_s30 = sphi %s5418_s30, %s6956_s30   ;;  %s5288_s29 = sphi %s5416_s29, %s6961_s29   ;;  %s5284_s28 = sphi %s5414_s28, %s6960_s28   ;;  %s5280_s27 = sphi %s5412_s27, %s6954_s27   ;;  %s5276_s26 = sphi %s5410_s26, %s6953_s26   ;;  %s5272_s25 = sphi %s5408_s25, %s6952_s25  }
  0x1c   : > { %6888 = sst [smem:[#allocation32_spill]] %s5276_s26  ;;  %s3860_s20 = sadd.s32 4294967294, %s5312_s18  }
  0x1d   : > { %6889 = sst [smem:[#allocation33_spill]] %s5280_s27  ;;  %s56_s21 = sadd.s32 1, %s5304_s16 }
  0x1e   : > { %6890 = sst [smem:[#allocation34_spill]] %s5292_s30  ;;  %s59_s22 = sadd.s32 1, %s5308_s17 }
  0x1f   : > { %6891 = sst [smem:[#allocation35_spill]] %s5296_s14  ;;  %p57_p0 = scmp.ge.s32.totalorder %s56_s21, 3 }
  0x20   : > { %6892 = sst [smem:[#allocation36_spill]] %s5300_s15  ;;  %s92_s23 = sadd.s32 1, %s5292_s30 }
  0x21   : > { %6893 = sst [smem:[#allocation37_spill]] %s5308_s17  ;;  %p99_p1 = scmp.ne.s32.totalorder %s5292_s30, %s5288_s29 }
  0x22   : > { %6894 = sst [smem:[#allocation38_spill]] %s5312_s18  ;;  %p100_p2 = scmp.eq.s32.totalorder %s5312_s18, 0 }
  0x23   : > { %6895 = sst [smem:[#allocation39_spill]] %s5462_s19  ;;  %s6966_s21 = smov (%p57_p0, %s56_s21), 0 }
  0x24   : > { %6896 = sst [smem:[#allocation40_spill]] %s6966_s21  ;;  %s6968_s22 = smov (!%p57_p0, %s59_s22), %s5308_s17 }
  0x25   : > { %s89_s24 = ssub.s32 %s5304_s16, %s6966_s21  ;;  %p5476_p3 = por %p100_p2, %p99_p1 }
  0x26   : > { %p61_p4 = scmp.ge.s32.totalorder %s6968_s22, 2  ;;  %p90_p5 = scmp.eq.s32.totalorder %s89_s24, 0 }
  0x27   : > { %p105_p6 = scmp.ne.s32.totalorder %s5288_s29, %s5284_s28  ;;  %p106_p7 = scmp.eq.s32.totalorder %s5462_s19, 0 }
  0x28   : > { %s6970_s22 = smov (%p61_p4, %s6968_s22), 0  ;;  %s404_s24 = sadd.s32 1, %s5280_s27 }
  0x29   : > { %6898 = sst [smem:[#allocation41_spill]] %s6970_s22  ;;  %p5487_p8 = por %p106_p7, %p105_p6 }
  0x2a   : > { %s5485_s14 = scalar_select %p90_p5, %s5292_s30, %s92_s23  }
  0x2b   : > { %s6900_s21 = scalar_select %p5487_p8, 1, 0 }
  0x2c   : > { %6899 = sst [smem:[#allocation42_spill]] %s5485_s14  ;;  %s401_s0 = ssub.s32 %s5308_s17, %s6970_s22 }
  0x2d   : > { %6901 = sst [smem:[#allocation43_spill]] %s6900_s21  ;;  %p402_p9 = scmp.eq.s32.totalorder %s401_s0, 0 }
  0x2e   : > { %p414_p10 = scmp.ne.s32.totalorder %s5280_s27, %s5276_s26  ;;  %p415_p11 = scmp.eq.s32.totalorder %s5462_s19, 5 }
  0x2f   : > { %s5498_s28 = scalar_select %p402_p9, %s5280_s27, %s404_s24  }
  0x30   : > { %p5500_p12 = por %p415_p11, %p414_p10  ;;  %p420_p13 = scmp.ne.s32.totalorder %s5276_s26, %s5272_s25 }
  0x31   : > { %6902 = sst [smem:[#allocation44_spill]] %s5498_s28  ;;  %p421_p0 = scmp.eq.s32.totalorder %s3860_s20, 5 }
  0x32   : > { %s6903_s15 = scalar_select %p5500_p12, 1, 0 }
  0x33   : > { %p4652_p1 = scmp.lt.s32.totalorder %s5312_s18, 6  ;;  %s5508_s23 = sand.u32 1, %s5292_s30  }
  0x34   : > { %6904 = sst [smem:[#allocation45_spill]] %s6903_s15  ;;  %p5510_p2 = por %p421_p0, %p420_p13 }
  0x35   : > { %s5515_s0 = sand.u32 1, %s5312_s18   ;;  %p5519_p4 = pnand %p4652_p1, %p5476_p3 }
  0x36   : > { %s6905_s22 = scalar_select %p5510_p2, 1, 0 }
  0x37   : > { %s6907_s24 = scalar_select %p5519_p4, 1, 0 }
  0x38   : > { %6906 = sst [smem:[#allocation46_spill]] %s6905_s22  ;;  %s4581_s17 = smul.u32 6, %s5508_s23 }
  0x39   : > { %p3895_p5 = scmp.ge.s32.totalorder %s5312_s18, 1  ;;  %s4582_s20 = smul.u32 96, %s5304_s16 }
  0x3a   : > { %p683_p6 = scmp.lt.s32.totalorder %s5312_s18, 7  ;;  %s6908_s2 = sld [smem:[#allocation48_spill]] }
  0x3b   : > { %s474_s13 = scalar_lea.vmem [#allocation5], %s4581_s17  ;;  %p5543_p9 = pneg %p5519_p4 }
  0x3c   : > { %s482_s27 = sshll.u32 %s474_s13, 4  ;;  %p5534_p3 = pnand %p3895_p5, %p683_p6  ;;  %s5532_s27 = int_to_ptr.vmem [resolvable:$true] %s482_s27 }
  0x3e   : > { %s6909_s22 = scalar_select %p5534_p3, 1, 0 }
  0x40   : > { %s5530_s28 = scalar_lea.hbm %s6908_s2, %s4582_s20  ;;  %s4811_s20 = scalar_lea.hbm %s6908_s2, 288 }
  0x41   : > { %s4806_s15 = scalar_lea.hbm %s5530_s28, 96  ;;  %p4812_p13 = scmp.lt.u32.totalorder %s5530_s28, %s6908_s2 }
  0x42   : > { %p4807_p7 = scmp.ne.s32.totalorder %s5530_s28, %s4806_s15  ;;  %p4813_p0 = scmp.lt.u32.totalorder %s4811_s20, %s4806_s15 }
  0x43   : > { %p4815_p5 = scmp.lt.u32.totalorder %s4806_s15, %s5530_s28 }
  0x44   : > { %p4809_p10 = pnand %p5543_p9, %p4807_p7  ;;  %p4814_p1 = por %p4813_p0, %p4812_p13 }
  0x46   : > { %p4810_p11 = pneg %p4809_p10  ;;  %p4816_p6 = por %p4815_p5, %p4814_p1 }
  0x48   : > { %p4817_p2 = pnand %p4816_p6, %p4810_p11 }
  0x4a   : > { %4820 = shalt.err (!%p4817_p2)
}
  0x4b   : > { %s4821_s25 = scalar_lea.vmem %s5532_s27, 96  ;;  %s5314_s14 = smov [#allocation5]  }
  0x4c   : > { %p4822_p7 = scmp.ne.s32.totalorder %s5532_s27, %s4821_s25  ;;  %s4826_s17 = sshll.u32 %s5314_s14, 4  ;;  %s4827_s17 = int_to_ptr.vmem [resolvable:$false] %s4826_s17 }
  0x4d   : > { %s4828_s18 = scalar_lea.vmem %s4827_s17, 192  ;;  %p4829_p8 = scmp.lt.s32.totalorder %s5532_s27, %s4827_s17 }
  0x4e   : > { %p4824_p10 = pnand %p4822_p7, %p5543_p9  ;;  %p4830_p3 = scmp.lt.s32.totalorder %s4828_s18, %s4821_s25 }
  0x50   : > { %p4825_p12 = pneg %p4824_p10  ;;  %p4831_p13 = por %p4830_p3, %p4829_p8 }
  0x52   : > { %p4832_p0 = pnand %p4831_p13, %p4825_p12 }
  0x54   : > { %4835 = shalt.err (!%p4832_p0)
}
  0x55   : > { %s6911_s15 = scalar_lea.sflag [#allocation6], %s5515_s0  ;;  %s5569_s20 = sshll.u32 %s5508_s23, 1 }
  0x56   : > { %4617 = dma.hbm_to_vmem [thread:$0]  (!%p5519_p4), %s5530_s28, 96, %s5532_s27, %s6911_s15  }
  0x57   : > { %s5572_s13 = sshll.u32 %s5304_s16, 5  ;;  %s6912_s4 = sld [smem:[#allocation49_spill]] }
  0x58   : > { %s514_s18 = scalar_lea.vmem [#allocation8], %s5569_s20 }
  0x59   : > { %s522_s2 = sshll.u32 %s514_s18, 4  ;;  %s523_s2 = int_to_ptr.vmem [resolvable:$true] %s522_s2 }
  0x5d   : > { %s5578_s17 = scalar_lea.hbm %s6912_s4, %s5572_s13  ;;  %s4841_s19 = scalar_lea.hbm %s6912_s4, 96 }
  0x5e   : > { %s4836_s27 = scalar_lea.hbm %s5578_s17, 32  ;;  %p4842_p3 = scmp.lt.u32.totalorder %s5578_s17, %s6912_s4 }
  0x5f   : > { %p4837_p8 = scmp.ne.s32.totalorder %s5578_s17, %s4836_s27  ;;  %p4843_p11 = scmp.lt.u32.totalorder %s4841_s19, %s4836_s27 }
  0x60   : > { %p4845_p5 = scmp.lt.u32.totalorder %s4836_s27, %s5578_s17 }
  0x61   : > { %p4839_p12 = pnand %p4837_p8, %p5543_p9  ;;  %p4844_p1 = por %p4843_p11, %p4842_p3 }
  0x63   : > { %p4840_p2 = pneg %p4839_p12  ;;  %p4846_p6 = por %p4845_p5, %p4844_p1 }
  0x65   : > { %p4847_p7 = pnand %p4846_p6, %p4840_p2 }
  0x67   : > { %4850 = shalt.err (!%p4847_p7)
}
  0x68   : > { %s4851_s18 = scalar_lea.vmem %s523_s2, 32  ;;  %s5315_s26 = smov [#allocation8]  }
  0x69   : > { %p4852_p10 = scmp.ne.s32.totalorder %s523_s2, %s4851_s18  ;;  %s4856_s21 = sshll.u32 %s5315_s26, 4  ;;  %s4857_s21 = int_to_ptr.vmem [resolvable:$false] %s4856_s21 }
  0x6a   : > { %s4858_s28 = scalar_lea.vmem %s4857_s21, 64  ;;  %p4859_p8 = scmp.lt.s32.totalorder %s523_s2, %s4857_s21 }
  0x6b   : > { %p4854_p13 = pnand %p4852_p10, %p5543_p9  ;;  %p4860_p12 = scmp.lt.s32.totalorder %s4858_s28, %s4851_s18 }
  0x6d   : > { %p4855_p0 = pneg %p4854_p13  ;;  %p4861_p4 = por %p4860_p12, %p4859_p8 }
  0x6f   : > { %p4862_p3 = pnand %p4861_p4, %p4855_p0 }
  0x71   : > { %4865 = shalt.err (!%p4862_p3)
}
  0x72   : > { %p6913_p11 = scmp.ne.s32.totalorder %s6907_s24, 0  ;;  %s6914_s19 = scalar_lea.sflag [#allocation9], %s5515_s0 }
  0x73   : > { %s6915_s6 = sld [smem:[#allocation50_spill]]  ;;  %s552_s21 = scalar_lea.vmem [#allocation11], %s5569_s20 }
  0x74   : > { %4623 = dma.hbm_to_vmem [thread:$0]  (!%p6913_p11), %s5578_s17, 32, %s523_s2, %s6914_s19  }
  0x75   : > { %s560_s25 = sshll.u32 %s552_s21, 4  ;;  %s3880_s14 = sshll.u32 %s5508_s23, 2  ;;  %s5608_s25 = int_to_ptr.vmem [resolvable:$true] %s560_s25 }
  0x76   : > { %s6874_s18 = scalar_lea.sflag [#allocation12], %s5515_s0 }
  0x79   : > { %s5605_s15 = scalar_lea.hbm %s6915_s6, %s5572_s13  ;;  %s4871_s19 = scalar_lea.hbm %s6915_s6, 96 }
  0x7a   : > { %s4866_s28 = scalar_lea.hbm %s5605_s15, 32  ;;  %p4872_p5 = scmp.lt.u32.totalorder %s5605_s15, %s6915_s6 }
  0x7b   : > { %p4867_p4 = scmp.ne.s32.totalorder %s5605_s15, %s4866_s28  ;;  %p4873_p6 = scmp.lt.u32.totalorder %s4871_s19, %s4866_s28 }
  0x7c   : > { %p4875_p10 = scmp.lt.u32.totalorder %s4866_s28, %s5605_s15 }
  0x7d   : > { %p4869_p2 = pnand %p4867_p4, %p5543_p9  ;;  %p4874_p7 = por %p4873_p6, %p4872_p5 }
  0x7f   : > { %p4870_p1 = pneg %p4869_p2  ;;  %p4876_p13 = por %p4875_p10, %p4874_p7 }
  0x81   : > { %p4877_p0 = pnand %p4876_p13, %p4870_p1 }
  0x83   : > { %4880 = shalt.err (!%p4877_p0)
}
  0x84   : > { %s4881_s21 = scalar_lea.vmem %s5608_s25, 32  ;;  %s5316_s2 = smov [#allocation11]  }
  0x85   : > { %p4882_p8 = scmp.ne.s32.totalorder %s5608_s25, %s4881_s21  ;;  %s4886_s17 = sshll.u32 %s5316_s2, 4  ;;  %s4887_s17 = int_to_ptr.vmem [resolvable:$false] %s4886_s17 }
  0x86   : > { %s4888_s27 = scalar_lea.vmem %s4887_s17, 64  ;;  %p4889_p4 = scmp.lt.s32.totalorder %s5608_s25, %s4887_s17 }
  0x87   : > { %p4884_p12 = pnand %p4882_p8, %p5543_p9  ;;  %p4890_p2 = scmp.lt.s32.totalorder %s4888_s27, %s4881_s21 }
  0x89   : > { %p4885_p3 = pneg %p4884_p12  ;;  %p4891_p5 = por %p4890_p2, %p4889_p4 }
  0x8b   : > { %p4892_p6 = pnand %p4891_p5, %p4885_p3 }
  0x8d   : > { %4895 = shalt.err (!%p4892_p6)
}
  0x8e   : > { %4629 = dma.hbm_to_vmem [thread:$0]  (!%p6913_p11), %s5605_s15, 32, %s5608_s25, %s6874_s18  }
  0x8f   : > { %s3944_s28 = sshll.u32 %s5304_s16, 6  ;;  %s592_s21 = scalar_lea.vmem [#allocation14], %s3880_s14 }
  0x90   : > { %s5639_s2 = scalar_lea.hbm %s6846_s8, %s3944_s28  ;;  %s600_s17 = sshll.u32 %s592_s21, 4  ;;  %s601_s17 = int_to_ptr.vmem [resolvable:$true] %s600_s17 }
  0x91   : > { %s6876_s27 = scalar_lea.sflag [#allocation15], %s5515_s0  ;;  %s4896_s4 = scalar_lea.hbm %s5639_s2, 64 }
  0x92   : > { %p4897_p1 = scmp.ne.s32.totalorder %s5639_s2, %s4896_s4  ;;  %s4901_s19 = scalar_lea.hbm %s6846_s8, 192 }
  0x93   : > { %p4902_p13 = scmp.lt.u32.totalorder %s5639_s2, %s6846_s8  ;;  %p4903_p0 = scmp.lt.u32.totalorder %s4901_s19, %s4896_s4 }
  0x94   : > { %p4899_p7 = pnand %p4897_p1, %p5543_p9  ;;  %p4905_p12 = scmp.lt.u32.totalorder %s4896_s4, %s5639_s2 }
  0x95   : > { %p4904_p8 = por %p4903_p0, %p4902_p13 }
  0x96   : > { %p4900_p10 = pneg %p4899_p7 }
  0x97   : > { %p4906_p3 = por %p4905_p12, %p4904_p8 }
  0x99   : > { %p4907_p4 = pnand %p4906_p3, %p4900_p10 }
  0x9b   : > { %4910 = shalt.err (!%p4907_p4)
}
  0x9c   : > { %s4911_s14 = scalar_lea.vmem %s601_s17, 64  ;;  %s5317_s21 = smov [#allocation14]  }
  0x9d   : > { %p4912_p2 = scmp.ne.s32.totalorder %s601_s17, %s4911_s14  ;;  %s4916_s18 = sshll.u32 %s5317_s21, 4  ;;  %s4917_s18 = int_to_ptr.vmem [resolvable:$false] %s4916_s18 }
  0x9e   : > { %s4918_s15 = scalar_lea.vmem %s4917_s18, 128  ;;  %p4919_p1 = scmp.lt.s32.totalorder %s601_s17, %s4917_s18 }
  0x9f   : > { %p4914_p5 = pnand %p4912_p2, %p5543_p9  ;;  %p4920_p7 = scmp.lt.s32.totalorder %s4918_s15, %s4911_s14 }
  0xa1   : > { %p4915_p6 = pneg %p4914_p5  ;;  %p4921_p11 = por %p4920_p7, %p4919_p1 }
  0xa3   : > { %p4922_p0 = pnand %p4921_p11, %p4915_p6 }
  0xa5   : > { %4925 = shalt.err (!%p4922_p0)
}
  0xa6   : > { %p6916_p13 = scmp.ne.s32.totalorder %s6907_s24, 0  ;;  %s5667_s19 = scalar_lea.hbm %s6848_s10, %s5572_s13 }
  0xa7   : > { %s632_s18 = scalar_lea.vmem [#allocation17], %s5569_s20  ;;  %s6877_s26 = scalar_lea.sflag [#allocation18], %s5515_s0 }
  0xa8   : > { %4635 = dma.hbm_to_vmem [thread:$0]  (!%p6916_p13), %s5639_s2, 64, %s601_s17, %s6876_s27  }
  0xa9   : > { %s640_s28 = sshll.u32 %s632_s18, 4  ;;  %s4926_s14 = scalar_lea.hbm %s5667_s19, 32  ;;  %s641_s28 = int_to_ptr.vmem [resolvable:$true] %s640_s28 }
  0xaa   : > { %p4927_p11 = scmp.ne.s32.totalorder %s5667_s19, %s4926_s14  ;;  %s4931_s17 = scalar_lea.hbm %s6848_s10, 96 }
  0xab   : > { %p4932_p12 = scmp.lt.u32.totalorder %s5667_s19, %s6848_s10  ;;  %p4933_p3 = scmp.lt.u32.totalorder %s4931_s17, %s4926_s14 }
  0xac   : > { %p4929_p10 = pnand %p4927_p11, %p5543_p9  ;;  %p4935_p2 = scmp.lt.u32.totalorder %s4926_s14, %s5667_s19 }
  0xad   : > { %p4934_p4 = por %p4933_p3, %p4932_p12 }
  0xae   : > { %p4930_p8 = pneg %p4929_p10 }
  0xaf   : > { %p4936_p5 = por %p4935_p2, %p4934_p4 }
  0xb1   : > { %p4937_p6 = pnand %p4936_p5, %p4930_p8 }
  0xb3   : > { %4940 = shalt.err (!%p4937_p6)
}
  0xb4   : > { %s4941_s25 = scalar_lea.vmem %s641_s28, 32  ;;  %s5318_s18 = smov [#allocation17]  }
  0xb5   : > { %p4942_p1 = scmp.ne.s32.totalorder %s641_s28, %s4941_s25  ;;  %s4946_s27 = sshll.u32 %s5318_s18, 4  ;;  %s4947_s27 = int_to_ptr.vmem [resolvable:$false] %s4946_s27 }
  0xb6   : > { %s4948_s21 = scalar_lea.vmem %s4947_s27, 64  ;;  %p4949_p11 = scmp.lt.s32.totalorder %s641_s28, %s4947_s27 }
  0xb7   : > { %p4944_p7 = pnand %p4942_p1, %p5543_p9  ;;  %p4950_p10 = scmp.lt.s32.totalorder %s4948_s21, %s4941_s25 }
  0xb9   : > { %p4945_p0 = pneg %p4944_p7  ;;  %p4951_p13 = por %p4950_p10, %p4949_p11 }
  0xbb   : > { %p4952_p3 = pnand %p4951_p13, %p4945_p0 }
  0xbd   : > { %4955 = shalt.err (!%p4952_p3)
}
  0xbe   : > { %p6917_p12 = scmp.ne.s32.totalorder %s6907_s24, 0  ;;  %s4579_s14 = smul.u32 1536, %s5508_s23 }
  0xbf   : > { %s4580_s2 = smul.u32 24576, %s5304_s16  ;;  %s3865_s18 = sshll.u32 %s5508_s23, 9 }
  0xc0   : > { %4641 = dma.hbm_to_vmem [thread:$0]  (!%p6917_p12), %s5667_s19, 32, %s641_s28, %s6877_s26  }
  0xc1   : > { %s5695_s27 = scalar_lea.hbm %s6839_s1, %s4580_s2  ;;  %s453_s4 = scalar_lea.vmem [#allocation2], %s4579_s14 }
  0xc2   : > { %s460_s25 = sshll.u32 %s453_s4, 4  ;;  %s450_s21 = scalar_lea.sflag [#allocation3], %s5508_s23  ;;  %s5697_s25 = int_to_ptr.vmem [resolvable:$true] %s460_s25 }
  0xc3   : > { %s4956_s6 = scalar_lea.hbm %s5695_s27, 24576  ;;  %s4961_s2 = scalar_lea.hbm %s6839_s1, 73728 }
  0xc4   : > { %p4957_p13 = scmp.ne.s32.totalorder %s5695_s27, %s4956_s6  ;;  %p4962_p2 = scmp.lt.u32.totalorder %s5695_s27, %s6839_s1 }
  0xc5   : > { %p4963_p5 = scmp.lt.u32.totalorder %s4961_s2, %s4956_s6  ;;  %p4965_p1 = scmp.lt.u32.totalorder %s4956_s6, %s5695_s27 }
  0xc6   : > { %p4959_p8 = pnand %p4957_p13, %p5543_p9 }
  0xc7   : > { %p4964_p6 = por %p4963_p5, %p4962_p2 }
  0xc8   : > { %p4960_p4 = pneg %p4959_p8 }
  0xc9   : > { %p4966_p7 = por %p4965_p1, %p4964_p6 }
  0xcb   : > { %p4967_p0 = pnand %p4966_p7, %p4960_p4 }
  0xcd   : > { %4970 = shalt.err (!%p4967_p0)
}
  0xce   : > { %s4971_s14 = scalar_lea.vmem %s5697_s25, 24576  ;;  %s5319_s4 = smov [#allocation2]  }
  0xcf   : > { %p4972_p11 = scmp.ne.s32.totalorder %s5697_s25, %s4971_s14  ;;  %s4976_s19 = sshll.u32 %s5319_s4, 4  ;;  %s4977_s19 = int_to_ptr.vmem [resolvable:$false] %s4976_s19 }
  0xd0   : > { %s4978_s28 = scalar_lea.vmem %s4977_s19, 49152  ;;  %p4979_p13 = scmp.lt.s32.totalorder %s5697_s25, %s4977_s19 }
  0xd1   : > { %p4974_p10 = pnand %p4972_p11, %p5543_p9  ;;  %p4980_p8 = scmp.lt.s32.totalorder %s4978_s28, %s4971_s14 }
  0xd3   : > { %p4975_p3 = pneg %p4974_p10  ;;  %p4981_p2 = por %p4980_p8, %p4979_p13 }
  0xd5   : > { %p4982_p5 = pnand %p4981_p2, %p4975_p3 }
  0xd7   : > { %4985 = shalt.err (!%p4982_p5)
}
  0xd8   : > { %s5320_s6 = smov 768   ;;  %s5321_s2 = smov 48  }
  0xd9   : > { %4614 = dma.hbm_to_vmem [thread:$0]  (!%p6917_p12), %s5695_s27, 24576, %s5697_s25, %s450_s21, %s5320_s6, %s5320_s6, %s5321_s2  }
  0xda   : > { %s3939_s17 = sshll.u32 %s5304_s16, 13  ;;  %s493_s19 = scalar_lea.vmem [#allocation7], %s3865_s18 }
  0xdb   : > { %s5728_s14 = scalar_lea.hbm %s6841_s3, %s3939_s17  ;;  %s500_s28 = sshll.u32 %s493_s19, 4  ;;  %s5732_s28 = int_to_ptr.vmem [resolvable:$true] %s500_s28 }
  0xdc   : > { %s4986_s26 = scalar_lea.hbm %s5728_s14, 8192  ;;  %s4991_s21 = scalar_lea.hbm %s6841_s3, 24576 }
  0xdd   : > { %p4987_p4 = scmp.ne.s32.totalorder %s5728_s14, %s4986_s26  ;;  %p4992_p7 = scmp.lt.u32.totalorder %s5728_s14, %s6841_s3 }
  0xde   : > { %p4993_p0 = scmp.lt.u32.totalorder %s4991_s21, %s4986_s26  ;;  %p4995_p10 = scmp.lt.u32.totalorder %s4986_s26, %s5728_s14 }
  0xdf   : > { %p4989_p6 = pnand %p4987_p4, %p5543_p9 }
  0xe0   : > { %p4994_p11 = por %p4993_p0, %p4992_p7 }
  0xe1   : > { %p4990_p1 = pneg %p4989_p6 }
  0xe2   : > { %p4996_p3 = por %p4995_p10, %p4994_p11 }
  0xe4   : > { %p4997_p13 = pnand %p4996_p3, %p4990_p1 }
  0xe6   : > { %5000 = shalt.err (!%p4997_p13)
}
  0xe7   : > { %s5001_s18 = scalar_lea.vmem %s5732_s28, 8192  ;;  %s5322_s17 = smov [#allocation7]  }
  0xe8   : > { %p5002_p8 = scmp.ne.s32.totalorder %s5732_s28, %s5001_s18  ;;  %s5006_s15 = sshll.u32 %s5322_s17, 4  ;;  %s5007_s15 = int_to_ptr.vmem [resolvable:$false] %s5006_s15 }
  0xe9   : > { %s5008_s4 = scalar_lea.vmem %s5007_s15, 16384  ;;  %p5009_p4 = scmp.lt.s32.totalorder %s5732_s28, %s5007_s15 }
  0xea   : > { %p5004_p2 = pnand %p5002_p8, %p5543_p9  ;;  %p5010_p6 = scmp.lt.s32.totalorder %s5008_s4, %s5001_s18 }
  0xec   : > { %p5005_p5 = pneg %p5004_p2  ;;  %p5011_p7 = por %p5010_p6, %p5009_p4 }
  0xee   : > { %p5012_p0 = pnand %p5011_p7, %p5005_p5 }
  0xf0   : > { %5015 = shalt.err (!%p5012_p0)
}
  0xf1   : > { %s6878_s26 = smov 256   ;;  %s6880_s19 = smov 16  }
  0xf2   : > { %s6918_s27 = scalar_lea.sflag [#allocation6], %s5515_s0  ;;  %s5764_s6 = scalar_lea.hbm %s6843_s5, %s5572_s13 }
  0xf3   : > { %4620 = dma.hbm_to_vmem [thread:$0]  (!%p6917_p12), %s5728_s14, 8192, %s5732_s28, %s6918_s27, %s6878_s26, %s6878_s26, %s6880_s19  }
  0xf4   : > { %s533_s2 = scalar_lea.vmem [#allocation10], %s5569_s20  ;;  %s3877_s17 = sshll.u32 %s5508_s23, 10 }
  0xf5   : > { %s541_s18 = sshll.u32 %s533_s2, 4  ;;  %s5016_s15 = scalar_lea.hbm %s5764_s6, 32  ;;  %s542_s18 = int_to_ptr.vmem [resolvable:$true] %s541_s18 }
  0xf6   : > { %p5017_p1 = scmp.ne.s32.totalorder %s5764_s6, %s5016_s15  ;;  %s5021_s28 = scalar_lea.hbm %s6843_s5, 96 }
  0xf7   : > { %p5022_p3 = scmp.lt.u32.totalorder %s5764_s6, %s6843_s5  ;;  %p5023_p13 = scmp.lt.u32.totalorder %s5021_s28, %s5016_s15 }
  0xf8   : > { %p5019_p11 = pnand %p5017_p1, %p5543_p9  ;;  %p5025_p2 = scmp.lt.u32.totalorder %s5016_s15, %s5764_s6 }
  0xf9   : > { %p5024_p8 = por %p5023_p13, %p5022_p3 }
  0xfa   : > { %p5020_p10 = pneg %p5019_p11 }
  0xfb   : > { %p5026_p5 = por %p5025_p2, %p5024_p8 }
  0xfd   : > { %p5027_p4 = pnand %p5026_p5, %p5020_p10 }
  0xff   : > { %5030 = shalt.err (!%p5027_p4)
}
 0x100   : > { %s5031_s21 = scalar_lea.vmem %s542_s18, 32  ;;  %s5325_s2 = smov [#allocation10]  }
 0x101   : > { %p5032_p6 = scmp.ne.s32.totalorder %s542_s18, %s5031_s21  ;;  %s5036_s26 = sshll.u32 %s5325_s2, 4  ;;  %s5037_s26 = int_to_ptr.vmem [resolvable:$false] %s5036_s26 }
 0x102   : > { %s5038_s4 = scalar_lea.vmem %s5037_s26, 64  ;;  %p5039_p1 = scmp.lt.s32.totalorder %s542_s18, %s5037_s26 }
 0x103   : > { %p5034_p7 = pnand %p5032_p6, %p5543_p9  ;;  %p5040_p11 = scmp.lt.s32.totalorder %s5038_s4, %s5031_s21 }
 0x105   : > { %p5035_p0 = pneg %p5034_p7  ;;  %p5041_p12 = por %p5040_p11, %p5039_p1 }
 0x107   : > { %p5042_p3 = pnand %p5041_p12, %p5035_p0 }
 0x109   : > { %5045 = shalt.err (!%p5042_p3)
}
 0x10a   : > { %p6919_p13 = scmp.ne.s32.totalorder %s6907_s24, 0  ;;  %s6920_s15 = scalar_lea.sflag [#allocation9], %s5515_s0 }
 0x10b   : > { %s3943_s14 = sshll.u32 %s5304_s16, 14  ;;  %s571_s25 = scalar_lea.vmem [#allocation13], %s3877_s17 }
 0x10c   : > { %4626 = dma.hbm_to_vmem [thread:$0]  (!%p6919_p13), %s5764_s6, 32, %s542_s18, %s6920_s15  }
 0x10d   : > { %s5793_s26 = scalar_lea.hbm %s6845_s7, %s3943_s14  ;;  %s578_s21 = sshll.u32 %s571_s25, 4  ;;  %s5797_s21 = int_to_ptr.vmem [resolvable:$true] %s578_s21 }
 0x10e   : > { %s5046_s2 = scalar_lea.hbm %s5793_s26, 16384  ;;  %s5051_s4 = scalar_lea.hbm %s6845_s7, 49152 }
 0x10f   : > { %p5047_p12 = scmp.ne.s32.totalorder %s5793_s26, %s5046_s2  ;;  %p5052_p2 = scmp.lt.u32.totalorder %s5793_s26, %s6845_s7 }
 0x110   : > { %p5053_p5 = scmp.lt.u32.totalorder %s5051_s4, %s5046_s2  ;;  %p5055_p6 = scmp.lt.u32.totalorder %s5046_s2, %s5793_s26 }
 0x111   : > { %p5049_p10 = pnand %p5047_p12, %p5543_p9 }
 0x112   : > { %p5054_p4 = por %p5053_p5, %p5052_p2 }
 0x113   : > { %p5050_p8 = pneg %p5049_p10 }
 0x114   : > { %p5056_p7 = por %p5055_p6, %p5054_p4 }
 0x116   : > { %p5057_p0 = pnand %p5056_p7, %p5050_p8 }
 0x118   : > { %5060 = shalt.err (!%p5057_p0)
}
 0x119   : > { %s5061_s27 = scalar_lea.vmem %s5797_s21, 16384  ;;  %s5326_s25 = smov [#allocation13]  }
 0x11a   : > { %p5062_p1 = scmp.ne.s32.totalorder %s5797_s21, %s5061_s27  ;;  %s5066_s6 = sshll.u32 %s5326_s25, 4  ;;  %s5067_s6 = int_to_ptr.vmem [resolvable:$false] %s5066_s6 }
 0x11b   : > { %s5068_s18 = scalar_lea.vmem %s5067_s6, 32768  ;;  %p5069_p12 = scmp.lt.s32.totalorder %s5797_s21, %s5067_s6 }
 0x11c   : > { %p5064_p11 = pnand %p5062_p1, %p5543_p9  ;;  %p5070_p10 = scmp.lt.s32.totalorder %s5068_s18, %s5061_s27 }
 0x11e   : > { %p5065_p3 = pneg %p5064_p11  ;;  %p5071_p2 = por %p5070_p10, %p5069_p12 }
 0x120   : > { %p5072_p5 = pnand %p5071_p2, %p5065_p3 }
 0x122   : > { %5075 = shalt.err (!%p5072_p5)
}
 0x123   : > { %s5327_s2 = smov 512   ;;  %s5328_s4 = smov 32  }
 0x124   : > { %s6921_s15 = scalar_lea.sflag [#allocation12], %s5515_s0  ;;  %s5827_s27 = scalar_lea.hbm %s6847_s9, %s3943_s14 }
 0x125   : > { %4632 = dma.hbm_to_vmem [thread:$0]  (!%p6919_p13), %s5793_s26, 16384, %s5797_s21, %s6921_s15, %s5327_s2, %s5327_s2, %s5328_s4  }
 0x126   : > { %s611_s6 = scalar_lea.vmem [#allocation16], %s3877_s17  ;;  %s5076_s19 = scalar_lea.hbm %s5827_s27, 16384 }
 0x127   : > { %s618_s18 = sshll.u32 %s611_s6, 4  ;;  %p5077_p8 = scmp.ne.s32.totalorder %s5827_s27, %s5076_s19  ;;  %s5831_s18 = int_to_ptr.vmem [resolvable:$true] %s618_s18 }
 0x128   : > { %s5081_s2 = scalar_lea.hbm %s6847_s9, 49152  ;;  %p5082_p7 = scmp.lt.u32.totalorder %s5827_s27, %s6847_s9 }
 0x129   : > { %p5079_p4 = pnand %p5077_p8, %p5543_p9  ;;  %p5083_p0 = scmp.lt.u32.totalorder %s5081_s2, %s5076_s19 }
 0x12a   : > { %p5085_p11 = scmp.lt.u32.totalorder %s5076_s19, %s5827_s27 }
 0x12b   : > { %p5080_p6 = pneg %p5079_p4  ;;  %p5084_p1 = por %p5083_p0, %p5082_p7 }
 0x12d   : > { %p5086_p3 = por %p5085_p11, %p5084_p1 }
 0x12f   : > { %p5087_p12 = pnand %p5086_p3, %p5080_p6 }
 0x131   : > { %5090 = shalt.err (!%p5087_p12)
}
 0x132   : > { %s5091_s17 = scalar_lea.vmem %s5831_s18, 16384  ;;  %s5329_s15 = smov [#allocation16]  }
 0x133   : > { %p5092_p10 = scmp.ne.s32.totalorder %s5831_s18, %s5091_s17  ;;  %s5096_s28 = sshll.u32 %s5329_s15, 4  ;;  %s5097_s28 = int_to_ptr.vmem [resolvable:$false] %s5096_s28 }
 0x134   : > { %s5098_s25 = scalar_lea.vmem %s5097_s28, 32768  ;;  %p5099_p8 = scmp.lt.s32.totalorder %s5831_s18, %s5097_s28 }
 0x135   : > { %p5094_p2 = pnand %p5092_p10, %p5543_p9  ;;  %p5100_p4 = scmp.lt.s32.totalorder %s5098_s25, %s5091_s17 }
 0x137   : > { %p5095_p5 = pneg %p5094_p2  ;;  %p5101_p7 = por %p5100_p4, %p5099_p8 }
 0x139   : > { %p5102_p0 = pnand %p5101_p7, %p5095_p5 }
 0x13b   : > { %5105 = shalt.err (!%p5102_p0)
}
 0x13c   : > { %s6922_s19 = smov 16   ;;  %s6923_s6 = smov 256  }
 0x13d   : > { %s6924_s26 = scalar_lea.sflag [#allocation15], %s5515_s0  ;;  %s5863_s14 = scalar_lea.hbm %s6849_s11, %s5572_s13 }
 0x13e   : > { %4638 = dma.hbm_to_vmem [thread:$0]  (!%p6919_p13), %s5827_s27, 16384, %s5831_s18, %s6924_s26, %s6923_s6, %s6923_s6, %s6922_s19  }
 0x13f   : > { %s651_s4 = scalar_lea.vmem [#allocation19], %s5569_s20  ;;  %s5106_s15 = scalar_lea.hbm %s5863_s14, 32 }
 0x140   : > { %s659_s17 = sshll.u32 %s651_s4, 4  ;;  %p5107_p6 = scmp.ne.s32.totalorder %s5863_s14, %s5106_s15  ;;  %s660_s17 = int_to_ptr.vmem [resolvable:$true] %s659_s17 }
 0x141   : > { %s5111_s27 = scalar_lea.hbm %s6849_s11, 96  ;;  %p5112_p3 = scmp.lt.u32.totalorder %s5863_s14, %s6849_s11 }
 0x142   : > { %p5109_p1 = pnand %p5107_p6, %p5543_p9  ;;  %p5113_p12 = scmp.lt.u32.totalorder %s5111_s27, %s5106_s15 }
 0x143   : > { %p5115_p2 = scmp.lt.u32.totalorder %s5106_s15, %s5863_s14 }
 0x144   : > { %p5110_p11 = pneg %p5109_p1  ;;  %p5114_p10 = por %p5113_p12, %p5112_p3 }
 0x146   : > { %p5116_p5 = por %p5115_p2, %p5114_p10 }
 0x148   : > { %p5117_p8 = pnand %p5116_p5, %p5110_p11 }
 0x14a   : > { %5120 = shalt.err (!%p5117_p8)
}
 0x14b   : > { %s5121_s6 = scalar_lea.vmem %s660_s17, 32  ;;  %s5330_s26 = smov [#allocation19]  }
 0x14c   : > { %p5122_p4 = scmp.ne.s32.totalorder %s660_s17, %s5121_s6  ;;  %s5126_s21 = sshll.u32 %s5330_s26, 4  ;;  %s5127_s21 = int_to_ptr.vmem [resolvable:$false] %s5126_s21 }
 0x14d   : > { %s5128_s2 = scalar_lea.vmem %s5127_s21, 64  ;;  %p5129_p6 = scmp.lt.s32.totalorder %s660_s17, %s5127_s21 }
 0x14e   : > { %p5124_p7 = pnand %p5122_p4, %p5543_p9  ;;  %p5130_p1 = scmp.lt.s32.totalorder %s5128_s2, %s5121_s6 }
 0x150   : > { %p5125_p0 = pneg %p5124_p7  ;;  %p5131_p13 = por %p5130_p1, %p5129_p6 }
 0x152   : > { %p5132_p3 = pnand %p5131_p13, %p5125_p0 }
 0x154   : > { %5135 = shalt.err (!%p5132_p3)
}
 0x155   : > { %p6925_p12 = scmp.ne.s32.totalorder %s6907_s24, 0  ;;  %s6926_s4 = scalar_lea.sflag [#allocation18], %s5515_s0 }
 0x156   : > { %s5889_s25 = scalar_lea.hbm %s6850_s12, %s5572_s13  ;;  %s670_s27 = scalar_lea.vmem [#allocation20], %s5569_s20 }
 0x157   : > { %4644 = dma.hbm_to_vmem [thread:$0]  (!%p6925_p12), %s5863_s14, 32, %s660_s17, %s6926_s4  }
 0x158   : > { %s678_s18 = sshll.u32 %s670_s27, 4  ;;  %s667_s19 = scalar_lea.sflag [#allocation21], %s5508_s23  ;;  %s679_s18 = int_to_ptr.vmem [resolvable:$true] %s678_s18 }
 0x159   : > { %s5136_s0 = scalar_lea.hbm %s5889_s25, 32  ;;  %s5141_s17 = scalar_lea.hbm %s6850_s12, 96 }
 0x15a   : > { %p5137_p13 = scmp.ne.s32.totalorder %s5889_s25, %s5136_s0  ;;  %p5142_p2 = scmp.lt.u32.totalorder %s5889_s25, %s6850_s12 }
 0x15b   : > { %p5143_p5 = scmp.lt.u32.totalorder %s5141_s17, %s5136_s0  ;;  %p5145_p4 = scmp.lt.u32.totalorder %s5136_s0, %s5889_s25 }
 0x15c   : > { %p5139_p11 = pnand %p5137_p13, %p5543_p9 }
 0x15d   : > { %p5144_p8 = por %p5143_p5, %p5142_p2 }
 0x15e   : > { %p5140_p10 = pneg %p5139_p11 }
 0x15f   : > { %p5146_p7 = por %p5145_p4, %p5144_p8 }
 0x161   : > { %p5147_p0 = pnand %p5146_p7, %p5140_p10 }
 0x163   : > { %5150 = shalt.err (!%p5147_p0)
}
 0x164   : > { %s5151_s23 = scalar_lea.vmem %s679_s18, 32  ;;  %s5331_s20 = smov [#allocation20]  }
 0x165   : > { %p5152_p6 = scmp.ne.s32.totalorder %s679_s18, %s5151_s23  ;;  %s5156_s21 = sshll.u32 %s5331_s20, 4  ;;  %s5157_s21 = int_to_ptr.vmem [resolvable:$false] %s5156_s21 }
 0x166   : > { %s5158_s2 = scalar_lea.vmem %s5157_s21, 64  ;;  %p5159_p13 = scmp.lt.s32.totalorder %s679_s18, %s5157_s21 }
 0x167   : > { %p5154_p1 = pnand %p5152_p6, %p5543_p9  ;;  %p5160_p11 = scmp.lt.s32.totalorder %s5158_s2, %s5151_s23 }
 0x169   : > { %p5155_p3 = pneg %p5154_p1  ;;  %p5161_p12 = por %p5160_p11, %p5159_p13 }
 0x16b   : > { %p5162_p2 = pnand %p5161_p12, %p5155_p3 }
 0x16d   : > { %5165 = shalt.err (!%p5162_p2)
}
 0x16e   : > { %p6927_p5 = scmp.ne.s32.totalorder %s6907_s24, 0  ;;  %p6928_p10 = scmp.ne.s32.totalorder %s6909_s22, 0 }
 0x16f   : > { %s6929_s30 = sld [smem:[#allocation43_spill]] (!%p6928_p10)  ;;  %s5913_s4 = sand.u32 (!%p6928_p10), 1, %s5288_s29  }
 0x170   : > { %4647 = dma.hbm_to_vmem [thread:$0]  (!%p6927_p5), %s5889_s25, 32, %s679_s18, %s667_s19  }
 0x171   : > { %687 = sbr.rel (%p6928_p10) target bundleno = 4518 (0x11a6), region = 72  ;;  %s690_s28 = scalar_lea.sflag (!%p6928_p10), [#allocation3], %s5913_s4 }
 0x172   : > { %s4583_s15 = smul.u32 (!%p6928_p10), 1536, %s5913_s4 }
 0x174   : > { %s5917_s27 = scalar_lea.vmem (!%p6928_p10), [#allocation2], %s4583_s15 }
 0x175   : > { %p6930_p9 = scmp.ne.s32.totalorder (!%p6928_p10), %s6929_s30, 0 }
 0x178   : > { %5239 = dma.done.wait (%p6930_p9), %s690_s28, 24576  }
 0x179   : > { %5241 = vsyncadd (%p6930_p9), %s690_s28, 4294942720  ;;  %s6931_s24 = sld [smem:[#allocation39_spill]]  ;;  %s4584_s25 = smul.u32 6, %s5913_s4 }
 0x17b   : > { %s5928_s19 = scalar_lea.vmem [#allocation5], %s4584_s25 }
 0x17f   : > { %s5924_s22 = sand.u32 1, %s6931_s24  }
 0x180   : > { %s699_s18 = scalar_lea.sflag [#allocation6], %s5924_s22 }
 0x181   : > { %5243 = dma.done.wait (%p6930_p9), %s699_s18, 8288  }
 0x182   : > { %5245 = vsyncadd (%p6930_p9), %s699_s18, 4294959008  ;;  %s3896_s0 = sshll.u32 %s5913_s4, 9  ;;  %s5936_s6 = sshll.u32 %s5913_s4, 1 }
 0x183   : > { %s5938_s14 = scalar_lea.vmem [#allocation7], %s3896_s0  ;;  %s717_s17 = scalar_lea.sflag [#allocation9], %s5924_s22 }
 0x184   : > { %5247 = dma.done.wait (%p6930_p9), %s717_s17, 64  }
 0x185   : > { %5249 = vsyncadd (%p6930_p9), %s717_s17, 4294967232  ;;  %s735_s23 = scalar_lea.sflag [#allocation12], %s5924_s22 }
 0x186   : > { %5251 = dma.done.wait (%p6930_p9), %s735_s23, 16416  }
 0x187   : > { %5253 = vsyncadd (%p6930_p9), %s735_s23, 4294950880  ;;  %s3900_s21 = sshll.u32 %s5913_s4, 10  ;;  %s3901_s2 = sshll.u32 %s5913_s4, 2 }
 0x188   : > { %s5955_s15 = scalar_lea.vmem [#allocation13], %s3900_s21  ;;  %s753_s28 = scalar_lea.sflag [#allocation15], %s5924_s22 }
 0x189   : > { %s5958_s24 = scalar_lea.vmem [#allocation14], %s3901_s2 }
 0x18a   : > { %5255 = dma.done.wait (%p6930_p9), %s753_s28, 16448  }
 0x18b   : > { %5257 = vsyncadd (%p6930_p9), %s753_s28, 4294950848  ;;  %s5964_s25 = scalar_lea.vmem [#allocation16], %s3900_s21  ;;  %s771_s18 = scalar_lea.sflag [#allocation18], %s5924_s22 }
 0x18c   : > { %5259 = dma.done.wait (%p6930_p9), %s771_s18, 64  }
 0x18d   : > { %5261 = vsyncadd (%p6930_p9), %s771_s18, 4294967232  ;;  %s789_s23 = scalar_lea.sflag [#allocation21], %s5913_s4 }
 0x18e   : > { %5263 = dma.done.wait (%p6930_p9), %s789_s23, 32  }
 0x18f   : > { %5265 = vsyncadd (%p6930_p9), %s789_s23, 4294967264  ;;  %s6932_s21 = sld [smem:[#allocation32_spill]]  ;;  %s6933_s22 = sld [smem:[#allocation36_spill]] }
 0x190   : > { %s6934_s17 = sld [smem:[#allocation47_spill]]  ;;  %s6935_s26 = sld [smem:[#allocation35_spill]] }
 0x195   : > { %s892_s28 = sand.u32 1, %s6932_s21   ;;  %p895_p12 = scmp.lt.s32.totalorder %s6933_s22, 1 }
 0x196   : > { %s3906_s18 = sshll.u32 %s892_s28, 4  ;;  %p3909_p8 = scmp.ne.s32.totalorder %s6935_s26, 0 }
 0x197   : > { %s6972_s22 = smov (!%p895_p12, %s6933_s22), 1  ;;  %s5987_s2 = scalar_lea.vmem [#allocation22], %s3906_s18 }
 0x198   : > { %s3949_s0 = sshll.u32 %s6972_s22, 4  ;;  %903 = sbr.rel (%p3909_p8) target bundleno = 415 (0x19f), region = 124 }
 0x199   : > { %s899_s4 = scalar_lea.vmem %s6934_s17, %s3949_s0 }
 0x19a   : > { %v904_v0 = vld [vmem:[%s899_s4] sm:$0xff] (!%p3909_p8)  ;;  %v905_v1 = vld [vmem:[%s899_s4 + $0x8] sm:$0xff] (!%p3909_p8) }
 0x19b   : > { %906 = vst [vmem:[%s5987_s2] sm:$0xff] (!%p3909_p8), %v904_v0  ;;  %907 = vst [vmem:[%s5987_s2 + $0x8] sm:$0xff] (!%p3909_p8), %v905_v1 }
 0x19f PF: > { %v913_v2 = vld [vmem:[%s5917_s27 + $0x18] sm:$0xff]  ;;  %v919_v3 = vld [vmem:[%s5917_s27 + $0x48] sm:$0xff]  ;;  %v912_v4 = vld [vmem:[%s5917_s27 + $0x10] sm:$0xff]  ;;  %vm5333_vm0 = vmmov 0   ;;  %vm1347_vm1 = vcmask 261120   ;;  %s5334_s30 = smov 96  }
 0x1a0   : > { %v4127_v5 = vpack.c.bf16 %v919_v3, %v913_v2  ;;  %v918_v6 = vld [vmem:[%s5917_s27 + $0x40] sm:$0xff]  ;;  %v911_v7 = vld [vmem:[%s5917_s27 + $0x8] sm:$0xff]  ;;  %v917_v8 = vld [vmem:[%s5917_s27 + $0x38] sm:$0xff]  ;;  %vm1424_vm2 = vcmask 64512   ;;  %vm2686_vm3 = vcmask 523264   ;;  %vm2688_vm4 = vcmask 785408  }
 0x1a1   : > { %v4129_v9 = vpack.c.bf16 %v918_v6, %v912_v4  ;;  %v4063_v10 = vpack.c.bf16 %v917_v8, %v911_v7  ;;  %v910_v11 = vld [vmem:[%s5917_s27] sm:$0xff]  ;;  %v916_v12 = vld [vmem:[%s5917_s27 + $0x30] sm:$0xff]  ;;  %v925_v13 = vld [vmem:[%s5917_s27 + $0x78] sm:$0xff]  ;;  %s6937_s26 = scalar_lea.vmem [#allocation10], %s5936_s6  ;;  %s6938_s13 = scalar_lea.vmem [#allocation11], %s5936_s6 }
 0x1a2   : > { %4128 = vmatprep.subr.bf16.mxu1 %v4127_v5  ;;  %v4065_v14 = vpack.c.bf16 %v916_v12, %v910_v11  ;;  %v931_v15 = vld [vmem:[%s5917_s27 + $0xa8] sm:$0xff]  ;;  %v924_v16 = vld [vmem:[%s5917_s27 + $0x70] sm:$0xff]  ;;  %v930_v17 = vld [vmem:[%s5917_s27 + $0xa0] sm:$0xff]  ;;  %s6939_s20 = scalar_lea.vmem [#allocation17], %s5936_s6  ;;  %s6944_s17 = sld [smem:[#allocation45_spill]] }
 0x1a3   : > { %4130 = vmatpush1.bf16.msra.mxu1 %v4129_v9  ;;  %4064 = vmatprep.subr.bf16.mxu0 %v4063_v10  ;;  %v4131_v18 = vpack.c.bf16 %v931_v15, %v925_v13  ;;  %v4133_v19 = vpack.c.bf16 %v930_v17, %v924_v16  ;;  %v923_v20 = vld [vmem:[%s5917_s27 + $0x68] sm:$0xff]  ;;  %v929_v21 = vld [vmem:[%s5917_s27 + $0x98] sm:$0xff]  ;;  %v922_v22 = vld [vmem:[%s5917_s27 + $0x60] sm:$0xff]  ;;  %s3528_s21 = sshll.u32 %s5987_s2, 4  ;;  %s6945_s18 = sld [smem:[#allocation51_spill]]  ;;  %s6774_s21 = int_to_ptr.vmem [resolvable:$true] %s3528_s21 }
 0x1a4   : > { %4066 = vmatpush1.bf16.msra.mxu0 %v4065_v14  ;;  %v4067_v23 = vpack.c.bf16 %v929_v21, %v923_v20  ;;  %v928_v24 = vld [vmem:[%s5917_s27 + $0x90] sm:$0xff]  ;;  %v937_v25 = vld [vmem:[%s5917_s27 + $0xd8] sm:$0xff]  ;;  %v943_v26 = vld [vmem:[%s5917_s27 + $0x108] sm:$0xff] }
 0x1a5   : > { %4132 = vmatprep.subr.bf16.mxu1 %v4131_v18  ;;  %v4069_v27 = vpack.c.bf16 %v928_v24, %v922_v22  ;;  %v4135_v28 = vpack.c.bf16 %v943_v26, %v937_v25  ;;  %v936_v29 = vld [vmem:[%s5917_s27 + $0xd0] sm:$0xff]  ;;  %v942_v30 = vld [vmem:[%s5917_s27 + $0x100] sm:$0xff]  ;;  %v935_v31 = vld [vmem:[%s5917_s27 + $0xc8] sm:$0xff] }
 0x1a6   : > { %4068 = vmatprep.subr.bf16.mxu0 %v4067_v23  ;;  %v941_v32 = vld [vmem:[%s5917_s27 + $0xf8] sm:$0xff]  ;;  %v934_v33 = vld [vmem:[%s5917_s27 + $0xc0] sm:$0xff]  ;;  %v940_v34 = vld [vmem:[%s5917_s27 + $0xf0] sm:$0xff]  ;;  %v4137_v35 = vpack.c.bf16 %v942_v30, %v936_v29 }
 0x1a7   : > { %4134 = vmatpush1.bf16.msra.mxu1 %v4133_v19  ;;  %v4071_v36 = vpack.c.bf16 %v941_v32, %v935_v31  ;;  %v949_v37 = vld [vmem:[%s5917_s27 + $0x138] sm:$0xff]  ;;  %v955_v38 = vld [vmem:[%s5917_s27 + $0x168] sm:$0xff]  ;;  %v948_v39 = vld [vmem:[%s5917_s27 + $0x130] sm:$0xff]  ;;  %v4073_v40 = vpack.c.bf16 %v940_v34, %v934_v33 }
 0x1a8   : > { %4070 = vmatpush1.bf16.msra.mxu0 %v4069_v27  ;;  %4136 = vmatprep.subr.bf16.mxu1 %v4135_v28  ;;  %v4139_v41 = vpack.c.bf16 %v955_v38, %v949_v37  ;;  %v954_v42 = vld [vmem:[%s5917_s27 + $0x160] sm:$0xff]  ;;  %v947_v43 = vld [vmem:[%s5917_s27 + $0x128] sm:$0xff]  ;;  %v953_v44 = vld [vmem:[%s5917_s27 + $0x158] sm:$0xff]  ;;  %p6947_p7 = scmp.ne.s32.totalorder %s6944_s17, 0 }
 0x1a9   : > { %4072 = vmatprep.subr.bf16.mxu0 %v4071_v36  ;;  %v4075_v45 = vpack.c.bf16 %v953_v44, %v947_v43  ;;  %v946_v46 = vld [vmem:[%s5917_s27 + $0x120] sm:$0xff]  ;;  %v952_v47 = vld [vmem:[%s5917_s27 + $0x150] sm:$0xff]  ;;  %v961_v48 = vld [vmem:[%s5917_s27 + $0x198] sm:$0xff]  ;;  %v4141_v50 = vpack.c.bf16 %v954_v42, %v948_v39  ;;  %s6946_s4 = smov %s6945_s18 }
 0x1aa   : > { %v967_v49 = vld [vmem:[%s5917_s27 + $0x1c8] sm:$0xff]  ;;  %v965_v52 = vld [vmem:[%s5917_s27 + $0x1b8] sm:$0xff]  ;;  %v4077_v53 = vpack.c.bf16 %v952_v47, %v946_v46  ;;  %v960_v55 = vld [vmem:[%s5917_s27 + $0x190] sm:$0xff] }
 0x1ab   : > { %4138 = vmatpush1.bf16.msra.mxu1 %v4137_v35  ;;  %v959_v51 = vld [vmem:[%s5917_s27 + $0x188] sm:$0xff]  ;;  %v4143_v54 = vpack.c.bf16 %v967_v49, %v961_v48  ;;  %v966_v56 = vld [vmem:[%s5917_s27 + $0x1c0] sm:$0xff]  ;;  %v964_v59 = vld [vmem:[%s5917_s27 + $0x1b0] sm:$0xff] }
 0x1ac   : > { %4074 = vmatpush1.bf16.msra.mxu0 %v4073_v40  ;;  %4140 = vmatprep.subr.bf16.mxu1 %v4139_v41  ;;  %v958_v57 = vld [vmem:[%s5917_s27 + $0x180] sm:$0xff]  ;;  %v4079_v58 = vpack.c.bf16 %v965_v52, %v959_v51  ;;  %v973_v60 = vld [vmem:[%s5917_s27 + $0x1f8] sm:$0xff]  ;;  %v979_v61 = vld [vmem:[%s5917_s27 + $0x228] sm:$0xff]  ;;  %v4145_v0 = vpack.c.bf16 %v966_v56, %v960_v55 }
 0x1ad   : > { %4076 = vmatprep.subr.bf16.mxu0 %v4075_v45  ;;  %v971_v62 = vld [vmem:[%s5917_s27 + $0x1e8] sm:$0xff]  ;;  %v977_v63 = vld [vmem:[%s5917_s27 + $0x218] sm:$0xff]  ;;  %v4081_v1 = vpack.c.bf16 %v964_v59, %v958_v57  ;;  %v4147_v2 = vpack.c.bf16 %v979_v61, %v973_v60  ;;  %v972_v3 = vld [vmem:[%s5917_s27 + $0x1f0] sm:$0xff] }
 0x1ae   : > { %v978_v4 = vld [vmem:[%s5917_s27 + $0x220] sm:$0xff]  ;;  %v4083_v6 = vpack.c.bf16 %v977_v63, %v971_v62  ;;  %v976_v7 = vld [vmem:[%s5917_s27 + $0x210] sm:$0xff]  ;;  %v985_v8 = vld [vmem:[%s5917_s27 + $0x258] sm:$0xff] }
 0x1af   : > { %4142 = vmatpush1.bf16.msra.mxu1 %v4141_v50  ;;  %v970_v5 = vld [vmem:[%s5917_s27 + $0x1e0] sm:$0xff]  ;;  %v991_v9 = vld [vmem:[%s5917_s27 + $0x288] sm:$0xff]  ;;  %v989_v11 = vld [vmem:[%s5917_s27 + $0x278] sm:$0xff]  ;;  %v4149_v12 = vpack.c.bf16 %v978_v4, %v972_v3 }
 0x1b0   : > { %4078 = vmatpush1.bf16.msra.mxu0 %v4077_v53  ;;  %4144 = vmatprep.subr.bf16.mxu1 %v4143_v54  ;;  %v983_v10 = vld [vmem:[%s5917_s27 + $0x248] sm:$0xff]  ;;  %v4085_v13 = vpack.c.bf16 %v976_v7, %v970_v5  ;;  %v4151_v14 = vpack.c.bf16 %v991_v9, %v985_v8  ;;  %v984_v15 = vld [vmem:[%s5917_s27 + $0x250] sm:$0xff]  ;;  %v990_v16 = vld [vmem:[%s5917_s27 + $0x280] sm:$0xff] }
 0x1b1   : > { %4080 = vmatprep.subr.bf16.mxu0 %v4079_v58  ;;  %v982_v17 = vld [vmem:[%s5917_s27 + $0x240] sm:$0xff]  ;;  %v4087_v18 = vpack.c.bf16 %v989_v11, %v983_v10  ;;  %v988_v19 = vld [vmem:[%s5917_s27 + $0x270] sm:$0xff]  ;;  %v997_v20 = vld [vmem:[%s5917_s27 + $0x2b8] sm:$0xff]  ;;  %v4153_v24 = vpack.c.bf16 %v990_v16, %v984_v15 }
 0x1b2   : > { %v1003_v21 = vld [vmem:[%s5917_s27 + $0x2e8] sm:$0xff]  ;;  %v1001_v23 = vld [vmem:[%s5917_s27 + $0x2d8] sm:$0xff]  ;;  %v4089_v25 = vpack.c.bf16 %v988_v19, %v982_v17  ;;  %v996_v27 = vld [vmem:[%s5917_s27 + $0x2b0] sm:$0xff] }
 0x1b3   : > { %4146 = vmatpush1.bf16.msra.mxu1 %v4145_v0  ;;  %v995_v22 = vld [vmem:[%s5917_s27 + $0x2a8] sm:$0xff]  ;;  %v4155_v26 = vpack.c.bf16 %v1003_v21, %v997_v20  ;;  %v1002_v28 = vld [vmem:[%s5917_s27 + $0x2e0] sm:$0xff]  ;;  %v1000_v31 = vld [vmem:[%s5917_s27 + $0x2d0] sm:$0xff] }
 0x1b4   : > { %4082 = vmatpush1.bf16.msra.mxu0 %v4081_v1  ;;  %4148 = vmatprep.subr.bf16.mxu1 %v4147_v2  ;;  %v994_v29 = vld [vmem:[%s5917_s27 + $0x2a0] sm:$0xff]  ;;  %v4091_v30 = vpack.c.bf16 %v1001_v23, %v995_v22  ;;  %v1009_v32 = vld [vmem:[%s5917_s27 + $0x318] sm:$0xff]  ;;  %v1015_v33 = vld [vmem:[%s5917_s27 + $0x348] sm:$0xff]  ;;  %v4157_v36 = vpack.c.bf16 %v1002_v28, %v996_v27 }
 0x1b5   : > { %4084 = vmatprep.subr.bf16.mxu0 %v4083_v6  ;;  %v1007_v34 = vld [vmem:[%s5917_s27 + $0x308] sm:$0xff]  ;;  %v1013_v35 = vld [vmem:[%s5917_s27 + $0x338] sm:$0xff]  ;;  %v4093_v37 = vpack.c.bf16 %v1000_v31, %v994_v29  ;;  %v4159_v38 = vpack.c.bf16 %v1015_v33, %v1009_v32  ;;  %v1008_v39 = vld [vmem:[%s5917_s27 + $0x310] sm:$0xff] }
 0x1b6   : > { %v1014_v40 = vld [vmem:[%s5917_s27 + $0x340] sm:$0xff]  ;;  %v4095_v42 = vpack.c.bf16 %v1013_v35, %v1007_v34  ;;  %v1012_v43 = vld [vmem:[%s5917_s27 + $0x330] sm:$0xff]  ;;  %v1021_v44 = vld [vmem:[%s5917_s27 + $0x378] sm:$0xff] }
 0x1b7   : > { %4150 = vmatpush1.bf16.msra.mxu1 %v4149_v12  ;;  %v1006_v41 = vld [vmem:[%s5917_s27 + $0x300] sm:$0xff]  ;;  %v1027_v45 = vld [vmem:[%s5917_s27 + $0x3a8] sm:$0xff]  ;;  %v1025_v47 = vld [vmem:[%s5917_s27 + $0x398] sm:$0xff]  ;;  %v4161_v48 = vpack.c.bf16 %v1014_v40, %v1008_v39 }
 0x1b8   : > { %4086 = vmatpush1.bf16.msra.mxu0 %v4085_v13  ;;  %4152 = vmatprep.subr.bf16.mxu1 %v4151_v14  ;;  %v1019_v46 = vld [vmem:[%s5917_s27 + $0x368] sm:$0xff]  ;;  %v4097_v49 = vpack.c.bf16 %v1012_v43, %v1006_v41  ;;  %v4163_v50 = vpack.c.bf16 %v1027_v45, %v1021_v44  ;;  %v1020_v51 = vld [vmem:[%s5917_s27 + $0x370] sm:$0xff]  ;;  %v1026_v52 = vld [vmem:[%s5917_s27 + $0x3a0] sm:$0xff] }
 0x1b9   : > { %4088 = vmatprep.subr.bf16.mxu0 %v4087_v18  ;;  %v1018_v53 = vld [vmem:[%s5917_s27 + $0x360] sm:$0xff]  ;;  %v4099_v54 = vpack.c.bf16 %v1025_v47, %v1019_v46  ;;  %v1024_v55 = vld [vmem:[%s5917_s27 + $0x390] sm:$0xff]  ;;  %v1033_v56 = vld [vmem:[%s5917_s27 + $0x3d8] sm:$0xff]  ;;  %v4165_v60 = vpack.c.bf16 %v1026_v52, %v1020_v51 }
 0x1ba   : > { %v1039_v57 = vld [vmem:[%s5917_s27 + $0x408] sm:$0xff]  ;;  %v1037_v59 = vld [vmem:[%s5917_s27 + $0x3f8] sm:$0xff]  ;;  %v4101_v61 = vpack.c.bf16 %v1024_v55, %v1018_v53  ;;  %v1032_v63 = vld [vmem:[%s5917_s27 + $0x3d0] sm:$0xff] }
 0x1bb   : > { %4154 = vmatpush1.bf16.msra.mxu1 %v4153_v24  ;;  %v1031_v58 = vld [vmem:[%s5917_s27 + $0x3c8] sm:$0xff]  ;;  %v4167_v62 = vpack.c.bf16 %v1039_v57, %v1033_v56  ;;  %v1038_v0 = vld [vmem:[%s5917_s27 + $0x400] sm:$0xff]  ;;  %v1036_v3 = vld [vmem:[%s5917_s27 + $0x3f0] sm:$0xff] }
 0x1bc   : > { %4090 = vmatpush1.bf16.msra.mxu0 %v4089_v25  ;;  %4156 = vmatprep.subr.bf16.mxu1 %v4155_v26  ;;  %v1030_v1 = vld [vmem:[%s5917_s27 + $0x3c0] sm:$0xff]  ;;  %v4103_v2 = vpack.c.bf16 %v1037_v59, %v1031_v58  ;;  %v1045_v4 = vld [vmem:[%s5917_s27 + $0x438] sm:$0xff]  ;;  %v1051_v5 = vld [vmem:[%s5917_s27 + $0x468] sm:$0xff]  ;;  %v4169_v8 = vpack.c.bf16 %v1038_v0, %v1032_v63 }
 0x1bd   : > { %4092 = vmatprep.subr.bf16.mxu0 %v4091_v30  ;;  %v1043_v6 = vld [vmem:[%s5917_s27 + $0x428] sm:$0xff]  ;;  %v1049_v7 = vld [vmem:[%s5917_s27 + $0x458] sm:$0xff]  ;;  %v1044_v9 = vld [vmem:[%s5917_s27 + $0x430] sm:$0xff]  ;;  %v4105_v10 = vpack.c.bf16 %v1036_v3, %v1030_v1  ;;  %v4171_v11 = vpack.c.bf16 %v1051_v5, %v1045_v4 }
 0x1be   : > { %v1050_v12 = vld [vmem:[%s5917_s27 + $0x460] sm:$0xff]  ;;  %v1048_v14 = vld [vmem:[%s5917_s27 + $0x450] sm:$0xff]  ;;  %v4107_v15 = vpack.c.bf16 %v1049_v7, %v1043_v6  ;;  %v1057_v16 = vld [vmem:[%s5917_s27 + $0x498] sm:$0xff] }
 0x1bf   : > { %4158 = vmatpush1.bf16.msra.mxu1 %v4157_v36  ;;  %v1042_v13 = vld [vmem:[%s5917_s27 + $0x420] sm:$0xff]  ;;  %v1063_v17 = vld [vmem:[%s5917_s27 + $0x4c8] sm:$0xff]  ;;  %v1061_v20 = vld [vmem:[%s5917_s27 + $0x4b8] sm:$0xff]  ;;  %v4173_v21 = vpack.c.bf16 %v1050_v12, %v1044_v9 }
 0x1c0   : > { %4094 = vmatpush1.bf16.msra.mxu0 %v4093_v37  ;;  %4160 = vmatprep.subr.bf16.mxu1 %v4159_v38  ;;  %v6091_v18 = vld [vmem:[%s5987_s2 + $0x8] sm:$0xff]  ;;  %v4109_v22 = vpack.c.bf16 %v1048_v14, %v1042_v13  ;;  %v4175_v23 = vpack.c.bf16 %v1063_v17, %v1057_v16 }
 0x1c1   : > { %4096 = vmatprep.subr.bf16.mxu0 %v4095_v42  ;;  %v1055_v19 = vld [vmem:[%s5917_s27 + $0x488] sm:$0xff]  ;;  %1269 = vmatprep.mubr.f32.mxu1 %v6091_v18  ;;  %v1056_v24 = vld [vmem:[%s5917_s27 + $0x490] sm:$0xff]  ;;  %v1062_v25 = vld [vmem:[%s5917_s27 + $0x4c0] sm:$0xff] }
 0x1c2   : > { %1198 = vmatprep.mubr.f32.mxu0 %v6091_v18  ;;  %v1054_v26 = vld [vmem:[%s5917_s27 + $0x480] sm:$0xff]  ;;  %v4111_v27 = vpack.c.bf16 %v1061_v20, %v1055_v19  ;;  %v1060_v28 = vld [vmem:[%s5917_s27 + $0x4b0] sm:$0xff]  ;;  %v1069_v29 = vld [vmem:[%s5917_s27 + $0x4f8] sm:$0xff]  ;;  %v4177_v33 = vpack.c.bf16 %v1062_v25, %v1056_v24 }
 0x1c3   : > { %4162 = vmatpush1.bf16.msra.mxu1 %v4161_v48  ;;  %v1075_v30 = vld [vmem:[%s5917_s27 + $0x528] sm:$0xff]  ;;  %v1073_v32 = vld [vmem:[%s5917_s27 + $0x518] sm:$0xff]  ;;  %v4113_v34 = vpack.c.bf16 %v1060_v28, %v1054_v26  ;;  %v1068_v36 = vld [vmem:[%s5917_s27 + $0x4f0] sm:$0xff] }
 0x1c4   : > { %4098 = vmatpush1.bf16.msra.mxu0 %v4097_v49  ;;  %4164 = vmatprep.subr.bf16.mxu1 %v4163_v50  ;;  %v1067_v31 = vld [vmem:[%s5917_s27 + $0x4e8] sm:$0xff]  ;;  %v4179_v35 = vpack.c.bf16 %v1075_v30, %v1069_v29  ;;  %v1074_v37 = vld [vmem:[%s5917_s27 + $0x520] sm:$0xff]  ;;  %v1072_v40 = vld [vmem:[%s5917_s27 + $0x510] sm:$0xff] }
 0x1c5   : > { %4100 = vmatprep.subr.bf16.mxu0 %v4099_v54  ;;  %v1066_v38 = vld [vmem:[%s5917_s27 + $0x4e0] sm:$0xff]  ;;  %v4115_v39 = vpack.c.bf16 %v1073_v32, %v1067_v31  ;;  %v1081_v41 = vld [vmem:[%s5917_s27 + $0x558] sm:$0xff]  ;;  %v1087_v42 = vld [vmem:[%s5917_s27 + $0x588] sm:$0xff]  ;;  %v4181_v45 = vpack.c.bf16 %v1074_v37, %v1068_v36 }
 0x1c6   : > { %v1079_v43 = vld [vmem:[%s5917_s27 + $0x548] sm:$0xff]  ;;  %v1085_v44 = vld [vmem:[%s5917_s27 + $0x578] sm:$0xff]  ;;  %v4117_v46 = vpack.c.bf16 %v1072_v40, %v1066_v38  ;;  %v4183_v47 = vpack.c.bf16 %v1087_v42, %v1081_v41  ;;  %v1080_v48 = vld [vmem:[%s5917_s27 + $0x550] sm:$0xff] }
 0x1c7   : > { %4166 = vmatpush1.bf16.msra.mxu1 %v4165_v60  ;;  %v1086_v49 = vld [vmem:[%s5917_s27 + $0x580] sm:$0xff]  ;;  %v4119_v51 = vpack.c.bf16 %v1085_v44, %v1079_v43  ;;  %v1084_v52 = vld [vmem:[%s5917_s27 + $0x570] sm:$0xff]  ;;  %v1093_v53 = vld [vmem:[%s5917_s27 + $0x5b8] sm:$0xff] }
 0x1c8   : > { %4102 = vmatpush1.bf16.msra.mxu0 %v4101_v61  ;;  %4168 = vmatprep.subr.bf16.mxu1 %v4167_v62  ;;  %v1078_v50 = vld [vmem:[%s5917_s27 + $0x540] sm:$0xff]  ;;  %v1099_v54 = vld [vmem:[%s5917_s27 + $0x5e8] sm:$0xff]  ;;  %v1097_v56 = vld [vmem:[%s5917_s27 + $0x5d8] sm:$0xff]  ;;  %v4185_v57 = vpack.c.bf16 %v1086_v49, %v1080_v48 }
 0x1c9   : > { %4104 = vmatprep.subr.bf16.mxu0 %v4103_v2  ;;  %v1091_v55 = vld [vmem:[%s5917_s27 + $0x5a8] sm:$0xff]  ;;  %v4121_v58 = vpack.c.bf16 %v1084_v52, %v1078_v50  ;;  %v4187_v59 = vpack.c.bf16 %v1099_v54, %v1093_v53  ;;  %v1092_v60 = vld [vmem:[%s5917_s27 + $0x5b0] sm:$0xff]  ;;  %v1098_v61 = vld [vmem:[%s5917_s27 + $0x5e0] sm:$0xff] }
 0x1ca   : > { %v4123_v62 = vpack.c.bf16 %v1097_v56, %v1091_v55  ;;  %v1090_v63 = vld [vmem:[%s5917_s27 + $0x5a0] sm:$0xff]  ;;  %v1096_v0 = vld [vmem:[%s5917_s27 + $0x5d0] sm:$0xff]  ;;  %v915_v1 = vld [vmem:[%s5917_s27 + $0x28] sm:$0xff]  ;;  %v4189_v3 = vpack.c.bf16 %v1098_v61, %v1092_v60 }
 0x1cb   : > { %4170 = vmatpush1.bf16.msra.mxu1 %v4169_v8  ;;  %v921_v2 = vld [vmem:[%s5917_s27 + $0x58] sm:$0xff]  ;;  %v4125_v4 = vpack.c.bf16 %v1096_v0, %v1090_v63  ;;  %v914_v6 = vld [vmem:[%s5917_s27 + $0x20] sm:$0xff]  ;;  %v920_v7 = vld [vmem:[%s5917_s27 + $0x50] sm:$0xff] }
 0x1cc   : > { %4106 = vmatpush1.bf16.msra.mxu0 %v4105_v10  ;;  %4172 = vmatprep.subr.bf16.mxu1 %v4171_v11  ;;  %v4191_v5 = vpack.c.bf16 %v921_v2, %v915_v1  ;;  %v927_v8 = vld [vmem:[%s5917_s27 + $0x88] sm:$0xff]  ;;  %v933_v9 = vld [vmem:[%s5917_s27 + $0xb8] sm:$0xff]  ;;  %v4193_v11 = vpack.c.bf16 %v920_v7, %v914_v6  ;;  %v926_v13 = vld [vmem:[%s5917_s27 + $0x80] sm:$0xff] }
 0x1cd   : > { %4108 = vmatprep.subr.bf16.mxu0 %v4107_v15  ;;  %v6132_v10 = vld [vmem:[%s5987_s2] sm:$0xff]  ;;  %v4195_v12 = vpack.c.bf16 %v933_v9, %v927_v8 }
 0x1ce   : > { %v932_v14 = vld [vmem:[%s5917_s27 + $0xb0] sm:$0xff]  ;;  %v939_v15 = vld [vmem:[%s5917_s27 + $0xe8] sm:$0xff]  ;;  %v945_v16 = vld [vmem:[%s5917_s27 + $0x118] sm:$0xff] }
 0x1cf   : > { %4174 = vmatpush1.bf16.msra.mxu1 %v4173_v21  ;;  %v4197_v17 = vpack.c.bf16 %v932_v14, %v926_v13  ;;  %v4199_v19 = vpack.c.bf16 %v945_v16, %v939_v15  ;;  %v938_v20 = vld [vmem:[%s5917_s27 + $0xe0] sm:$0xff]  ;;  %v944_v21 = vld [vmem:[%s5917_s27 + $0x110] sm:$0xff]  ;;  %v963_v28 = vld [vmem:[%s5917_s27 + $0x1a8] sm:$0xff] }
 0x1d0   : > { %4110 = vmatpush1.bf16.msra.mxu0 %v4109_v22  ;;  %4176 = vmatprep.subr.bf16.mxu1 %v4175_v23  ;;  %v951_v22 = vld [vmem:[%s5917_s27 + $0x148] sm:$0xff]  ;;  %v957_v23 = vld [vmem:[%s5917_s27 + $0x178] sm:$0xff]  ;;  %v4201_v24 = vpack.c.bf16 %v944_v21, %v938_v20  ;;  %v950_v26 = vld [vmem:[%s5917_s27 + $0x140] sm:$0xff] }
 0x1d1   : > { %4112 = vmatprep.subr.bf16.mxu0 %v4111_v27  ;;  %v4203_v25 = vpack.c.bf16 %v957_v23, %v951_v22  ;;  %v956_v27 = vld [vmem:[%s5917_s27 + $0x170] sm:$0xff]  ;;  %v962_v31 = vld [vmem:[%s5917_s27 + $0x1a0] sm:$0xff]  ;;  %v993_v40 = vld [vmem:[%s5917_s27 + $0x298] sm:$0xff] }
 0x1d2   : > { %v4205_v29 = vpack.c.bf16 %v956_v27, %v950_v26  ;;  %v968_v32 = vld [vmem:[%s5917_s27 + $0x1d0] sm:$0xff]  ;;  %v974_v37 = vld [vmem:[%s5917_s27 + $0x200] sm:$0xff]  ;;  %v1017_v52 = vld [vmem:[%s5917_s27 + $0x358] sm:$0xff] }
 0x1d3   : > { %4178 = vmatpush1.bf16.msra.mxu1 %v4177_v33  ;;  %v975_v33 = vld [vmem:[%s5917_s27 + $0x208] sm:$0xff]  ;;  %v980_v38 = vld [vmem:[%s5917_s27 + $0x230] sm:$0xff]  ;;  %v986_v43 = vld [vmem:[%s5917_s27 + $0x260] sm:$0xff] }
 0x1d4   : > { %4114 = vmatpush1.bf16.msra.mxu0 %v4113_v34  ;;  %4180 = vmatprep.subr.bf16.mxu1 %v4179_v35  ;;  %v981_v34 = vld [vmem:[%s5917_s27 + $0x238] sm:$0xff]  ;;  %v4209_v35 = vpack.c.bf16 %v968_v32, %v962_v31  ;;  %v4213_v41 = vpack.c.bf16 %v980_v38, %v974_v37  ;;  %v992_v44 = vld [vmem:[%s5917_s27 + $0x290] sm:$0xff]  ;;  %v998_v49 = vld [vmem:[%s5917_s27 + $0x2c0] sm:$0xff]  ;;  %v5332_v37 = vmov 0.0   ;;  %v1104_v38 = vlaneseq }
 0x1d5   : > { %4116 = vmatprep.subr.bf16.mxu0 %v4115_v39  ;;  %v4211_v36 = vpack.c.bf16 %v981_v34, %v975_v33  ;;  %v987_v39 = vld [vmem:[%s5917_s27 + $0x268] sm:$0xff]  ;;  %v1004_v50 = vld [vmem:[%s5917_s27 + $0x2f0] sm:$0xff]  ;;  %v1010_v55 = vld [vmem:[%s5917_s27 + $0x320] sm:$0xff] }
 0x1d6   : > { %v4215_v42 = vpack.c.bf16 %v993_v40, %v987_v39  ;;  %v4221_v53 = vpack.c.bf16 %v1004_v50, %v998_v49  ;;  %v1016_v56 = vld [vmem:[%s5917_s27 + $0x350] sm:$0xff]  ;;  %v1022_v61 = vld [vmem:[%s5917_s27 + $0x380] sm:$0xff]  ;;  %v1035_v63 = vld [vmem:[%s5917_s27 + $0x3e8] sm:$0xff]  ;;  %v6202_v39 = vshrl.u32 %v1104_v38, 7 }
 0x1d7   : > { %4182 = vmatpush1.bf16.msra.mxu1 %v4181_v45  ;;  %v999_v45 = vld [vmem:[%s5917_s27 + $0x2c8] sm:$0xff]  ;;  %v1041_v0 = vld [vmem:[%s5917_s27 + $0x418] sm:$0xff]  ;;  %v1046_v9 = vld [vmem:[%s5917_s27 + $0x440] sm:$0xff] }
 0x1d8   : > { %4118 = vmatpush1.bf16.msra.mxu0 %v4117_v46  ;;  %4184 = vmatprep.subr.bf16.mxu1 %v4183_v47  ;;  %v1005_v46 = vld [vmem:[%s5917_s27 + $0x2f8] sm:$0xff]  ;;  %v4217_v47 = vpack.c.bf16 %v992_v44, %v986_v43  ;;  %v4231_v2 = vpack.c.bf16 %v1041_v0, %v1035_v63  ;;  %v1058_v16 = vld [vmem:[%s5917_s27 + $0x4a0] sm:$0xff]  ;;  %v1114_v40 = vsub.s32 2, %v6202_v39  ;;  %v6211_v43 = vsub.s32 1, %v6202_v39 }
 0x1d9   : > { %4120 = vmatprep.subr.bf16.mxu0 %v4119_v51  ;;  %v4219_v48 = vpack.c.bf16 %v1005_v46, %v999_v45  ;;  %v1011_v51 = vld [vmem:[%s5917_s27 + $0x328] sm:$0xff]  ;;  %v1053_v6 = vld [vmem:[%s5917_s27 + $0x478] sm:$0xff]  ;;  %v1070_v23 = vld [vmem:[%s5917_s27 + $0x500] sm:$0xff] }
 0x1da   : > { %v4223_v54 = vpack.c.bf16 %v1017_v52, %v1011_v51  ;;  %v1065_v13 = vld [vmem:[%s5917_s27 + $0x4d8] sm:$0xff]  ;;  %v1094_v34 = vld [vmem:[%s5917_s27 + $0x5c0] sm:$0xff] }
 0x1db   : > { %4186 = vmatpush1.bf16.msra.mxu1 %v4185_v57  ;;  %v1023_v57 = vld [vmem:[%s5917_s27 + $0x388] sm:$0xff]  ;;  %v1077_v20 = vld [vmem:[%s5917_s27 + $0x538] sm:$0xff] }
 0x1dc   : > { %4122 = vmatpush1.bf16.msra.mxu0 %v4121_v58  ;;  %4188 = vmatprep.subr.bf16.mxu1 %v4187_v59  ;;  %v1029_v58 = vld [vmem:[%s5917_s27 + $0x3b8] sm:$0xff]  ;;  %v4225_v59 = vpack.c.bf16 %v1016_v56, %v1010_v55  ;;  %v1122_v56 = vsub.s32 4, %v6202_v39 }
 0x1dd   : > { %4124 = vmatprep.subr.bf16.mxu0 %v4123_v62  ;;  %v4227_v60 = vpack.c.bf16 %v1029_v58, %v1023_v57  ;;  %v1028_v62 = vld [vmem:[%s5917_s27 + $0x3b0] sm:$0xff]  ;;  %v1089_v26 = vld [vmem:[%s5917_s27 + $0x598] sm:$0xff]  ;;  %v1126_v57 = vsub.s32 5, %v6202_v39 }
 0x1de   : > { %v4229_v1 = vpack.c.bf16 %v1028_v62, %v1022_v61  ;;  %v1101_v31 = vld [vmem:[%s5917_s27 + $0x5f8] sm:$0xff] }
 0x1df   : > { %4190 = vmatpush1.bf16.msra.mxu1 %v4189_v3  ;;  %v1034_v3 = vld [vmem:[%s5917_s27 + $0x3e0] sm:$0xff] }
 0x1e0   : > { %4126 = vmatpush1.bf16.msra.mxu0 %v4125_v4  ;;  %v1040_v4 = vld [vmem:[%s5917_s27 + $0x410] sm:$0xff]  ;;  %4023 = vmatprep.subr.mxu1 %v5332_v37 }
 0x1e1   : > { %4192 = vmatprep.subr.bf16.mxu0 %v4191_v5  ;;  %v1047_v5 = vld [vmem:[%s5917_s27 + $0x448] sm:$0xff]  ;;  %v4233_v7 = vpack.c.bf16 %v1040_v4, %v1034_v3 }
 0x1e2   : > { %1270 = vmatmul.mubr.f32.vlgmr.msra.gmra.mrb[0].mxu1 %v6132_v10  ;;  %v4235_v8 = vpack.c.bf16 %v1053_v6, %v1047_v5 }
 0x1e3   : > { %1199 = vmatmul.mubr.f32.vlgmr.msra.gmra.mrb[0].mxu0 %v6132_v10  ;;  %4025 = vmatprep.mubr.msk.f32.mxu1 %vm5333_vm0, %v5332_v37 }
 0x1e4   : > { %4194 = vmatpush1.bf16.msra.mxu0 %v4193_v11  ;;  %1340 = vmatprep.mubr.f32.mxu0 %v6091_v18  ;;  %v969_v18 = vld [vmem:[%s5917_s27 + $0x1d8] sm:$0xff]  ;;  %v1052_v11 = vld [vmem:[%s5917_s27 + $0x470] sm:$0xff] }
 0x1e5   : > { %4196 = vmatprep.subr.bf16.mxu0 %v4195_v12  ;;  %v4207_v30 = vpack.c.bf16 %v969_v18, %v963_v28  ;;  %v1059_v12 = vld [vmem:[%s5917_s27 + $0x4a8] sm:$0xff]  ;;  %v4237_v14 = vpack.c.bf16 %v1052_v11, %v1046_v9  ;;  %v1082_v18 = vld [vmem:[%s5917_s27 + $0x560] sm:$0xff] }
 0x1e6   : > { %v4239_v15 = vpack.c.bf16 %v1065_v13, %v1059_v12 }
 0x1e8   : > { %4198 = vmatpush1.bf16.msra.mxu0 %v4197_v17  ;;  %v1064_v17 = vld [vmem:[%s5917_s27 + $0x4d0] sm:$0xff] }
 0x1e9   : > { %4200 = vmatprep.subr.bf16.mxu0 %v4199_v19  ;;  %v1071_v19 = vld [vmem:[%s5917_s27 + $0x508] sm:$0xff]  ;;  %v4241_v21 = vpack.c.bf16 %v1064_v17, %v1058_v16 }
 0x1ea   : > { %v4243_v22 = vpack.c.bf16 %v1077_v20, %v1071_v19 }
 0x1ec   : > { %4202 = vmatpush1.bf16.msra.mxu0 %v4201_v24  ;;  %v1076_v24 = vld [vmem:[%s5917_s27 + $0x530] sm:$0xff] }
 0x1ed   : > { %4204 = vmatprep.subr.bf16.mxu0 %v4203_v25  ;;  %v1083_v25 = vld [vmem:[%s5917_s27 + $0x568] sm:$0xff]  ;;  %v4245_v27 = vpack.c.bf16 %v1076_v24, %v1070_v23 }
 0x1ee   : > { %v4247_v28 = vpack.c.bf16 %v1089_v26, %v1083_v25 }
 0x1f0   : > { %4206 = vmatpush1.bf16.msra.mxu0 %v4205_v29  ;;  %v1088_v29 = vld [vmem:[%s5917_s27 + $0x590] sm:$0xff] }
 0x1f1   : > { %4208 = vmatprep.subr.bf16.mxu0 %v4207_v30  ;;  %v1095_v30 = vld [vmem:[%s5917_s27 + $0x5c8] sm:$0xff]  ;;  %v4249_v32 = vpack.c.bf16 %v1088_v29, %v1082_v18 }
 0x1f2   : > { %v4251_v33 = vpack.c.bf16 %v1101_v31, %v1095_v30 }
 0x1f4   : > { %4210 = vmatpush1.bf16.msra.mxu0 %v4209_v35  ;;  %v1100_v35 = vld [vmem:[%s5917_s27 + $0x5f0] sm:$0xff]  ;;  %s5335_s27 = smov 64  }
 0x1f5   : > { %4212 = vmatprep.subr.bf16.mxu0 %v4211_v36  ;;  %v4253_v36 = vpack.c.bf16 %v1100_v35, %v1094_v34 }
 0x1f8   : > { %4214 = vmatpush1.bf16.msra.mxu0 %v4213_v41  ;;  %v1102_v41 = vld [vmem:[%s5928_s19] sm:$0x3f]  ;;  %s5336_s19 = smov 32  }
 0x1f9   : > { %4216 = vmatprep.subr.bf16.mxu0 %v4215_v42  ;;  %v6208_v42 = vsub.s32 0, %v6202_v39  ;;  %v1115_v44 = vrot.slane %v1102_v41, %v1114_v40  ;;  %v1123_v58 = vrot.slane %v1102_v41, %v1122_v56 }
 0x1fb   : > { %v1107_v46 = vrot.slane %v1102_v41, %v6208_v42 }
 0x1fc   : > { %4218 = vmatpush1.bf16.msra.mxu0 %v4217_v47  ;;  %v1111_v47 = vrot.slane %v1102_v41, %v6211_v43 }
 0x1fd   : > { %4220 = vmatprep.subr.bf16.mxu0 %v4219_v48 }
 0x200   : > { %4222 = vmatpush1.bf16.msra.mxu0 %v4221_v53 }
 0x201   : > { %4224 = vmatprep.subr.bf16.mxu0 %v4223_v54 }
 0x204   : > { %4226 = vmatpush1.bf16.msra.mxu0 %v4225_v59  ;;  %v1127_v59 = vrot.slane %v1102_v41, %v1126_v57 }
 0x205   : > { %4228 = vmatprep.subr.bf16.mxu0 %v4227_v60 }
 0x208   : > { %4230 = vmatpush1.bf16.msra.mxu0 %v4229_v1 }
 0x209   : > { %4232 = vmatprep.subr.bf16.mxu0 %v4231_v2 }
 0x20c   : > { %4234 = vmatpush1.bf16.msra.mxu0 %v4233_v7 }
 0x20d   : > { %4236 = vmatprep.subr.bf16.mxu0 %v4235_v8 }
 0x210   : > { %4238 = vmatpush1.bf16.msra.mxu0 %v4237_v14 }
 0x211   : > { %4240 = vmatprep.subr.bf16.mxu0 %v4239_v15 }
 0x214   : > { %4242 = vmatpush1.bf16.msra.mxu0 %v4241_v21 }
 0x215   : > { %4244 = vmatprep.subr.bf16.mxu0 %v4243_v22 }
 0x218   : > { %4246 = vmatpush1.bf16.msra.mxu0 %v4245_v27 }
 0x219   : > { %4248 = vmatprep.subr.bf16.mxu0 %v4247_v28 }
 0x21c   : > { %4250 = vmatpush1.bf16.msra.mxu0 %v4249_v32 }
 0x21d   : > { %4252 = vmatprep.subr.bf16.mxu0 %v4251_v33 }
 0x220   : > { %4254 = vmatpush1.bf16.msra.mxu0 %v4253_v36 }
 0x221   : > { %3983 = vmatprep.subr.mxu0 %v5332_v37 }
 0x223   : > { %1341 = vmatmul.mubr.f32.vlgmr.msra.gmra.mrb[2].mxu0 %v6132_v10  ;;  %v1118_v10 = vsub.s32 3, %v6202_v39 }
 0x224   : > { %3985 = vmatprep.mubr.msk.f32.mxu0 %vm5333_vm0, %v5332_v37 }
 0x225   : > { %v1119_v45 = vrot.slane %v1102_v41, %v1118_v10 }
 0x2b5   : > { %v1271_v48 = vpop.f32.mrb[0].mxu1 }
 0x2b6   : > { %v6219_v49 = vadd.f32 %v1271_v48, %v1115_v44  ;;  %v1273_v50 = vpop.f32.mrb[1].mxu1  ;;  %v1200_v51 = vpop.f32.mrb[0].mxu0 }
 0x2b7   : > { %v6221_v52 = vadd.f32 %v1273_v50, %v1119_v45  ;;  %v6223_v53 = vadd.f32 %v1200_v51, %v1107_v46  ;;  %v1202_v54 = vpop.f32.mrb[1].mxu0 }
 0x2b8   : > { %1511 = vrot.lane.b32.xlu1 %v6219_v49, %s5334_s30  ;;  %3984 = vmatpush3.xpose.msk.msra.mxu0 %vm1347_vm1, %v6219_v49  ;;  %v6229_v55 = vadd.f32 %v1202_v54, %v1111_v47 }
 0x2b9   : > { %4024 = vmatpush3.xpose.msk.msra.mxu1 %vm1347_vm1, %v6221_v52  ;;  %3988 = vmatprep.subr.mxu0 %v5332_v37 }
 0x2ba   : > { %4028 = vmatprep.subr.mxu1 %v5332_v37 }
 0x2bb   : > { %3986 = vmatmul.mubr.msk.f32.vlgmr.msra.gmra.mrb[4].mxu0 %vm1347_vm1, %v6223_v53 }
 0x2bc   : > { %2165 = vrot.lane.b32.xlu1 %v6229_v55, %s5334_s30  ;;  %4026 = vmatmul.mubr.msk.f32.vlgmr.msra.gmra.mrb[2].mxu1 %vm1347_vm1, %v6229_v55 }
 0x2bd   : > { %3990 = vmatprep.mubr.msk.f32.mxu0 %vm5333_vm0, %v5332_v37  ;;  %4030 = vmatprep.mubr.msk.f32.mxu1 %vm5333_vm0, %v5332_v37 }
 0x2f6   : > { %v1342_v60 = vpop.f32.mrb[2].mxu0 }
 0x2f7   : > { %v6247_v61 = vadd.f32 %v1342_v60, %v1123_v58  ;;  %v1344_v62 = vpop.f32.mrb[3].mxu0 }
 0x2f8   : > { %v6249_v63 = vadd.f32 %v1344_v62, %v1127_v59 }
 0x2f9   : > { %3989 = vmatpush3.msra.mxu0 %v6247_v61 }
 0x2fa   : > { %4029 = vmatpush3.msra.mxu1 %v6249_v63  ;;  %3993 = vmatprep.subr.mxu0 %v5332_v37 }
 0x2fb   : > { %4033 = vmatprep.subr.mxu1 %v5332_v37 }
 0x32a   : > { %v1512_v17 = vpop.permute.xlu1 %1511 }
 0x32e   : > { %v2166_v19 = vpop.permute.xlu1 %2165 }
 0x38e   : > { %v1420_v0 = vpop.f32.mrb[4].mxu0 }
 0x38f   : > { %v3987_v1 = vpop.f32.mrb[5].mxu0  ;;  %v2077_v2 = vpop.f32.mrb[2].mxu1  ;;  %v1425_v5 = vsel %vm1424_vm2, %v1420_v0, -inf }
 0x390   : > { %v4027_v3 = vpop.f32.mrb[3].mxu1  ;;  %v2081_v4 = vsel %vm1424_vm2, %v2077_v2, -inf }
 0x391   : > { %2082 = vmax.xlane.f32.xlu0 %v2081_v4 }
 0x395   : > { %1426 = vmax.xlane.f32.xlu0 %v1425_v5 }
 0x3ab   : > { %2167 = vrot.lane.b32.xlu0 %v6221_v52, %s5334_s30 }
 0x41e   : > { %v2083_v6 = vpop.xlane.xlu0 %2082 }
 0x41f   : > { %v2084_v7 = vsub.f32 %v2077_v2, %v2083_v6 }
 0x421   : > { %v2085_v11 = vmul.f32 1.442695, %v2084_v7 }
 0x422   : > { %v1427_v8 = vpop.xlane.xlu0 %1426 }
 0x423   : > { %v1428_v9 = vsub.f32 %v1420_v0, %v1427_v8 }
 0x425   : > { %v1429_v12 = vmul.f32 1.442695, %v1428_v9 }
 0x426   : > { %v2168_v27 = vpop.permute.xlu0 %2167 }
 0x427   : > { %4768 = vpow2.f32 %v1429_v12 }
 0x428   : > { %4770 = vpow2.f32 %v2085_v11 }
 0x431   : > { %v4769_v13 = vpop.eup %4768 }
 0x432   : > { %v1431_v14 = vsel %vm1424_vm2, %v4769_v13, 0.0  ;;  %v4771_v15 = vpop.eup %4770 }
 0x433   : > { %1432 = vadd.xlane.f32.xlu1 %v1431_v14  ;;  %v2087_v16 = vsel %vm1424_vm2, %v4771_v15, 0.0 }
 0x437   : > { %2088 = vadd.xlane.f32.xlu1 %v2087_v16 }
 0x448   : > { %1509 = vrot.lane.b32.xlu1 %v6223_v53, %s5334_s30 }
 0x4c0   : > { %v1433_v20 = vpop.xlane.xlu1 %1432 }
 0x4c1   : > { %4772 = vrcp.f32 %v1433_v20 }
 0x4c4   : > { %v2089_v21 = vpop.xlane.xlu1 %2088 }
 0x4c5   : > { %4774 = vrcp.f32 %v2089_v21 }
 0x4c8   : > { %v1510_v26 = vpop.permute.xlu1 %1509 }
 0x4cb   : > { %v4773_v22 = vpop.eup %4772 }
 0x4cc   : > { %v1435_v23 = vmul.f32 %v4773_v22, %v4769_v13 }
 0x4ce   : > { %3991 = vmatmul.mubr.msk.f32.vlgmr.msra.gmra.mrb[6].mxu0 %vm1424_vm2, %v1435_v23 }
 0x4cf   : > { %v4775_v24 = vpop.eup %4774  ;;  %3994 = vmatpush3.xpose.msk.msra.mxu0 %vm1347_vm1, %v1512_v17  ;;  %3995 = vmatprep.mubr.msk.f32.mxu0 %vm5333_vm0, %v5332_v37 }
 0x4d0   : > { %v2091_v25 = vmul.f32 %v4775_v24, %v4771_v15  ;;  %3998 = vmatprep.subr.mxu0 %v5332_v37 }
 0x4d2   : > { %3996 = vmatmul.mubr.msk.f32.vlgmr.msra.gmra.mrb[8].mxu0 %vm1347_vm1, %v1510_v26  ;;  %4031 = vmatmul.mubr.msk.f32.vlgmr.msra.gmra.mrb[4].mxu1 %vm1424_vm2, %v2091_v25 }
 0x4d3   : > { %4034 = vmatpush3.xpose.msk.msra.mxu1 %vm1347_vm1, %v2168_v27  ;;  %4035 = vmatprep.mubr.msk.f32.mxu1 %vm5333_vm0, %v5332_v37 }
 0x4d4   : > { %4038 = vmatprep.subr.mxu1 %v5332_v37  ;;  %4000 = vmatprep.mubr.msk.f32.mxu0 %vm5333_vm0, %v5332_v37 }
 0x4d6   : > { %4036 = vmatmul.mubr.msk.f32.vlgmr.msra.gmra.mrb[6].mxu1 %vm1347_vm1, %v2166_v19 }
 0x4d7   : > { %4040 = vmatprep.mubr.msk.f32.mxu1 %vm5333_vm0, %v5332_v37 }
 0x5a1   : > { %v6279_v28 = vpop.f32.mrb[6].mxu0 }
 0x5a2   : > { %v3992_v18 = vpop.f32.mrb[7].mxu0 }
 0x5a5   : > { %v1583_v29 = vpop.f32.mrb[8].mxu0  ;;  %v6281_v30 = vpop.f32.mrb[4].mxu1 }
 0x5a6   : > { %v3997_v31 = vpop.f32.mrb[9].mxu0  ;;  %v4032_v32 = vpop.f32.mrb[5].mxu1  ;;  %v1587_v33 = vsel %vm1424_vm2, %v1583_v29, -inf }
 0x5a7   : > { %1588 = vmax.xlane.f32.xlu1 %v1587_v33 }
 0x5a9   : > { %v2239_v34 = vpop.f32.mrb[6].mxu1 }
 0x5aa   : > { %v4037_v35 = vpop.f32.mrb[7].mxu1  ;;  %v2243_v36 = vsel %vm1424_vm2, %v2239_v34, -inf }
 0x5ab   : > { %2244 = vmax.xlane.f32.xlu0 %v2243_v36 }
 0x5b8   : > { %1599 = vrot.lane.b32.xlu1 %v6247_v61, %s5334_s30 }
 0x5bc   : > { %2333 = vrot.lane.b32.xlu1 %v6221_v52, %s5335_s27 }
 0x5c0   : > { %1677 = vrot.lane.b32.xlu1 %v6219_v49, %s5335_s27 }
 0x5c1   : > { %2255 = vrot.lane.b32.xlu0 %v6249_v63, %s5334_s30 }
 0x5c4   : > { %1675 = vrot.lane.b32.xlu1 %v6223_v53, %s5335_s27 }
 0x634   : > { %v1589_v38 = vpop.xlane.xlu1 %1588 }
 0x635   : > { %v1590_v41 = vsub.f32 %v1583_v29, %v1589_v38 }
 0x637   : > { %v1591_v44 = vmul.f32 1.442695, %v1590_v41 }
 0x638   : > { %v2245_v45 = vpop.xlane.xlu0 %2244  ;;  %v1600_v46 = vpop.permute.xlu1 %1599 }
 0x639   : > { %4776 = vpow2.f32 %v1591_v44  ;;  %v2246_v47 = vsub.f32 %v2239_v34, %v2245_v45  ;;  %3999 = vmatpush3.msra.mxu0 %v1600_v46 }
 0x63a   : > { %4003 = vmatprep.subr.mxu0 %v5332_v37 }
 0x63b   : > { %v2247_v48 = vmul.f32 1.442695, %v2246_v47 }
 0x63c   : > { %v2256_v50 = vpop.permute.xlu0 %2255  ;;  %v2334_v60 = vpop.permute.xlu1 %2333 }
 0x63d   : > { %4778 = vpow2.f32 %v2247_v48  ;;  %4039 = vmatpush3.msra.mxu1 %v2256_v50 }
 0x63e   : > { %4043 = vmatprep.subr.mxu1 %v5332_v37 }
 0x640   : > { %v1678_v0 = vpop.permute.xlu1 %1677 }
 0x643   : > { %v4777_v51 = vpop.eup %4776 }
 0x644   : > { %v1593_v54 = vsel %vm1424_vm2, %v4777_v51, 0.0  ;;  %v1676_v4 = vpop.permute.xlu1 %1675 }
 0x645   : > { %1594 = vadd.xlane.f32.xlu0 %v1593_v54 }
 0x647   : > { %v4779_v56 = vpop.eup %4778 }
 0x648   : > { %v2249_v57 = vsel %vm1424_vm2, %v4779_v56, 0.0 }
 0x649   : > { %2250 = vadd.xlane.f32.xlu0 %v2249_v57 }
 0x65f   : > { %2331 = vrot.lane.b32.xlu0 %v6229_v55, %s5335_s27 }
 0x6d2   : > { %v1595_v58 = vpop.xlane.xlu0 %1594 }
 0x6d3   : > { %4780 = vrcp.f32 %v1595_v58 }
 0x6d6   : > { %v2251_v59 = vpop.xlane.xlu0 %2250 }
 0x6d7   : > { %4782 = vrcp.f32 %v2251_v59 }
 0x6da   : > { %v2332_v5 = vpop.permute.xlu0 %2331 }
 0x6dd   : > { %v4781_v62 = vpop.eup %4780 }
 0x6de   : > { %v1597_v1 = vmul.f32 %v4781_v62, %v4777_v51 }
 0x6e0   : > { %4001 = vmatmul.mubr.msk.f32.vlgmr.msra.gmra.mrb[10].mxu0 %vm1424_vm2, %v1597_v1 }
 0x6e1   : > { %v4783_v2 = vpop.eup %4782  ;;  %4004 = vmatpush3.xpose.msk.msra.mxu0 %vm1347_vm1, %v1678_v0  ;;  %4005 = vmatprep.mubr.msk.f32.mxu0 %vm5333_vm0, %v5332_v37 }
 0x6e2   : > { %v2253_v3 = vmul.f32 %v4783_v2, %v4779_v56  ;;  %4008 = vmatprep.subr.mxu0 %v5332_v37 }
 0x6e4   : > { %4006 = vmatmul.mubr.msk.f32.vlgmr.msra.gmra.mrb[12].mxu0 %vm1347_vm1, %v1676_v4  ;;  %4041 = vmatmul.mubr.msk.f32.vlgmr.msra.gmra.mrb[8].mxu1 %vm1424_vm2, %v2253_v3 }
 0x6e5   : > { %4044 = vmatpush3.xpose.msk.msra.mxu1 %vm1347_vm1, %v2334_v60  ;;  %4045 = vmatprep.mubr.msk.f32.mxu1 %vm5333_vm0, %v5332_v37 }
 0x6e6   : > { %4048 = vmatprep.subr.mxu1 %v5332_v37  ;;  %4010 = vmatprep.mubr.msk.f32.mxu0 %vm5333_vm0, %v5332_v37 }
 0x6e8   : > { %4046 = vmatmul.mubr.msk.f32.vlgmr.msra.gmra.mrb[10].mxu1 %vm1347_vm1, %v2332_v5 }
 0x6e9   : > { %4050 = vmatprep.mubr.msk.f32.mxu1 %vm5333_vm0, %v5332_v37 }
 0x7b3   : > { %v6317_v6 = vpop.f32.mrb[10].mxu0 }
 0x7b4   : > { %v4002_v7 = vpop.f32.mrb[11].mxu0 }
 0x7b7   : > { %v1749_v8 = vpop.f32.mrb[12].mxu0  ;;  %v6319_v9 = vpop.f32.mrb[8].mxu1 }
 0x7b8   : > { %v4753_v11 = vpack.i.bf16 %v6317_v6, %v6319_v9  ;;  %v4007_v12 = vpop.f32.mrb[13].mxu0  ;;  %v4042_v13 = vpop.f32.mrb[9].mxu1  ;;  %v1753_v14 = vsel %vm1424_vm2, %v1749_v8, -inf }
 0x7b9   : > { %1754 = vmax.xlane.f32.xlu1 %v1753_v14  ;;  %v2696_v13 = vld [vmem:[%s5938_s14 + $0x18] sm:$0xff]  ;;  %v2693_v14 = vld [vmem:[%s5938_s14] sm:$0xff] }
 0x7bb   : > { %v2405_v15 = vpop.f32.mrb[10].mxu1 }
 0x7bc   : > { %v4047_v16 = vpop.f32.mrb[11].mxu1  ;;  %v2409_v17 = vsel %vm1424_vm2, %v2405_v15, -inf }
 0x7bd   : > { %2410 = vmax.xlane.f32.xlu0 %v2409_v17  ;;  %v2695_v16 = vld [vmem:[%s5938_s14 + $0x10] sm:$0xff]  ;;  %v2698_v17 = vld [vmem:[%s5938_s14 + $0x28] sm:$0xff] }
 0x7ca   : > { %1764 = vrot.lane.b32.xlu1 %v6247_v61, %s5335_s27 }
 0x7ce   : > { %2498 = vrot.lane.b32.xlu1 %v6221_v52, %s5336_s19 }
 0x7d2   : > { %1842 = vrot.lane.b32.xlu1 %v6219_v49, %s5336_s19 }
 0x7d3   : > { %2420 = vrot.lane.b32.xlu0 %v6249_v63, %s5335_s27 }
 0x7d6   : > { %1840 = vrot.lane.b32.xlu1 %v6223_v53, %s5336_s19 }
 0x846   : > { %v1755_v19 = vpop.xlane.xlu1 %1754 }
 0x847   : > { %v1756_v20 = vsub.f32 %v1749_v8, %v1755_v19  ;;  %v2700_v19 = vld [vmem:[%s5938_s14 + $0x38] sm:$0xff] }
 0x849   : > { %v1757_v21 = vmul.f32 1.442695, %v1756_v20  ;;  %v4257_v20 = vpack.c.bf16 %v2695_v16, %v2693_v14  ;;  %v2734_v14 = vld [vmem:[%s5938_s14 + $0x148] sm:$0xff] }
 0x84a   : > { %v2411_v22 = vpop.xlane.xlu0 %2410  ;;  %v1765_v23 = vpop.permute.xlu1 %1764 }
 0x84b   : > { %4784 = vpow2.f32 %v1757_v21  ;;  %v2412_v24 = vsub.f32 %v2405_v15, %v2411_v22  ;;  %4009 = vmatpush3.msra.mxu0 %v1765_v23  ;;  %v4259_v21 = vpack.c.bf16 %v2700_v19, %v2698_v17  ;;  %v2697_v22 = vld [vmem:[%s5938_s14 + $0x20] sm:$0xff]  ;;  %v2699_v23 = vld [vmem:[%s5938_s14 + $0x30] sm:$0xff] }
 0x84c   : > { %4013 = vmatprep.subr.mxu0 %v5332_v37  ;;  %v2733_v19 = vld [vmem:[%s5938_s14 + $0x140] sm:$0xff] }
 0x84d   : > { %v2413_v52 = vmul.f32 1.442695, %v2412_v24  ;;  %v2702_v24 = vld [vmem:[%s5938_s14 + $0x48] sm:$0xff] }
 0x84e   : > { %v2421_v25 = vpop.permute.xlu0 %2420  ;;  %v2499_v31 = vpop.permute.xlu1 %2498 }
 0x84f   : > { %4786 = vpow2.f32 %v2413_v52  ;;  %4049 = vmatpush3.msra.mxu1 %v2421_v25  ;;  %v2704_v52 = vld [vmem:[%s5938_s14 + $0x58] sm:$0xff]  ;;  %v4261_v25 = vpack.c.bf16 %v2699_v23, %v2697_v22 }
 0x850   : > { %4053 = vmatprep.subr.mxu1 %v5332_v37  ;;  %v2740_v22 = vld [vmem:[%s5938_s14 + $0x178] sm:$0xff] }
 0x852   : > { %v1843_v33 = vpop.permute.xlu1 %1842 }
 0x855   : > { %v4785_v49 = vpop.eup %4784 }
 0x856   : > { %v1759_v26 = vsel %vm1424_vm2, %v4785_v49, 0.0 }
 0x857   : > { %1760 = vadd.xlane.f32.xlu0 %v1759_v26  ;;  %v2701_v26 = vld [vmem:[%s5938_s14 + $0x40] sm:$0xff] }
 0x859   : > { %v4787_v53 = vpop.eup %4786 }
 0x85a   : > { %v2415_v27 = vsel %vm1424_vm2, %v4787_v53, 0.0 }
 0x85b   : > { %2416 = vadd.xlane.f32.xlu0 %v2415_v27  ;;  %v2706_v27 = vld [vmem:[%s5938_s14 + $0x68] sm:$0xff] }
 0x871   : > { %2496 = vrot.lane.b32.xlu0 %v6229_v55, %s5336_s19  ;;  %v1841_v55 = vpop.permute.xlu1 %1840 }
 0x8e4   : > { %v1761_v18 = vpop.xlane.xlu0 %1760 }
 0x8e5   : > { %4788 = vrcp.f32 %v1761_v18  ;;  %v2708_v18 = vld [vmem:[%s5938_s14 + $0x78] sm:$0xff] }
 0x8e8   : > { %v2417_v29 = vpop.xlane.xlu0 %2416 }
 0x8e9   : > { %4790 = vrcp.f32 %v2417_v29 }
 0x8ec   : > { %v2497_v38 = vpop.permute.xlu0 %2496 }
 0x8ef   : > { %v4789_v32 = vpop.eup %4788 }
 0x8f0   : > { %v1763_v34 = vmul.f32 %v4789_v32, %v4785_v49  ;;  %v4263_v49 = vpack.c.bf16 %v2704_v52, %v2702_v24  ;;  %v2705_v32 = vld [vmem:[%s5938_s14 + $0x60] sm:$0xff] }
 0x8f1   : > { %v2737_v52 = vld [vmem:[%s5938_s14 + $0x160] sm:$0xff] }
 0x8f2   : > { %4011 = vmatmul.mubr.msk.f32.vlgmr.msra.gmra.mrb[14].mxu0 %vm1424_vm2, %v1763_v34  ;;  %v2710_v34 = vld [vmem:[%s5938_s14 + $0x88] sm:$0xff] }
 0x8f3   : > { %v4791_v35 = vpop.eup %4790  ;;  %4014 = vmatpush3.xpose.msk.msra.mxu0 %vm1347_vm1, %v1843_v33  ;;  %4015 = vmatprep.mubr.msk.f32.mxu0 %vm5333_vm0, %v5332_v37  ;;  %v2707_v33 = vld [vmem:[%s5938_s14 + $0x70] sm:$0xff] }
 0x8f4   : > { %v2419_v36 = vmul.f32 %v4791_v35, %v4787_v53  ;;  %4018 = vmatprep.subr.mxu0 %v5332_v37  ;;  %v2703_v53 = vld [vmem:[%s5938_s14 + $0x50] sm:$0xff]  ;;  %v2712_v35 = vld [vmem:[%s5938_s14 + $0x98] sm:$0xff] }
 0x8f5   : > { %v4265_v29 = vpack.c.bf16 %v2703_v53, %v2701_v26  ;;  %v2744_v26 = vld [vmem:[%s5938_s14 + $0x198] sm:$0xff] }
 0x8f6   : > { %4016 = vmatmul.mubr.msk.f32.vlgmr.msra.gmra.mrb[16].mxu0 %vm1347_vm1, %v1841_v55  ;;  %4051 = vmatmul.mubr.msk.f32.vlgmr.msra.gmra.mrb[12].mxu1 %vm1424_vm2, %v2419_v36  ;;  %v4269_v36 = vpack.c.bf16 %v2707_v33, %v2705_v32  ;;  %v4271_v55 = vpack.c.bf16 %v2712_v35, %v2710_v34  ;;  %v2748_v32 = vld [vmem:[%s5938_s14 + $0x1b8] sm:$0xff]  ;;  %v2745_v35 = vld [vmem:[%s5938_s14 + $0x1a0] sm:$0xff] }
 0x8f7   : > { %4054 = vmatpush3.xpose.msk.msra.mxu1 %vm1347_vm1, %v2499_v31  ;;  %4055 = vmatprep.mubr.msk.f32.mxu1 %vm5333_vm0, %v5332_v37  ;;  %v4267_v31 = vpack.c.bf16 %v2708_v18, %v2706_v27  ;;  %v2741_v18 = vld [vmem:[%s5938_s14 + $0x180] sm:$0xff] }
 0x8f8   : > { %4058 = vmatprep.subr.mxu1 %v5332_v37  ;;  %4020 = vmatprep.mubr.msk.f32.mxu0 %vm5333_vm0, %v5332_v37 }
 0x8fa   : > { %4056 = vmatmul.mubr.msk.f32.vlgmr.msra.gmra.mrb[14].mxu1 %vm1347_vm1, %v2497_v38  ;;  %v2709_v38 = vld [vmem:[%s5938_s14 + $0x80] sm:$0xff] }
 0x8fb   : > { %4060 = vmatprep.mubr.msk.f32.mxu1 %vm5333_vm0, %v5332_v37 }
 0x9c5   : > { %v1836_v41 = vpop.f32.mrb[14].mxu0 }
 0x9c6   : > { %v4012_v44 = vpop.f32.mrb[15].mxu0 }
 0x9c7   : > { %v2714_v44 = vld [vmem:[%s5938_s14 + $0xa8] sm:$0xff] }
 0x9c9   : > { %v1914_v45 = vpop.f32.mrb[16].mxu0  ;;  %v2492_v46 = vpop.f32.mrb[12].mxu1 }
 0x9ca   : > { %v4758_v47 = vpack.i.bf16 %v1836_v41, %v2492_v46  ;;  %v4017_v48 = vpop.f32.mrb[17].mxu0  ;;  %v4052_v50 = vpop.f32.mrb[13].mxu1  ;;  %v1918_v51 = vsel %vm1424_vm2, %v1914_v45, -inf  ;;  %v2711_v41 = vld [vmem:[%s5938_s14 + $0x90] sm:$0xff] }
 0x9cb   : > { %1919 = vmax.xlane.f32.xlu1 %v1918_v51  ;;  %v4273_v46 = vpack.c.bf16 %v2711_v41, %v2709_v38  ;;  %v2713_v48 = vld [vmem:[%s5938_s14 + $0xa0] sm:$0xff]  ;;  %v2715_v50 = vld [vmem:[%s5938_s14 + $0xb0] sm:$0xff]  ;;  %v2718_v51 = vld [vmem:[%s5938_s14 + $0xc8] sm:$0xff] }
 0x9cc   : > { %v2752_v38 = vld [vmem:[%s5938_s14 + $0x1d8] sm:$0xff] }
 0x9cd   : > { %v2570_v54 = vpop.f32.mrb[14].mxu1 }
 0x9ce   : > { %v4057_v56 = vpop.f32.mrb[15].mxu1  ;;  %v2574_v57 = vsel %vm1424_vm2, %v2570_v54, -inf }
 0x9cf   : > { %2575 = vmax.xlane.f32.xlu0 %v2574_v57  ;;  %v4277_v56 = vpack.c.bf16 %v2715_v50, %v2713_v48  ;;  %v2754_v48 = vld [vmem:[%s5938_s14 + $0x1e8] sm:$0xff]  ;;  %v2756_v50 = vld [vmem:[%s5938_s14 + $0x1f8] sm:$0xff] }
 0x9dc   : > { %1929 = vrot.lane.b32.xlu1 %v6247_v61, %s5336_s19 }
 0x9e0   : > { %4754 = vrot.lane.b32.xlu1 %v4753_v11, %s5336_s19 }
 0x9e4   : > { %4759 = vrot.lane.b32.xlu1 %v4758_v47, %s5335_s27  ;;  %s3514_s27 = scalar_lea.sflag [#allocation4], %s892_s28 }
 0xa58   : > { %v1920_v37 = vpop.xlane.xlu1 %1919 }
 0xa59   : > { %v1921_v58 = vsub.f32 %v1914_v45, %v1920_v37  ;;  %v2716_v45 = vld [vmem:[%s5938_s14 + $0xb8] sm:$0xff]  ;;  %v2717_v37 = vld [vmem:[%s5938_s14 + $0xc0] sm:$0xff] }
 0xa5a   : > { %v4275_v47 = vpack.c.bf16 %v2716_v45, %v2714_v44  ;;  %v2749_v45 = vld [vmem:[%s5938_s14 + $0x1c0] sm:$0xff] }
 0xa5b   : > { %v1922_v59 = vmul.f32 1.442695, %v1921_v58  ;;  %v2719_v58 = vld [vmem:[%s5938_s14 + $0xd0] sm:$0xff] }
 0xa5c   : > { %v2576_v60 = vpop.xlane.xlu0 %2575  ;;  %v1930_v62 = vpop.permute.xlu1 %1929 }
 0xa5d   : > { %4792 = vpow2.f32 %v1922_v59  ;;  %v2577_v0 = vsub.f32 %v2570_v54, %v2576_v60  ;;  %4019 = vmatpush3.msra.mxu0 %v1930_v62  ;;  %v2720_v54 = vld [vmem:[%s5938_s14 + $0xd8] sm:$0xff]  ;;  %v2722_v59 = vld [vmem:[%s5938_s14 + $0xe8] sm:$0xff]  ;;  %v4281_v62 = vpack.c.bf16 %v2719_v58, %v2717_v37 }
 0xa5e   : > { %v4279_v57 = vpack.c.bf16 %v2720_v54, %v2718_v51  ;;  %v2724_v60 = vld [vmem:[%s5938_s14 + $0xf8] sm:$0xff]  ;;  %v4315_v51 = vpack.c.bf16 %v2756_v50, %v2754_v48  ;;  %v2753_v54 = vld [vmem:[%s5938_s14 + $0x1e0] sm:$0xff] }
 0xa5f   : > { %v2578_v1 = vmul.f32 1.442695, %v2577_v0  ;;  %v4283_v0 = vpack.c.bf16 %v2724_v60, %v2722_v59  ;;  %v2901_v50 = vld [vmem:[%s5955_s15 + $0x70] sm:$0xff] }
 0xa61   : > { %4794 = vpow2.f32 %v2578_v1  ;;  %v2721_v1 = vld [vmem:[%s5938_s14 + $0xe0] sm:$0xff] }
 0xa67   : > { %v4793_v2 = vpop.eup %4792 }
 0xa68   : > { %v1924_v61 = vsel %vm1424_vm2, %v4793_v2, 0.0 }
 0xa69   : > { %1925 = vadd.xlane.f32.xlu0 %v1924_v61  ;;  %v2726_v61 = vld [vmem:[%s5938_s14 + $0x108] sm:$0xff] }
 0xa6b   : > { %v4795_v3 = vpop.eup %4794 }
 0xa6c   : > { %v2580_v4 = vsel %vm1424_vm2, %v4795_v3, 0.0 }
 0xa6d   : > { %2581 = vadd.xlane.f32.xlu0 %v2580_v4 }
 0xa83   : > { %2585 = vrot.lane.b32.xlu0 %v6249_v63, %s5336_s19  ;;  %v2694_v63 = vld [vmem:[%s5938_s14 + $0x8] sm:$0xff]  ;;  %s5166_s19 = scalar_lea.vmem %s6774_s21, 256 }
 0xa84   : > { %v4255_v15 = vpack.c.bf16 %v2696_v13, %v2694_v63  ;;  %v2729_v63 = vld [vmem:[%s5938_s14 + $0x120] sm:$0xff]  ;;  %v2731_v13 = vld [vmem:[%s5938_s14 + $0x130] sm:$0xff]  ;;  %p5167_p4 = scmp.ne.s32.totalorder %s6774_s21, %s5166_s19 }
 0xa85   : > { %v4293_v16 = vpack.c.bf16 %v2731_v13, %v2729_v63 }
 0xa86   : > { %4256 = vmatprep.subr.bf16.mxu0 %v4255_v15  ;;  %v2736_v15 = vld [vmem:[%s5938_s14 + $0x158] sm:$0xff]  ;;  %p5168_p0 = pnand %p5167_p4, %p6947_p7 }
 0xa87   : > { %v4295_v17 = vpack.c.bf16 %v2736_v15, %v2734_v14 }
 0xa88   : > { %p5169_p6 = pneg %p5168_p0 }
 0xaf6   : > { %v1926_v5 = vpop.xlane.xlu0 %1925 }
 0xaf7   : > { %4796 = vrcp.f32 %v1926_v5 }
 0xafa   : > { %v2582_v6 = vpop.xlane.xlu0 %2581 }
 0xafb   : > { %4798 = vrcp.f32 %v2582_v6  ;;  %v2725_v6 = vld [vmem:[%s5938_s14 + $0x100] sm:$0xff] }
 0xafe   : > { %v2586_v7 = vpop.permute.xlu0 %2585 }
 0xaff   : > { %4059 = vmatpush3.msra.mxu1 %v2586_v7  ;;  %v2727_v7 = vld [vmem:[%s5938_s14 + $0x110] sm:$0xff] }
 0xb01   : > { %v4797_v8 = vpop.eup %4796 }
 0xb02   : > { %v1928_v9 = vmul.f32 %v4797_v8, %v4793_v2  ;;  %v2723_v2 = vld [vmem:[%s5938_s14 + $0xf0] sm:$0xff]  ;;  %v2730_v8 = vld [vmem:[%s5938_s14 + $0x128] sm:$0xff] }
 0xb03   : > { %v4285_v4 = vpack.c.bf16 %v2723_v2, %v2721_v1 }
 0xb04   : > { %4021 = vmatmul.mubr.msk.f32.vlgmr.msra.gmra.mrb[18].mxu0 %vm1424_vm2, %v1928_v9  ;;  %v2732_v9 = vld [vmem:[%s5938_s14 + $0x138] sm:$0xff] }
 0xb05   : > { %v4799_v11 = vpop.eup %4798  ;;  %4258 = vmatpush1.bf16.msra.mxu0 %v4257_v20  ;;  %v2735_v20 = vld [vmem:[%s5938_s14 + $0x150] sm:$0xff] }
 0xb06   : > { %v2584_v12 = vmul.f32 %v4799_v11, %v4795_v3  ;;  %4260 = vmatprep.subr.bf16.mxu0 %v4259_v21  ;;  %v2728_v3 = vld [vmem:[%s5938_s14 + $0x118] sm:$0xff]  ;;  %v4289_v11 = vpack.c.bf16 %v2727_v7, %v2725_v6  ;;  %v2738_v21 = vld [vmem:[%s5938_s14 + $0x168] sm:$0xff]  ;;  %v4297_v23 = vpack.c.bf16 %v2735_v20, %v2733_v19  ;;  %v4804_v20 = vld [vmem:[%s5987_s2] sm:$0xff] }
 0xb07   : > { %v4287_v5 = vpack.c.bf16 %v2728_v3, %v2726_v61  ;;  %v4299_v24 = vpack.c.bf16 %v2740_v22, %v2738_v21  ;;  %v4805_v22 = vld [vmem:[%s5987_s2 + $0x8] sm:$0xff] }
 0xb08   : > { %4061 = vmatmul.mubr.msk.f32.vlgmr.msra.gmra.mrb[16].mxu1 %vm1424_vm2, %v2584_v12  ;;  %v4291_v12 = vpack.c.bf16 %v2732_v9, %v2730_v8 }
 0xb09   : > { %4262 = vmatpush1.bf16.msra.mxu0 %v4261_v25  ;;  %v2739_v25 = vld [vmem:[%s5938_s14 + $0x170] sm:$0xff] }
 0xb0a   : > { %4264 = vmatprep.subr.bf16.mxu0 %v4263_v49  ;;  %v2742_v49 = vld [vmem:[%s5938_s14 + $0x188] sm:$0xff]  ;;  %v4301_v53 = vpack.c.bf16 %v2739_v25, %v2737_v52  ;;  %v2888_v52 = vld [vmem:[%s5955_s15 + $0x8] sm:$0xff] }
 0xb0b   : > { %v4303_v27 = vpack.c.bf16 %v2744_v26, %v2742_v49  ;;  %v2892_v25 = vld [vmem:[%s5955_s15 + $0x28] sm:$0xff]  ;;  %v2890_v49 = vld [vmem:[%s5955_s15 + $0x18] sm:$0xff] }
 0xb0c   : > { %v4319_v26 = vpack.c.bf16 %v2892_v25, %v2888_v52  ;;  %v2925_v52 = vld [vmem:[%s5955_s15 + $0x130] sm:$0xff]  ;;  %v2928_v25 = vld [vmem:[%s5955_s15 + $0x148] sm:$0xff] }
 0xb0d   : > { %4266 = vmatpush1.bf16.msra.mxu0 %v4265_v29  ;;  %v2743_v29 = vld [vmem:[%s5938_s14 + $0x190] sm:$0xff] }
 0xb0e   : > { %4268 = vmatprep.subr.bf16.mxu0 %v4267_v31  ;;  %v2746_v31 = vld [vmem:[%s5938_s14 + $0x1a8] sm:$0xff]  ;;  %v4305_v33 = vpack.c.bf16 %v2743_v29, %v2741_v18  ;;  %4320 = vmatprep.subr.bf16.mxu1 %v4319_v26 }
 0xb0f   : > { %v4307_v34 = vpack.c.bf16 %v2748_v32, %v2746_v31  ;;  %v2891_v18 = vld [vmem:[%s5955_s15 + $0x20] sm:$0xff]  ;;  %v2889_v32 = vld [vmem:[%s5955_s15 + $0x10] sm:$0xff]  ;;  %v2930_v26 = vld [vmem:[%s5955_s15 + $0x158] sm:$0xff] }
 0xb11   : > { %4270 = vmatpush1.bf16.msra.mxu0 %v4269_v36  ;;  %v2747_v36 = vld [vmem:[%s5938_s14 + $0x1b0] sm:$0xff] }
 0xb12   : > { %4272 = vmatprep.subr.bf16.mxu0 %v4271_v55  ;;  %v2750_v55 = vld [vmem:[%s5938_s14 + $0x1c8] sm:$0xff]  ;;  %v4309_v41 = vpack.c.bf16 %v2747_v36, %v2745_v35  ;;  %v2900_v36 = vld [vmem:[%s5955_s15 + $0x68] sm:$0xff] }
 0xb13   : > { %v4311_v44 = vpack.c.bf16 %v2752_v38, %v2750_v55  ;;  %v2898_v55 = vld [vmem:[%s5955_s15 + $0x58] sm:$0xff] }
 0xb14   : > { %v2902_v38 = vld [vmem:[%s5955_s15 + $0x78] sm:$0xff] }
 0xb15   : > { %4274 = vmatpush1.bf16.msra.mxu0 %v4273_v46  ;;  %v2751_v46 = vld [vmem:[%s5938_s14 + $0x1d0] sm:$0xff] }
 0xb16   : > { %4276 = vmatprep.subr.bf16.mxu0 %v4275_v47  ;;  %v4313_v47 = vpack.c.bf16 %v2751_v46, %v2749_v45  ;;  %v2895_v45 = vld [vmem:[%s5955_s15 + $0x40] sm:$0xff] }
 0xb17   : > { %v2899_v46 = vld [vmem:[%s5955_s15 + $0x60] sm:$0xff] }
 0xb18   : > { %v4325_v48 = vpack.c.bf16 %v2899_v46, %v2895_v45 }
 0xb19   : > { %4278 = vmatpush1.bf16.msra.mxu0 %v4277_v56  ;;  %v2755_v56 = vld [vmem:[%s5938_s14 + $0x1f0] sm:$0xff]  ;;  %s6936_s14 = scalar_lea.vmem [#allocation8], %s5936_s6 }
 0xb1a   : > { %4280 = vmatprep.subr.bf16.mxu0 %v4279_v57  ;;  %v4317_v57 = vpack.c.bf16 %v2755_v56, %v2753_v54  ;;  %v2757_v14 = vld [vmem:[%s6936_s14] sm:$0x3]  ;;  %v2908_v54 = vld [vmem:[%s5955_s15 + $0xa8] sm:$0xff]  ;;  %s5337_s14 = smov [#allocation22]  }
 0xb1b   : > { %v2766_v15 = vrot.slane %v2757_v14, %v6211_v43 }
 0xb1d   : > { %4282 = vmatpush1.bf16.msra.mxu0 %v4281_v62 }
 0xb1e   : > { %4284 = vmatprep.subr.bf16.mxu0 %v4283_v0  ;;  %v4755_v0 = vpop.permute.xlu1 %4754 }
 0xb1f   : > { %v4757_v2 = vunpack.i.h.bf16 %v4755_v0  ;;  %v4756_v61 = vunpack.i.l.bf16 %v4755_v0  ;;  %v2905_v0 = vld [vmem:[%s5955_s15 + $0x90] sm:$0xff] }
 0xb21   : > { %4286 = vmatpush1.bf16.msra.mxu0 %v4285_v4  ;;  %v2685_v6 = vsel %vm1347_vm1, %v6279_v28, %v4757_v2  ;;  %v2690_v9 = vsel %vm1347_vm1, %v6281_v30, %v4756_v61  ;;  %v2762_v28 = vrot.slane %v2757_v14, %v6208_v42  ;;  %v2912_v61 = vld [vmem:[%s5955_s15 + $0xc8] sm:$0xff] }
 0xb22   : > { %4288 = vmatprep.subr.bf16.mxu0 %v4287_v5  ;;  %v4760_v1 = vpop.permute.xlu1 %4759  ;;  %v2924_v14 = vld [vmem:[%s5955_s15 + $0x128] sm:$0xff] }
 0xb23   : > { %v4762_v3 = vunpack.i.h.bf16 %v4760_v1  ;;  %v4761_v4 = vunpack.i.l.bf16 %v4760_v1  ;;  %v2909_v1 = vld [vmem:[%s5955_s15 + $0xb0] sm:$0xff] }
 0xb25   : > { %4290 = vmatpush1.bf16.msra.mxu0 %v4289_v11  ;;  %v2691_v11 = vsel %vm2686_vm3, %v2690_v9, %v4761_v4  ;;  %v2914_v4 = vld [vmem:[%s5955_s15 + $0xd8] sm:$0xff]  ;;  %v2915_v9 = vld [vmem:[%s5955_s15 + $0xe0] sm:$0xff] }
 0xb26   : > { %4292 = vmatprep.subr.bf16.mxu0 %v4291_v12  ;;  %v2687_v12 = vsel %vm2686_vm3, %v2685_v6, %v4762_v3  ;;  %v2916_v3 = vld [vmem:[%s5955_s15 + $0xe8] sm:$0xff] }
 0xb27   : > { %v4331_v6 = vpack.c.bf16 %v2916_v3, %v2912_v61  ;;  %v2949_v3 = vld [vmem:[%s5955_s15 + $0x1f0] sm:$0xff] }
 0xb29   : > { %4294 = vmatpush1.bf16.msra.mxu0 %v4293_v16 }
 0xb2a   : > { %4296 = vmatprep.subr.bf16.mxu0 %v4295_v17 }
 0xb2d   : > { %4298 = vmatpush1.bf16.msra.mxu0 %v4297_v23 }
 0xb2e   : > { %4300 = vmatprep.subr.bf16.mxu0 %v4299_v24 }
 0xb31   : > { %4302 = vmatpush1.bf16.msra.mxu0 %v4301_v53  ;;  %v2894_v53 = vld [vmem:[%s5955_s15 + $0x38] sm:$0xff] }
 0xb32   : > { %4304 = vmatprep.subr.bf16.mxu0 %v4303_v27  ;;  %v2887_v27 = vld [vmem:[%s5955_s15] sm:$0xff]  ;;  %v4383_v29 = vpack.c.bf16 %v2894_v53, %v2890_v49  ;;  %v2932_v49 = vld [vmem:[%s5955_s15 + $0x168] sm:$0xff]  ;;  %v2934_v53 = vld [vmem:[%s5955_s15 + $0x178] sm:$0xff] }
 0xb33   : > { %v4321_v31 = vpack.c.bf16 %v2891_v18, %v2887_v27 }
 0xb35   : > { %4306 = vmatpush1.bf16.msra.mxu0 %v4305_v33  ;;  %v2893_v33 = vld [vmem:[%s5955_s15 + $0x30] sm:$0xff]  ;;  %4322 = vmatpush1.bf16.msra.mxu1 %v4321_v31  ;;  %v2927_v31 = vld [vmem:[%s5955_s15 + $0x140] sm:$0xff] }
 0xb36   : > { %4308 = vmatprep.subr.bf16.mxu0 %v4307_v34  ;;  %v2896_v34 = vld [vmem:[%s5955_s15 + $0x48] sm:$0xff]  ;;  %v4385_v35 = vpack.c.bf16 %v2893_v33, %v2889_v32  ;;  %v2931_v32 = vld [vmem:[%s5955_s15 + $0x160] sm:$0xff]  ;;  %v2929_v33 = vld [vmem:[%s5955_s15 + $0x150] sm:$0xff] }
 0xb39   : > { %4310 = vmatpush1.bf16.msra.mxu0 %v4309_v41  ;;  %v4323_v41 = vpack.c.bf16 %v2900_v36, %v2896_v34  ;;  %v4403_v34 = vpack.c.bf16 %v2934_v53, %v2930_v26  ;;  %v2936_v36 = vld [vmem:[%s5955_s15 + $0x188] sm:$0xff]  ;;  %v2965_v26 = vld [vmem:[%s5955_s15 + $0x270] sm:$0xff] }
 0xb3a   : > { %4312 = vmatprep.subr.bf16.mxu0 %v4311_v44  ;;  %v4387_v44 = vpack.c.bf16 %v2902_v38, %v2898_v55  ;;  %v2940_v55 = vld [vmem:[%s5955_s15 + $0x1a8] sm:$0xff]  ;;  %v2938_v38 = vld [vmem:[%s5955_s15 + $0x198] sm:$0xff] }
 0xb3b   : > { %4324 = vmatprep.subr.bf16.mxu1 %v4323_v41  ;;  %v2942_v41 = vld [vmem:[%s5955_s15 + $0x1b8] sm:$0xff]  ;;  %v4343_v46 = vpack.c.bf16 %v2940_v55, %v2936_v36  ;;  %v2968_v53 = vld [vmem:[%s5955_s15 + $0x288] sm:$0xff]  ;;  %v2969_v55 = vld [vmem:[%s5955_s15 + $0x290] sm:$0xff] }
 0xb3c   : > { %4326 = vmatpush1.bf16.msra.mxu1 %v4325_v48  ;;  %v2939_v48 = vld [vmem:[%s5955_s15 + $0x1a0] sm:$0xff] }
 0xb3d   : > { %4314 = vmatpush1.bf16.msra.mxu0 %v4313_v47  ;;  %v2897_v47 = vld [vmem:[%s5955_s15 + $0x50] sm:$0xff] }
 0xb3e   : > { %4316 = vmatprep.subr.bf16.mxu0 %v4315_v51  ;;  %v2904_v51 = vld [vmem:[%s5955_s15 + $0x88] sm:$0xff]  ;;  %v4389_v56 = vpack.c.bf16 %v2901_v50, %v2897_v47  ;;  %v2935_v47 = vld [vmem:[%s5955_s15 + $0x180] sm:$0xff]  ;;  %v2937_v50 = vld [vmem:[%s5955_s15 + $0x190] sm:$0xff] }
 0xb41   : > { %4318 = vmatpush1.bf16.msra.mxu0 %v4317_v57  ;;  %v4327_v57 = vpack.c.bf16 %v2908_v54, %v2904_v51  ;;  %v4407_v51 = vpack.c.bf16 %v2942_v41, %v2938_v38  ;;  %v2941_v54 = vld [vmem:[%s5955_s15 + $0x1b0] sm:$0xff] }
 0xb42   : > { %4384 = vmatprep.subr.bf16.mxu0 %v4383_v29  ;;  %v4339_v29 = vpack.c.bf16 %v2932_v49, %v2928_v25  ;;  %v2961_v25 = vld [vmem:[%s5955_s15 + $0x250] sm:$0xff] }
 0xb43   : > { %4328 = vmatprep.subr.bf16.mxu1 %v4327_v57  ;;  %v2948_v57 = vld [vmem:[%s5955_s15 + $0x1e8] sm:$0xff]  ;;  %v2973_v38 = vld [vmem:[%s5955_s15 + $0x2b0] sm:$0xff] }
 0xbd7   : > { %v2001_v37 = vpop.f32.mrb[18].mxu0 }
 0xbd8   : > { %v4022_v58 = vpop.f32.mrb[19].mxu0 }
 0xbd9   : > { %v2910_v58 = vld [vmem:[%s5955_s15 + $0xb8] sm:$0xff] }
 0xbdb   : > { %v2657_v59 = vpop.f32.mrb[16].mxu1 }
 0xbdc   : > { %v4763_v60 = vpack.i.bf16 %v2001_v37, %v2657_v59  ;;  %v4062_v62 = vpop.f32.mrb[17].mxu1  ;;  %v2906_v37 = vld [vmem:[%s5955_s15 + $0x98] sm:$0xff]  ;;  %v2903_v59 = vld [vmem:[%s5955_s15 + $0x80] sm:$0xff] }
 0xbdd   : > { %v2907_v62 = vld [vmem:[%s5955_s15 + $0xa0] sm:$0xff] }
 0xbde   : > { %4764 = vrot.lane.b32.xlu0 %v4763_v60, %s5334_s30  ;;  %v4391_v60 = vpack.c.bf16 %v2910_v58, %v2906_v37  ;;  %v4329_v2 = vpack.c.bf16 %v2907_v62, %v2903_v59  ;;  %v2946_v37 = vld [vmem:[%s5955_s15 + $0x1d8] sm:$0xff]  ;;  %v4345_v59 = vpack.c.bf16 %v2939_v48, %v2935_v47 }
 0xbdf   : > { %v2950_v58 = vld [vmem:[%s5955_s15 + $0x1f8] sm:$0xff] }
 0xbe0   : > { %4330 = vmatpush1.bf16.msra.mxu1 %v4329_v2  ;;  %v2945_v2 = vld [vmem:[%s5955_s15 + $0x1d0] sm:$0xff]  ;;  %v4411_v61 = vpack.c.bf16 %v2950_v58, %v2946_v37  ;;  %v2978_v37 = vld [vmem:[%s5955_s15 + $0x2d8] sm:$0xff] }
 0xbe1   : > { %4332 = vmatprep.subr.bf16.mxu1 %v4331_v6  ;;  %v2954_v6 = vld [vmem:[%s5955_s15 + $0x218] sm:$0xff] }
 0xbe2   : > { %v2982_v58 = vld [vmem:[%s5955_s15 + $0x2f8] sm:$0xff] }
 0xc50   : > { %v4765_v5 = vpop.permute.xlu0 %4764 }
 0xc51   : > { %v4767_v7 = vunpack.i.h.bf16 %v4765_v5  ;;  %v4766_v8 = vunpack.i.l.bf16 %v4765_v5  ;;  %v4393_v5 = vpack.c.bf16 %v2909_v1, %v2905_v0  ;;  %v2943_v0 = vld [vmem:[%s5955_s15 + $0x1c0] sm:$0xff] }
 0xc52   : > { %v2947_v1 = vld [vmem:[%s5955_s15 + $0x1e0] sm:$0xff] }
 0xc53   : > { %v2692_v63 = vsel %vm2688_vm4, %v2691_v11, %v4766_v8  ;;  %v2689_v13 = vsel %vm2688_vm4, %v2687_v12, %v4767_v7  ;;  %v2918_v7 = vld [vmem:[%s5955_s15 + $0xf8] sm:$0xff]  ;;  %v2911_v8 = vld [vmem:[%s5955_s15 + $0xc0] sm:$0xff]  ;;  %v2913_v12 = vld [vmem:[%s5955_s15 + $0xd0] sm:$0xff] }
 0xc54   : > { %2833 = vmatprep.mubr.f32.mxu0 %v2692_v63  ;;  %v4395_v11 = vpack.c.bf16 %v2918_v7, %v2914_v4  ;;  %v2917_v63 = vld [vmem:[%s5955_s15 + $0xf0] sm:$0xff]  ;;  %v2952_v4 = vld [vmem:[%s5955_s15 + $0x208] sm:$0xff]  ;;  %v2958_v7 = vld [vmem:[%s5955_s15 + $0x238] sm:$0xff] }
 0xc55   : > { %2834 = vmatmul.mubr.f32.vlgmr.msra.gmra.mrb[20].mxu0 %v2689_v13  ;;  %v2920_v13 = vld [vmem:[%s5955_s15 + $0x108] sm:$0xff] }
 0xc56   : > { %4386 = vmatpush1.bf16.msra.mxu0 %v4385_v35  ;;  %v2933_v35 = vld [vmem:[%s5955_s15 + $0x170] sm:$0xff] }
 0xc57   : > { %4388 = vmatprep.subr.bf16.mxu0 %v4387_v44  ;;  %v4341_v44 = vpack.c.bf16 %v2931_v32, %v2927_v31  ;;  %v4405_v45 = vpack.c.bf16 %v2933_v35, %v2929_v33  ;;  %v4421_v32 = vpack.c.bf16 %v2965_v26, %v2961_v25  ;;  %v2971_v35 = vld [vmem:[%s5955_s15 + $0x2a0] sm:$0xff]  ;;  %v3000_v25 = vld [vmem:[%s5955_s15 + $0x388] sm:$0xff] }
 0xc5a   : > { %4390 = vmatpush1.bf16.msra.mxu0 %v4389_v56  ;;  %v2944_v56 = vld [vmem:[%s5955_s15 + $0x1c8] sm:$0xff] }
 0xc5b   : > { %4392 = vmatprep.subr.bf16.mxu0 %v4391_v60  ;;  %v4409_v60 = vpack.c.bf16 %v2941_v54, %v2937_v50  ;;  %v4347_v62 = vpack.c.bf16 %v2948_v57, %v2944_v56  ;;  %v2976_v56 = vld [vmem:[%s5955_s15 + $0x2c8] sm:$0xff] }
 0xc5c   : > { %v2980_v57 = vld [vmem:[%s5955_s15 + $0x2e8] sm:$0xff] }
 0xc5e   : > { %4394 = vmatpush1.bf16.msra.mxu0 %v4393_v5  ;;  %v2956_v5 = vld [vmem:[%s5955_s15 + $0x228] sm:$0xff] }
 0xc5f   : > { %4396 = vmatprep.subr.bf16.mxu0 %v4395_v11  ;;  %v4351_v11 = vpack.c.bf16 %v2956_v5, %v2952_v4  ;;  %v2986_v4 = vld [vmem:[%s5955_s15 + $0x318] sm:$0xff] }
 0xd28   : > { %v2835_v16 = vpop.f32.mrb[20].mxu0 }
 0xd29   : > { %v2836_v30 = vadd.f32 %v2835_v16, %v2762_v28  ;;  %v2837_v17 = vpop.f32.mrb[21].mxu0  ;;  %v2922_v28 = vld [vmem:[%s5955_s15 + $0x118] sm:$0xff]  ;;  %v4333_v16 = vpack.c.bf16 %v2915_v9, %v2911_v8  ;;  %v4349_v8 = vpack.c.bf16 %v2947_v1, %v2943_v0  ;;  %v4413_v9 = vpack.c.bf16 %v2949_v3, %v2945_v2  ;;  %v2977_v0 = vld [vmem:[%s5955_s15 + $0x2d0] sm:$0xff]  ;;  %v2988_v3 = vld [vmem:[%s5955_s15 + $0x328] sm:$0xff] }
 0xd2a   : > { %v2838_v19 = vadd.f32 %v2837_v17, %v2766_v15  ;;  %v2926_v15 = vld [vmem:[%s5955_s15 + $0x138] sm:$0xff]  ;;  %v4335_v17 = vpack.c.bf16 %v2924_v14, %v2920_v13  ;;  %v2953_v13 = vld [vmem:[%s5955_s15 + $0x210] sm:$0xff]  ;;  %v4415_v14 = vpack.c.bf16 %v2958_v7, %v2954_v6  ;;  %v2983_v7 = vld [vmem:[%s5955_s15 + $0x300] sm:$0xff] }
 0xd2b   : > { %v6446_v21 = vadd.f32 %v4804_v20, %v2836_v30  ;;  %v4397_v30 = vpack.c.bf16 %v2917_v63, %v2913_v12  ;;  %v2923_v20 = vld [vmem:[%s5955_s15 + $0x120] sm:$0xff]  ;;  %4334 = vmatpush1.bf16.msra.mxu1 %v4333_v16  ;;  %v2964_v16 = vld [vmem:[%s5955_s15 + $0x268] sm:$0xff]  ;;  %v2981_v1 = vld [vmem:[%s5955_s15 + $0x2f0] sm:$0xff] }
 0xd2c   : > { %v6449_v23 = vadd.f32 %v4805_v22, %v2838_v19  ;;  %v2919_v19 = vld [vmem:[%s5955_s15 + $0x100] sm:$0xff]  ;;  %v2921_v22 = vld [vmem:[%s5955_s15 + $0x110] sm:$0xff]  ;;  %4336 = vmatprep.subr.bf16.mxu1 %v4335_v17  ;;  %v2966_v17 = vld [vmem:[%s5955_s15 + $0x278] sm:$0xff]  ;;  %v4429_v2 = vpack.c.bf16 %v2981_v1, %v2977_v0 }
 0xd2d   : > { %v4337_v27 = vpack.c.bf16 %v2923_v20, %v2919_v19  ;;  %4398 = vmatpush1.bf16.msra.mxu0 %v4397_v30  ;;  %v4401_v18 = vpack.c.bf16 %v2925_v52, %v2921_v22  ;;  %v2951_v12 = vld [vmem:[%s5955_s15 + $0x200] sm:$0xff]  ;;  %v2962_v30 = vld [vmem:[%s5955_s15 + $0x258] sm:$0xff] }
 0xd2e   : > { %v2842_v24 = vadd.f32 %v6449_v23, %v6446_v21  ;;  %v2955_v63 = vld [vmem:[%s5955_s15 + $0x220] sm:$0xff]  ;;  %v4419_v49 = vpack.c.bf16 %v2966_v17, %v2962_v30  ;;  %v2990_v6 = vld [vmem:[%s5955_s15 + $0x338] sm:$0xff] }
 0xd2f   : > { %4338 = vmatpush1.bf16.msra.mxu1 %v4337_v27  ;;  %v4353_v19 = vpack.c.bf16 %v2955_v63, %v2951_v12  ;;  %v2963_v52 = vld [vmem:[%s5955_s15 + $0x260] sm:$0xff]  ;;  %v2972_v27 = vld [vmem:[%s5955_s15 + $0x2a8] sm:$0xff]  ;;  %v2985_v12 = vld [vmem:[%s5955_s15 + $0x310] sm:$0xff] }
 0xd30   : > { %2843 = vadd.xlane.f32.xlu1 %v2842_v24  ;;  %v4399_v24 = vpack.c.bf16 %v2926_v15, %v2922_v28  ;;  %4340 = vmatprep.subr.bf16.mxu1 %v4339_v29  ;;  %v2957_v28 = vld [vmem:[%s5955_s15 + $0x230] sm:$0xff]  ;;  %v2960_v15 = vld [vmem:[%s5955_s15 + $0x248] sm:$0xff]  ;;  %v2974_v29 = vld [vmem:[%s5955_s15 + $0x2b8] sm:$0xff]  ;;  %v4359_v33 = vpack.c.bf16 %v2972_v27, %v2968_v53 }
 0xd31   : > { %v4417_v20 = vpack.c.bf16 %v2957_v28, %v2953_v13  ;;  %v4355_v22 = vpack.c.bf16 %v2964_v16, %v2960_v15  ;;  %v2989_v63 = vld [vmem:[%s5955_s15 + $0x330] sm:$0xff]  ;;  %v2992_v13 = vld [vmem:[%s5955_s15 + $0x348] sm:$0xff]  ;;  %v2994_v15 = vld [vmem:[%s5955_s15 + $0x358] sm:$0xff] }
 0xd32   : > { %4400 = vmatprep.subr.bf16.mxu0 %v4399_v24  ;;  %v2959_v24 = vld [vmem:[%s5955_s15 + $0x240] sm:$0xff]  ;;  %v2996_v28 = vld [vmem:[%s5955_s15 + $0x368] sm:$0xff]  ;;  %v2998_v16 = vld [vmem:[%s5955_s15 + $0x378] sm:$0xff] }
 0xd33   : > { %4402 = vmatpush1.bf16.msra.mxu0 %v4401_v18  ;;  %4342 = vmatpush1.bf16.msra.mxu1 %v4341_v44  ;;  %v2970_v18 = vld [vmem:[%s5955_s15 + $0x298] sm:$0xff]  ;;  %v4357_v31 = vpack.c.bf16 %v2963_v52, %v2959_v24  ;;  %v4425_v44 = vpack.c.bf16 %v2973_v38, %v2969_v55  ;;  %v4371_v30 = vpack.c.bf16 %v2996_v28, %v2992_v13  ;;  %v2997_v52 = vld [vmem:[%s5955_s15 + $0x370] sm:$0xff]  ;;  %v3012_v55 = vld [vmem:[%s5955_s15 + $0x3e8] sm:$0xff] }
 0xd34   : > { %4404 = vmatprep.subr.bf16.mxu0 %v4403_v34  ;;  %4344 = vmatprep.subr.bf16.mxu1 %v4343_v46  ;;  %v2967_v34 = vld [vmem:[%s5955_s15 + $0x280] sm:$0xff]  ;;  %v4423_v36 = vpack.c.bf16 %v2974_v29, %v2970_v18  ;;  %v4435_v17 = vpack.c.bf16 %v2998_v16, %v2994_v15  ;;  %v3002_v27 = vld [vmem:[%s5955_s15 + $0x398] sm:$0xff]  ;;  %v3187_v16 = vld [vmem:[%s5964_s25 + $0x20] sm:$0xff] }
 0xd35   : > { %v4361_v41 = vpack.c.bf16 %v2971_v35, %v2967_v34  ;;  %v3006_v18 = vld [vmem:[%s5955_s15 + $0x3b8] sm:$0xff]  ;;  %v2999_v29 = vld [vmem:[%s5955_s15 + $0x380] sm:$0xff]  ;;  %v3005_v34 = vld [vmem:[%s5955_s15 + $0x3b0] sm:$0xff] }
 0xd36   : > { %v3010_v38 = vld [vmem:[%s5955_s15 + $0x3d8] sm:$0xff]  ;;  %v3190_v13 = vld [vmem:[%s5964_s25 + $0x38] sm:$0xff] }
 0xd37   : > { %4406 = vmatpush1.bf16.msra.mxu0 %v4405_v45  ;;  %4346 = vmatpush1.bf16.msra.mxu1 %v4345_v59  ;;  %v2975_v59 = vld [vmem:[%s5955_s15 + $0x2c0] sm:$0xff]  ;;  %v2859_v0 = vld [vmem:[%s6937_s26] sm:$0x3]  ;;  %v2873_v1 = vld [vmem:[%s6938_s13] sm:$0x3]  ;;  %s5170_s26 = sshll.u32 %s5337_s14, 4  ;;  %s5171_s26 = int_to_ptr.vmem [resolvable:$false] %s5170_s26 }
 0xd38   : > { %4408 = vmatprep.subr.bf16.mxu0 %v4407_v51  ;;  %4348 = vmatprep.subr.bf16.mxu1 %v4347_v62  ;;  %s5172_s13 = scalar_lea.vmem %s5171_s26, 512  ;;  %p5173_p1 = scmp.lt.s32.totalorder %s6774_s21, %s5171_s26 }
 0xd39   : > { %p5174_p3 = scmp.lt.s32.totalorder %s5172_s13, %s5166_s19 }
 0xd3b   : > { %4410 = vmatpush1.bf16.msra.mxu0 %v4409_v60  ;;  %4350 = vmatpush1.bf16.msra.mxu1 %v4349_v8  ;;  %v4427_v60 = vpack.c.bf16 %v2982_v58, %v2978_v37  ;;  %v2987_v8 = vld [vmem:[%s5955_s15 + $0x320] sm:$0xff]  ;;  %p5175_p13 = por %p5174_p3, %p5173_p1 }
 0xd3c   : > { %4412 = vmatprep.subr.bf16.mxu0 %v4411_v61  ;;  %4352 = vmatprep.subr.bf16.mxu1 %v4351_v11  ;;  %v2984_v61 = vld [vmem:[%s5955_s15 + $0x308] sm:$0xff]  ;;  %v4369_v11 = vpack.c.bf16 %v2987_v8, %v2983_v7  ;;  %v3186_v58 = vld [vmem:[%s5964_s25 + $0x18] sm:$0xff] }
 0xd3d   : > { %v4367_v5 = vpack.c.bf16 %v2988_v3, %v2984_v61  ;;  %v2868_v61 = vrot.slane %v2859_v0, %v6211_v43  ;;  %v3183_v8 = vld [vmem:[%s5964_s25] sm:$0xff]  ;;  %p5176_p11 = pnand %p5175_p13, %p5169_p6 }
 0xd3f   : > { %4414 = vmatpush1.bf16.msra.mxu0 %v4413_v9  ;;  %4354 = vmatpush1.bf16.msra.mxu1 %v4353_v19  ;;  %v4431_v9 = vpack.c.bf16 %v2990_v6, %v2986_v4  ;;  %v2991_v19 = vld [vmem:[%s5955_s15 + $0x340] sm:$0xff]  ;;  %v2882_v6 = vrot.slane %v2873_v1, %v6211_v43 }
 0xd40   : > { %4416 = vmatprep.subr.bf16.mxu0 %v4415_v14  ;;  %4356 = vmatprep.subr.bf16.mxu1 %v4355_v22  ;;  %v4433_v14 = vpack.c.bf16 %v2989_v63, %v2985_v12  ;;  %v2993_v22 = vld [vmem:[%s5955_s15 + $0x350] sm:$0xff] }
 0xd41   : > { %v4437_v26 = vpack.c.bf16 %v2997_v52, %v2993_v22  ;;  %v3188_v63 = vld [vmem:[%s5964_s25 + $0x28] sm:$0xff]  ;;  %v3191_v22 = vld [vmem:[%s5964_s25 + $0x40] sm:$0xff] }
 0xd42   : > { %v4451_v15 = vpack.c.bf16 %v3190_v13, %v3188_v63  ;;  %v3196_v52 = vld [vmem:[%s5964_s25 + $0x68] sm:$0xff]  ;;  %v3223_v13 = vld [vmem:[%s5964_s25 + $0x140] sm:$0xff] }
 0xd43   : > { %4418 = vmatpush1.bf16.msra.mxu0 %v4417_v20  ;;  %4358 = vmatpush1.bf16.msra.mxu1 %v4357_v31  ;;  %v2995_v20 = vld [vmem:[%s5955_s15 + $0x360] sm:$0xff]  ;;  %v4439_v31 = vpack.c.bf16 %v3006_v18, %v3002_v27  ;;  %v3197_v27 = vld [vmem:[%s5964_s25 + $0x70] sm:$0xff]  ;;  %v3200_v18 = vld [vmem:[%s5964_s25 + $0x88] sm:$0xff] }
 0xd44   : > { %4420 = vmatprep.subr.bf16.mxu0 %v4419_v49  ;;  %4360 = vmatprep.subr.bf16.mxu1 %v4359_v33  ;;  %v4373_v24 = vpack.c.bf16 %v2995_v20, %v2991_v19  ;;  %v3004_v49 = vld [vmem:[%s5955_s15 + $0x3a8] sm:$0xff]  ;;  %v3001_v33 = vld [vmem:[%s5955_s15 + $0x390] sm:$0xff] }
 0xd45   : > { %v4375_v53 = vpack.c.bf16 %v3004_v49, %v3000_v25  ;;  %v3198_v25 = vld [vmem:[%s5964_s25 + $0x78] sm:$0xff] }
 0xd47   : > { %4422 = vmatpush1.bf16.msra.mxu0 %v4421_v32  ;;  %4362 = vmatpush1.bf16.msra.mxu1 %v4361_v41  ;;  %v3003_v32 = vld [vmem:[%s5955_s15 + $0x3a0] sm:$0xff]  ;;  %v4441_v41 = vpack.c.bf16 %v3005_v34, %v3001_v33  ;;  %v3199_v33 = vld [vmem:[%s5964_s25 + $0x80] sm:$0xff]  ;;  %v3201_v34 = vld [vmem:[%s5964_s25 + $0x90] sm:$0xff] }
 0xd48   : > { %4424 = vmatprep.subr.bf16.mxu0 %v4423_v36  ;;  %v4377_v35 = vpack.c.bf16 %v3003_v32, %v2999_v29  ;;  %v3008_v36 = vld [vmem:[%s5955_s15 + $0x3c8] sm:$0xff]  ;;  %v3202_v29 = vld [vmem:[%s5964_s25 + $0x98] sm:$0xff] }
 0xd49   : > { %v4463_v32 = vpack.c.bf16 %v3202_v29, %v3200_v18  ;;  %v3235_v29 = vld [vmem:[%s5964_s25 + $0x1a0] sm:$0xff] }
 0xd4b   : > { %4426 = vmatpush1.bf16.msra.mxu0 %v4425_v44  ;;  %v4379_v44 = vpack.c.bf16 %v3012_v55, %v3008_v36  ;;  %v3206_v36 = vld [vmem:[%s5964_s25 + $0xb8] sm:$0xff]  ;;  %v4465_v55 = vpack.c.bf16 %v3201_v34, %v3199_v33 }
 0xd4c   : > { %4428 = vmatprep.subr.bf16.mxu0 %v4427_v60  ;;  %v3242_v33 = vld [vmem:[%s5964_s25 + $0x1d8] sm:$0xff] }
 0xd4f   : > { %4430 = vmatpush1.bf16.msra.mxu0 %v4429_v2  ;;  %v2864_v2 = vrot.slane %v2859_v0, %v6208_v42 }
 0xd50   : > { %4432 = vmatprep.subr.bf16.mxu0 %v4431_v9  ;;  %v3185_v9 = vld [vmem:[%s5964_s25 + $0x10] sm:$0xff] }
 0xd53   : > { %4434 = vmatpush1.bf16.msra.mxu0 %v4433_v14 }
 0xd54   : > { %4436 = vmatprep.subr.bf16.mxu0 %v4435_v17  ;;  %v3194_v17 = vld [vmem:[%s5964_s25 + $0x58] sm:$0xff] }
 0xd57   : > { %4438 = vmatpush1.bf16.msra.mxu0 %v4437_v26  ;;  %v4459_v26 = vpack.c.bf16 %v3198_v25, %v3196_v52  ;;  %v3231_v25 = vld [vmem:[%s5964_s25 + $0x180] sm:$0xff] }
 0xd58   : > { %4440 = vmatprep.subr.bf16.mxu0 %v4439_v31 }
 0xd5b   : > { %4442 = vmatpush1.bf16.msra.mxu0 %v4441_v41  ;;  %v3203_v41 = vld [vmem:[%s5964_s25 + $0xa0] sm:$0xff] }
 0xdbd   : > { %v2844_v45 = vpop.xlane.xlu1 %2843 }
 0xdbe   : > { %v2846_v46 = vmul.f32 0.00390625, %v2844_v45  ;;  %v3014_v45 = vld [vmem:[%s5955_s15 + $0x3f8] sm:$0xff] }
 0xdc0   : > { %v6542_v47 = vsub.f32 %v6446_v21, %v2846_v46  ;;  %v6545_v48 = vsub.f32 %v6449_v23, %v2846_v46  ;;  %v4363_v21 = vpack.c.bf16 %v2980_v57, %v2976_v56  ;;  %v2979_v23 = vld [vmem:[%s5955_s15 + $0x2e0] sm:$0xff]  ;;  %v3013_v56 = vld [vmem:[%s5955_s15 + $0x3f0] sm:$0xff] }
 0xdc1   : > { %v4365_v62 = vpack.c.bf16 %v2979_v23, %v2975_v59  ;;  %v3007_v46 = vld [vmem:[%s5955_s15 + $0x3c0] sm:$0xff] }
 0xdc2   : > { %v2849_v50 = vmul.f32 %v6542_v47, %v6542_v47  ;;  %v2850_v51 = vmul.f32 %v6545_v48, %v6545_v48  ;;  %4364 = vmatprep.subr.bf16.mxu1 %v4363_v21  ;;  %v3184_v21 = vld [vmem:[%s5964_s25 + $0x8] sm:$0xff] }
 0xdc3   : > { %4366 = vmatpush1.bf16.msra.mxu1 %v4365_v62  ;;  %v4447_v59 = vpack.c.bf16 %v3186_v58, %v3184_v21 }
 0xdc4   : > { %v2851_v54 = vadd.f32 %v2850_v51, %v2849_v50  ;;  %4368 = vmatprep.subr.bf16.mxu1 %v4367_v5  ;;  %v3011_v50 = vld [vmem:[%s5955_s15 + $0x3e0] sm:$0xff]  ;;  %v4443_v51 = vpack.c.bf16 %v3014_v45, %v3010_v38  ;;  %v2878_v5 = vrot.slane %v2873_v1, %v6208_v42  ;;  %v3208_v45 = vld [vmem:[%s5964_s25 + $0xc8] sm:$0xff] }
 0xdc5   : > { %v4381_v57 = vpack.c.bf16 %v3011_v50, %v3007_v46  ;;  %v3210_v46 = vld [vmem:[%s5964_s25 + $0xd8] sm:$0xff] }
 0xdc6   : > { %2852 = vadd.xlane.f32.xlu0 %v2851_v54  ;;  %v3009_v54 = vld [vmem:[%s5955_s15 + $0x3d0] sm:$0xff]  ;;  %4444 = vmatprep.subr.bf16.mxu0 %v4443_v51  ;;  %v4471_v51 = vpack.c.bf16 %v3210_v46, %v3208_v45  ;;  %v3243_v46 = vld [vmem:[%s5964_s25 + $0x1e0] sm:$0xff]  ;;  %s6940_s15 = sld [smem:[#allocation36_spill]] }
 0xdc7   : > { %4370 = vmatpush1.bf16.msra.mxu1 %v4369_v11  ;;  %v4445_v37 = vpack.c.bf16 %v3013_v56, %v3009_v54  ;;  %v3207_v54 = vld [vmem:[%s5964_s25 + $0xc0] sm:$0xff]  ;;  %v3209_v56 = vld [vmem:[%s5964_s25 + $0xd0] sm:$0xff] }
 0xdc8   : > { %4372 = vmatprep.subr.bf16.mxu1 %v4371_v30  ;;  %v3189_v30 = vld [vmem:[%s5964_s25 + $0x30] sm:$0xff]  ;;  %v4473_v21 = vpack.c.bf16 %v3209_v56, %v3207_v54  ;;  %v3248_v54 = vld [vmem:[%s5964_s25 + $0x208] sm:$0xff]  ;;  %v3250_v56 = vld [vmem:[%s5964_s25 + $0x218] sm:$0xff] }
 0xdc9   : > { %4446 = vmatpush1.bf16.msra.mxu0 %v4445_v37  ;;  %v4453_v19 = vpack.c.bf16 %v3189_v30, %v3187_v16  ;;  %v3214_v37 = vld [vmem:[%s5964_s25 + $0xf8] sm:$0xff] }
 0xdca   : > { %v3230_v16 = vld [vmem:[%s5964_s25 + $0x178] sm:$0xff] }
 0xdcb   : > { %4374 = vmatpush1.bf16.msra.mxu1 %v4373_v24  ;;  %v3193_v24 = vld [vmem:[%s5964_s25 + $0x50] sm:$0xff] }
 0xdcc   : > { %4376 = vmatprep.subr.bf16.mxu1 %v4375_v53  ;;  %v4457_v49 = vpack.c.bf16 %v3193_v24, %v3191_v22  ;;  %v3195_v53 = vld [vmem:[%s5964_s25 + $0x60] sm:$0xff]  ;;  %v3234_v22 = vld [vmem:[%s5964_s25 + $0x198] sm:$0xff]  ;;  %s3950_s23 = sshll.u32 %s6940_s15, 8 }
 0xdcd   : > { %v4461_v31 = vpack.c.bf16 %v3197_v27, %v3195_v53  ;;  %v3238_v53 = vld [vmem:[%s5964_s25 + $0x1b8] sm:$0xff]  ;;  %s6772_s30 = scalar_lea.hbm %s6945_s18, %s3950_s23 }
 0xdcf   : > { %4378 = vmatpush1.bf16.msra.mxu1 %v4377_v35  ;;  %v3204_v35 = vld [vmem:[%s5964_s25 + $0xa8] sm:$0xff] }
 0xdd0   : > { %4380 = vmatprep.subr.bf16.mxu1 %v4379_v44  ;;  %v4467_v38 = vpack.c.bf16 %v3206_v36, %v3204_v35  ;;  %v3205_v44 = vld [vmem:[%s5964_s25 + $0xb0] sm:$0xff]  ;;  %v3239_v36 = vld [vmem:[%s5964_s25 + $0x1c0] sm:$0xff] }
 0xdd1   : > { %v4469_v50 = vpack.c.bf16 %v3205_v44, %v3203_v41  ;;  %v3244_v41 = vld [vmem:[%s5964_s25 + $0x1e8] sm:$0xff]  ;;  %v3246_v44 = vld [vmem:[%s5964_s25 + $0x1f8] sm:$0xff] }
 0xdd2   : > { %v4507_v45 = vpack.c.bf16 %v3246_v44, %v3244_v41  ;;  %v3271_v44 = vld [vmem:[%s5964_s25 + $0x2c0] sm:$0xff] }
 0xdd3   : > { %4382 = vmatpush1.bf16.msra.mxu1 %v4381_v57  ;;  %v3212_v57 = vld [vmem:[%s5964_s25 + $0xe8] sm:$0xff] }
 0xdd4   : > { %4448 = vmatprep.subr.bf16.mxu1 %v4447_v59  ;;  %v4475_v58 = vpack.c.bf16 %v3214_v37, %v3212_v57  ;;  %v3211_v59 = vld [vmem:[%s5964_s25 + $0xe0] sm:$0xff]  ;;  %v4511_v57 = vpack.c.bf16 %v3250_v56, %v3248_v54  ;;  %v6676_v37 = vld [vmem:[%s5958_s24] sm:$0xf]  ;;  %s6941_s24 = scalar_lea.vmem [#allocation19], %s5936_s6 }
 0xdd5   : > { %v3275_v56 = vld [vmem:[%s5964_s25 + $0x2e0] sm:$0xff] }
 0xe53   : > { %v2853_v23 = vpop.xlane.xlu0 %2852 }
 0xe54   : > { %v2854_v60 = vmul.f32 0.00390625, %v2853_v23  ;;  %v3213_v23 = vld [vmem:[%s5964_s25 + $0xf0] sm:$0xff] }
 0xe55   : > { %v4477_v0 = vpack.c.bf16 %v3213_v23, %v3211_v59  ;;  %v3032_v59 = vrot.slane %v6676_v37, %v1118_v10 }
 0xe56   : > { %v2855_v62 = vadd.f32 1e-05, %v2854_v60  ;;  %v3216_v60 = vld [vmem:[%s5964_s25 + $0x108] sm:$0xff] }
 0xe58   : > { %4800 = vrsqrt.f32 %v2855_v62  ;;  %v3218_v62 = vld [vmem:[%s5964_s25 + $0x118] sm:$0xff] }
 0xe59   : > { %v4479_v1 = vpack.c.bf16 %v3218_v62, %v3216_v60 }
 0xe62   : > { %v4801_v3 = vpop.eup %4800 }
 0xe63   : > { %v2858_v4 = vmul.f32 %v4801_v3, %v6545_v48  ;;  %v2857_v7 = vmul.f32 %v4801_v3, %v6542_v47  ;;  %v4449_v48 = vpack.c.bf16 %v3185_v9, %v3183_v8  ;;  %v3192_v47 = vld [vmem:[%s5964_s25 + $0x48] sm:$0xff]  ;;  %v3221_v8 = vld [vmem:[%s5964_s25 + $0x130] sm:$0xff] }
 0xe64   : > { %v4455_v20 = vpack.c.bf16 %v3194_v17, %v3192_v47  ;;  %v3220_v3 = vld [vmem:[%s5964_s25 + $0x128] sm:$0xff]  ;;  %v3227_v17 = vld [vmem:[%s5964_s25 + $0x160] sm:$0xff] }
 0xe65   : > { %v2872_v11 = vmul.f32 %v2868_v61, %v2858_v4  ;;  %v2871_v12 = vmul.f32 %v2864_v2, %v2857_v7  ;;  %v3215_v2 = vld [vmem:[%s5964_s25 + $0x100] sm:$0xff]  ;;  %v3217_v61 = vld [vmem:[%s5964_s25 + $0x110] sm:$0xff]  ;;  %v3222_v4 = vld [vmem:[%s5964_s25 + $0x138] sm:$0xff] }
 0xe66   : > { %v3219_v7 = vld [vmem:[%s5964_s25 + $0x120] sm:$0xff]  ;;  %v3224_v9 = vld [vmem:[%s5964_s25 + $0x148] sm:$0xff] }
 0xe67   : > { %v6607_v14 = vadd.f32 %v2882_v6, %v2872_v11  ;;  %v6609_v28 = vadd.f32 %v2878_v5, %v2871_v12  ;;  %v4481_v5 = vpack.c.bf16 %v3217_v61, %v3215_v2  ;;  %v4483_v6 = vpack.c.bf16 %v3222_v4, %v3220_v3  ;;  %v3226_v11 = vld [vmem:[%s5964_s25 + $0x158] sm:$0xff]  ;;  %v3247_v2 = vld [vmem:[%s5964_s25 + $0x200] sm:$0xff]  ;;  %v3249_v61 = vld [vmem:[%s5964_s25 + $0x210] sm:$0xff] }
 0xe68   : > { %v4485_v12 = vpack.c.bf16 %v3221_v8, %v3219_v7  ;;  %v4487_v63 = vpack.c.bf16 %v3226_v11, %v3224_v9  ;;  %v4513_v8 = vpack.c.bf16 %v3249_v61, %v3247_v2  ;;  %v3251_v11 = vld [vmem:[%s5964_s25 + $0x220] sm:$0xff]  ;;  %v3286_v2 = vld [vmem:[%s5964_s25 + $0x338] sm:$0xff] }
 0xe69   : > { %3101 = vmatprep.mubr.f32.mxu1 %v6607_v14  ;;  %3172 = vmatprep.mubr.f32.mxu0 %v6607_v14 }
 0xe6a   : > { %3102 = vmatmul.mubr.f32.vlgmr.msra.gmra.mrb[18].mxu1 %v6609_v28  ;;  %3173 = vmatmul.mubr.f32.vlgmr.msra.gmra.mrb[22].mxu0 %v6609_v28 }
 0xe6b   : > { %4450 = vmatpush1.bf16.msra.mxu1 %v4449_v48  ;;  %v3225_v48 = vld [vmem:[%s5964_s25 + $0x150] sm:$0xff] }
 0xe6c   : > { %4452 = vmatprep.subr.bf16.mxu1 %v4451_v15  ;;  %v3228_v15 = vld [vmem:[%s5964_s25 + $0x168] sm:$0xff]  ;;  %v4489_v30 = vpack.c.bf16 %v3225_v48, %v3223_v13  ;;  %v3258_v48 = vld [vmem:[%s5964_s25 + $0x258] sm:$0xff] }
 0xe6d   : > { %v4491_v47 = vpack.c.bf16 %v3230_v16, %v3228_v15  ;;  %v3256_v13 = vld [vmem:[%s5964_s25 + $0x248] sm:$0xff] }
 0xe6e   : > { %v4519_v16 = vpack.c.bf16 %v3258_v48, %v3256_v13 }
 0xe6f   : > { %4454 = vmatpush1.bf16.msra.mxu1 %v4453_v19  ;;  %v3229_v19 = vld [vmem:[%s5964_s25 + $0x170] sm:$0xff] }
 0xe70   : > { %4456 = vmatprep.subr.bf16.mxu1 %v4455_v20  ;;  %v3232_v20 = vld [vmem:[%s5964_s25 + $0x188] sm:$0xff]  ;;  %v4493_v24 = vpack.c.bf16 %v3229_v19, %v3227_v17  ;;  %v3262_v19 = vld [vmem:[%s5964_s25 + $0x278] sm:$0xff] }
 0xe71   : > { %v4495_v52 = vpack.c.bf16 %v3234_v22, %v3232_v20  ;;  %v3260_v17 = vld [vmem:[%s5964_s25 + $0x268] sm:$0xff] }
 0xe72   : > { %v4523_v22 = vpack.c.bf16 %v3262_v19, %v3260_v17 }
 0xe73   : > { %4458 = vmatpush1.bf16.msra.mxu1 %v4457_v49  ;;  %v3233_v49 = vld [vmem:[%s5964_s25 + $0x190] sm:$0xff] }
 0xe74   : > { %4460 = vmatprep.subr.bf16.mxu1 %v4459_v26  ;;  %v3236_v26 = vld [vmem:[%s5964_s25 + $0x1a8] sm:$0xff]  ;;  %v4497_v27 = vpack.c.bf16 %v3233_v49, %v3231_v25  ;;  %v3266_v49 = vld [vmem:[%s5964_s25 + $0x298] sm:$0xff] }
 0xe75   : > { %v4499_v18 = vpack.c.bf16 %v3238_v53, %v3236_v26  ;;  %v3264_v25 = vld [vmem:[%s5964_s25 + $0x288] sm:$0xff] }
 0xe76   : > { %v4527_v53 = vpack.c.bf16 %v3266_v49, %v3264_v25 }
 0xe77   : > { %4462 = vmatpush1.bf16.msra.mxu1 %v4461_v31  ;;  %v3237_v31 = vld [vmem:[%s5964_s25 + $0x1b0] sm:$0xff] }
 0xe78   : > { %4464 = vmatprep.subr.bf16.mxu1 %v4463_v32  ;;  %v3240_v32 = vld [vmem:[%s5964_s25 + $0x1c8] sm:$0xff]  ;;  %v4501_v34 = vpack.c.bf16 %v3237_v31, %v3235_v29  ;;  %v3270_v31 = vld [vmem:[%s5964_s25 + $0x2b8] sm:$0xff] }
 0xe79   : > { %v4503_v35 = vpack.c.bf16 %v3242_v33, %v3240_v32  ;;  %v3268_v29 = vld [vmem:[%s5964_s25 + $0x2a8] sm:$0xff] }
 0xe7a   : > { %v4531_v33 = vpack.c.bf16 %v3270_v31, %v3268_v29 }
 0xe7b   : > { %4466 = vmatpush1.bf16.msra.mxu1 %v4465_v55  ;;  %v3241_v55 = vld [vmem:[%s5964_s25 + $0x1d0] sm:$0xff] }
 0xe7c   : > { %4468 = vmatprep.subr.bf16.mxu1 %v4467_v38  ;;  %v4505_v38 = vpack.c.bf16 %v3241_v55, %v3239_v36  ;;  %v3272_v36 = vld [vmem:[%s5964_s25 + $0x2c8] sm:$0xff]  ;;  %v3274_v55 = vld [vmem:[%s5964_s25 + $0x2d8] sm:$0xff] }
 0xe7d   : > { %v4535_v41 = vpack.c.bf16 %v3274_v55, %v3272_v36  ;;  %v3028_v55 = vrot.slane %v6676_v37, %v1114_v40 }
 0xe7f   : > { %4470 = vmatpush1.bf16.msra.mxu1 %v4469_v50  ;;  %v3245_v50 = vld [vmem:[%s5964_s25 + $0x1f0] sm:$0xff] }
 0xe80   : > { %4472 = vmatprep.subr.bf16.mxu1 %v4471_v51  ;;  %v4509_v51 = vpack.c.bf16 %v3245_v50, %v3243_v46  ;;  %v3276_v46 = vld [vmem:[%s5964_s25 + $0x2e8] sm:$0xff]  ;;  %v3278_v50 = vld [vmem:[%s5964_s25 + $0x2f8] sm:$0xff] }
 0xe81   : > { %v4539_v54 = vpack.c.bf16 %v3278_v50, %v3276_v46 }
 0xe83   : > { %4474 = vmatpush1.bf16.msra.mxu1 %v4473_v21  ;;  %v3020_v21 = vrot.slane %v6676_v37, %v6208_v42 }
 0xe84   : > { %4476 = vmatprep.subr.bf16.mxu1 %v4475_v58  ;;  %v3024_v58 = vrot.slane %v6676_v37, %v6211_v43 }
 0xe87   : > { %4478 = vmatpush1.bf16.msra.mxu1 %v4477_v0 }
 0xe88   : > { %4480 = vmatprep.subr.bf16.mxu1 %v4479_v1 }
 0xe8b   : > { %4482 = vmatpush1.bf16.msra.mxu1 %v4481_v5  ;;  %v3252_v5 = vld [vmem:[%s5964_s25 + $0x228] sm:$0xff] }
 0xe8c   : > { %4484 = vmatprep.subr.bf16.mxu1 %v4483_v6  ;;  %v3254_v6 = vld [vmem:[%s5964_s25 + $0x238] sm:$0xff] }
 0xe8d   : > { %v4515_v9 = vpack.c.bf16 %v3254_v6, %v3252_v5  ;;  %v3285_v5 = vld [vmem:[%s5964_s25 + $0x330] sm:$0xff]  ;;  %v3288_v6 = vld [vmem:[%s5964_s25 + $0x348] sm:$0xff] }
 0xe8f   : > { %4486 = vmatpush1.bf16.msra.mxu1 %v4485_v12  ;;  %v3253_v12 = vld [vmem:[%s5964_s25 + $0x230] sm:$0xff] }
 0xe90   : > { %4488 = vmatprep.subr.bf16.mxu1 %v4487_v63  ;;  %v4517_v15 = vpack.c.bf16 %v3253_v12, %v3251_v11  ;;  %v3289_v11 = vld [vmem:[%s5964_s25 + $0x350] sm:$0xff]  ;;  %v3292_v12 = vld [vmem:[%s5964_s25 + $0x368] sm:$0xff] }
 0xe93   : > { %4490 = vmatpush1.bf16.msra.mxu1 %v4489_v30  ;;  %v3255_v30 = vld [vmem:[%s5964_s25 + $0x240] sm:$0xff] }
 0xe94   : > { %4492 = vmatprep.subr.bf16.mxu1 %v4491_v47  ;;  %v3257_v47 = vld [vmem:[%s5964_s25 + $0x250] sm:$0xff] }
 0xe95   : > { %v4521_v20 = vpack.c.bf16 %v3257_v47, %v3255_v30  ;;  %v3296_v30 = vld [vmem:[%s5964_s25 + $0x388] sm:$0xff]  ;;  %v3298_v47 = vld [vmem:[%s5964_s25 + $0x398] sm:$0xff] }
 0xe96   : > { %v4559_v19 = vpack.c.bf16 %v3298_v47, %v3296_v30 }
 0xe97   : > { %4494 = vmatpush1.bf16.msra.mxu1 %v4493_v24  ;;  %v3259_v24 = vld [vmem:[%s5964_s25 + $0x260] sm:$0xff] }
 0xe98   : > { %4496 = vmatprep.subr.bf16.mxu1 %v4495_v52  ;;  %v3261_v52 = vld [vmem:[%s5964_s25 + $0x270] sm:$0xff] }
 0xe99   : > { %v4525_v26 = vpack.c.bf16 %v3261_v52, %v3259_v24  ;;  %v3300_v24 = vld [vmem:[%s5964_s25 + $0x3a8] sm:$0xff]  ;;  %v3302_v52 = vld [vmem:[%s5964_s25 + $0x3b8] sm:$0xff] }
 0xe9a   : > { %v4563_v49 = vpack.c.bf16 %v3302_v52, %v3300_v24 }
 0xe9b   : > { %4498 = vmatpush1.bf16.msra.mxu1 %v4497_v27  ;;  %v3263_v27 = vld [vmem:[%s5964_s25 + $0x280] sm:$0xff] }
 0xe9c   : > { %4500 = vmatprep.subr.bf16.mxu1 %v4499_v18  ;;  %v3265_v18 = vld [vmem:[%s5964_s25 + $0x290] sm:$0xff] }
 0xe9d   : > { %v4529_v32 = vpack.c.bf16 %v3265_v18, %v3263_v27  ;;  %v3304_v27 = vld [vmem:[%s5964_s25 + $0x3c8] sm:$0xff]  ;;  %v3306_v18 = vld [vmem:[%s5964_s25 + $0x3d8] sm:$0xff] }
 0xe9e   : > { %v4567_v31 = vpack.c.bf16 %v3306_v18, %v3304_v27 }
 0xe9f   : > { %4502 = vmatpush1.bf16.msra.mxu1 %v4501_v34  ;;  %v3267_v34 = vld [vmem:[%s5964_s25 + $0x2a0] sm:$0xff] }
 0xea0   : > { %4504 = vmatprep.subr.bf16.mxu1 %v4503_v35  ;;  %v3269_v35 = vld [vmem:[%s5964_s25 + $0x2b0] sm:$0xff] }
 0xea3   : > { %4506 = vmatpush1.bf16.msra.mxu1 %v4505_v38  ;;  %v4533_v38 = vpack.c.bf16 %v3269_v35, %v3267_v34  ;;  %v3308_v34 = vld [vmem:[%s5964_s25 + $0x3e8] sm:$0xff]  ;;  %v3310_v35 = vld [vmem:[%s5964_s25 + $0x3f8] sm:$0xff] }
 0xea4   : > { %4508 = vmatprep.subr.bf16.mxu1 %v4507_v45  ;;  %v3273_v45 = vld [vmem:[%s5964_s25 + $0x2d0] sm:$0xff] }
 0xea7   : > { %4510 = vmatpush1.bf16.msra.mxu1 %v4509_v51  ;;  %v4537_v51 = vpack.c.bf16 %v3273_v45, %v3271_v44  ;;  %v3309_v44 = vld [vmem:[%s5964_s25 + $0x3f0] sm:$0xff] }
 0xea8   : > { %4512 = vmatprep.subr.bf16.mxu1 %v4511_v57  ;;  %v3277_v57 = vld [vmem:[%s5964_s25 + $0x2f0] sm:$0xff] }
 0xf3d   : > { %v3103_v23 = vpop.f32.mrb[18].mxu1  ;;  %v6685_v60 = vpop.f32.mrb[22].mxu0 }
 0xf3e   : > { %v3104_v62 = vadd.f32 %v3103_v23, %v3020_v21  ;;  %v3105_v0 = vpop.f32.mrb[19].mxu1  ;;  %v3176_v1 = vpop.f32.mrb[23].mxu0  ;;  %v3280_v21 = vld [vmem:[%s5964_s25 + $0x308] sm:$0xff]  ;;  %v3175_v46 = vadd.f32 %v6685_v60, %v3028_v55 }
 0xf3f   : > { %v3106_v3 = vadd.f32 %v3105_v0, %v3024_v58  ;;  %v3177_v4 = vadd.f32 %v3176_v1, %v3032_v59  ;;  %v3282_v58 = vld [vmem:[%s5964_s25 + $0x318] sm:$0xff]  ;;  %v4541_v59 = vpack.c.bf16 %v3277_v57, %v3275_v56  ;;  %v3281_v0 = vld [vmem:[%s5964_s25 + $0x310] sm:$0xff]  ;;  %v3284_v1 = vld [vmem:[%s5964_s25 + $0x328] sm:$0xff] }
 0xf40   : > { %v3179_v10 = vmax.f32 %v3104_v62, 0.0  ;;  %v4543_v23 = vpack.c.bf16 %v3282_v58, %v3280_v21  ;;  %v3279_v62 = vld [vmem:[%s5964_s25 + $0x300] sm:$0xff]  ;;  %v3181_v50 = vmax.f32 %v3175_v46, 0.0 }
 0xf41   : > { %v3180_v7 = vmax.f32 %v3106_v3, 0.0  ;;  %v3182_v63 = vmax.f32 %v3177_v4, 0.0  ;;  %v4545_v61 = vpack.c.bf16 %v3281_v0, %v3279_v62  ;;  %v4547_v3 = vpack.c.bf16 %v3286_v2, %v3284_v1  ;;  %v3283_v4 = vld [vmem:[%s5964_s25 + $0x320] sm:$0xff] }
 0xf43   : > { %3387 = vmatprep.mubr.f32.mxu1 %v3180_v7  ;;  %v3290_v7 = vld [vmem:[%s5964_s25 + $0x358] sm:$0xff] }
 0xf44   : > { %3388 = vmatmul.mubr.f32.vlgmr.msra.gmra.mrb[20].mxu1 %v3179_v10  ;;  %v4551_v10 = vpack.c.bf16 %v3290_v7, %v3288_v6 }
 0xf45   : > { %4514 = vmatpush1.bf16.msra.mxu1 %v4513_v8  ;;  %3458 = vmatprep.mubr.f32.mxu1 %v3182_v63  ;;  %v4549_v8 = vpack.c.bf16 %v3285_v5, %v3283_v4  ;;  %v3294_v63 = vld [vmem:[%s5964_s25 + $0x378] sm:$0xff] }
 0xf46   : > { %4516 = vmatprep.subr.bf16.mxu1 %v4515_v9  ;;  %v3287_v9 = vld [vmem:[%s5964_s25 + $0x340] sm:$0xff]  ;;  %v4555_v48 = vpack.c.bf16 %v3294_v63, %v3292_v12 }
 0xf47   : > { %v4553_v13 = vpack.c.bf16 %v3289_v11, %v3287_v9 }
 0xf49   : > { %4518 = vmatpush1.bf16.msra.mxu1 %v4517_v15  ;;  %v3291_v15 = vld [vmem:[%s5964_s25 + $0x360] sm:$0xff] }
 0xf4a   : > { %4520 = vmatprep.subr.bf16.mxu1 %v4519_v16  ;;  %v3293_v16 = vld [vmem:[%s5964_s25 + $0x370] sm:$0xff] }
 0xf4b   : > { %v4557_v17 = vpack.c.bf16 %v3293_v16, %v3291_v15 }
 0xf4d   : > { %4522 = vmatpush1.bf16.msra.mxu1 %v4521_v20  ;;  %v3295_v20 = vld [vmem:[%s5964_s25 + $0x380] sm:$0xff] }
 0xf4e   : > { %4524 = vmatprep.subr.bf16.mxu1 %v4523_v22  ;;  %v3297_v22 = vld [vmem:[%s5964_s25 + $0x390] sm:$0xff] }
 0xf4f   : > { %v4561_v25 = vpack.c.bf16 %v3297_v22, %v3295_v20 }
 0xf51   : > { %4526 = vmatpush1.bf16.msra.mxu1 %v4525_v26  ;;  %v3299_v26 = vld [vmem:[%s5964_s25 + $0x3a0] sm:$0xff] }
 0xf52   : > { %4528 = vmatprep.subr.bf16.mxu1 %v4527_v53  ;;  %v3301_v53 = vld [vmem:[%s5964_s25 + $0x3b0] sm:$0xff] }
 0xf53   : > { %v4565_v29 = vpack.c.bf16 %v3301_v53, %v3299_v26 }
 0xf55   : > { %4530 = vmatpush1.bf16.msra.mxu1 %v4529_v32  ;;  %v3303_v32 = vld [vmem:[%s5964_s25 + $0x3c0] sm:$0xff] }
 0xf56   : > { %4532 = vmatprep.subr.bf16.mxu1 %v4531_v33  ;;  %v3305_v33 = vld [vmem:[%s5964_s25 + $0x3d0] sm:$0xff] }
 0xf57   : > { %v4569_v36 = vpack.c.bf16 %v3305_v33, %v3303_v32 }
 0xf59   : > { %4534 = vmatpush1.bf16.msra.mxu1 %v4533_v38  ;;  %v4571_v38 = vpack.c.bf16 %v3310_v35, %v3308_v34 }
 0xf5a   : > { %4536 = vmatprep.subr.bf16.mxu1 %v4535_v41  ;;  %v3307_v41 = vld [vmem:[%s5964_s25 + $0x3e0] sm:$0xff]  ;;  %s6942_s25 = scalar_lea.vmem [#allocation20], %s5936_s6 }
 0xf5b   : > { %v4573_v45 = vpack.c.bf16 %v3309_v44, %v3307_v41 }
 0xf5d   : > { %4538 = vmatpush1.bf16.msra.mxu1 %v4537_v51  ;;  %v3311_v51 = vld [vmem:[%s6939_s20] sm:$0x3] }
 0xf5e   : > { %4540 = vmatprep.subr.bf16.mxu1 %v4539_v54  ;;  %v3316_v54 = vrot.slane %v3311_v51, %v6208_v42  ;;  %v3320_v39 = vrot.slane %v3311_v51, %v6211_v43 }
 0xf61   : > { %4542 = vmatpush1.bf16.msra.mxu1 %v4541_v59 }
 0xf62   : > { %4544 = vmatprep.subr.bf16.mxu1 %v4543_v23 }
 0xf65   : > { %4546 = vmatpush1.bf16.msra.mxu1 %v4545_v61 }
 0xf66   : > { %4548 = vmatprep.subr.bf16.mxu1 %v4547_v3 }
 0xf69   : > { %4550 = vmatpush1.bf16.msra.mxu1 %v4549_v8 }
 0xf6a   : > { %4552 = vmatprep.subr.bf16.mxu1 %v4551_v10 }
 0xf6d   : > { %4554 = vmatpush1.bf16.msra.mxu1 %v4553_v13 }
 0xf6e   : > { %4556 = vmatprep.subr.bf16.mxu1 %v4555_v48 }
 0xf71   : > { %4558 = vmatpush1.bf16.msra.mxu1 %v4557_v17 }
 0xf72   : > { %4560 = vmatprep.subr.bf16.mxu1 %v4559_v19 }
 0xf75   : > { %4562 = vmatpush1.bf16.msra.mxu1 %v4561_v25 }
 0xf76   : > { %4564 = vmatprep.subr.bf16.mxu1 %v4563_v49 }
 0xf79   : > { %4566 = vmatpush1.bf16.msra.mxu1 %v4565_v29 }
 0xf7a   : > { %4568 = vmatprep.subr.bf16.mxu1 %v4567_v31 }
 0xf7d   : > { %4570 = vmatpush1.bf16.msra.mxu1 %v4569_v36 }
 0xf7e   : > { %4572 = vmatprep.subr.bf16.mxu1 %v4571_v38 }
 0xf81   : > { %4574 = vmatpush1.bf16.msra.mxu1 %v4573_v45 }
 0xf84   : > { %3459 = vmatmul.mubr.f32.vlgmr.msra.gmra.mrb[20].mxu1 %v3181_v50 }
0x1057   : > { %v3460_v56 = vpop.f32.mrb[20].mxu1 }
0x1058   : > { %v4575_v40 = vadd.f32 %v3460_v56, %v3316_v54  ;;  %v3462_v37 = vpop.f32.mrb[21].mxu1 }
0x1059   : > { %v4576_v57 = vadd.f32 %v3462_v37, %v3320_v39 }
0x105a   : > { %v3465_v21 = vadd.f32 %v4575_v40, %v6609_v28  ;;  %v3483_v28 = vld [vmem:[%s6941_s24] sm:$0x3] }
0x105b   : > { %v3466_v58 = vadd.f32 %v4576_v57, %v6607_v14  ;;  %v3497_v14 = vld [vmem:[%s6942_s25] sm:$0x3]  ;;  %v3488_v6 = vrot.slane %v3483_v28, %v6208_v42  ;;  %v3492_v7 = vrot.slane %v3483_v28, %v6211_v43 }
0x105c   : > { %v3502_v11 = vrot.slane %v3497_v14, %v6208_v42  ;;  %v3506_v12 = vrot.slane %v3497_v14, %v6211_v43 }
0x105d   : > { %v3467_v60 = vadd.f32 %v3466_v58, %v3465_v21 }
0x105f   : > { %3468 = vadd.xlane.f32.xlu0 %v3467_v60 }
0x10ec   : > { %v3469_v59 = vpop.xlane.xlu0 %3468 }
0x10ed   : > { %v3470_v23 = vmul.f32 0.00390625, %v3469_v59 }
0x10ef   : > { %v3471_v62 = vsub.f32 %v3465_v21, %v3470_v23  ;;  %v3472_v0 = vsub.f32 %v3466_v58, %v3470_v23 }
0x10f1   : > { %v3473_v1 = vmul.f32 %v3471_v62, %v3471_v62  ;;  %v3474_v2 = vmul.f32 %v3472_v0, %v3472_v0 }
0x10f3   : > { %v3475_v61 = vadd.f32 %v3474_v2, %v3473_v1 }
0x10f5   : > { %3476 = vadd.xlane.f32.xlu0 %v3475_v61 }
0x1182   : > { %v3477_v3 = vpop.xlane.xlu0 %3476 }
0x1183   : > { %v3478_v4 = vmul.f32 0.00390625, %v3477_v3 }
0x1185   : > { %v3479_v5 = vadd.f32 1e-05, %v3478_v4 }
0x1187   : > { %4802 = vrsqrt.f32 %v3479_v5 }
0x1191   : > { %v4803_v8 = vpop.eup %4802 }
0x1192   : > { %v3481_v10 = vmul.f32 %v4803_v8, %v3471_v62  ;;  %v3482_v9 = vmul.f32 %v4803_v8, %v3472_v0 }
0x1194   : > { %v3495_v63 = vmul.f32 %v3488_v6, %v3481_v10  ;;  %v3496_v13 = vmul.f32 %v3492_v7, %v3482_v9 }
0x1196   : > { %v3509_v48 = vadd.f32 %v3502_v11, %v3495_v63  ;;  %v3510_v15 = vadd.f32 %v3506_v12, %v3496_v13 }
0x1198   : > { %3511 = vst [vmem:[%s5987_s2] sm:$0xff] %v3509_v48  ;;  %3512 = vst [vmem:[%s5987_s2 + $0x8] sm:$0xff] %v3510_v15 }
0x1199   : > { %5179 = shalt.err (!%p5176_p11)
}
0x119a   : > { %s5180_s2 = scalar_lea.hbm %s6772_s30, 256  ;;  %s5184_s15 = scalar_lea.hbm %s6946_s4, 512 }
0x119b   : > { %p5181_p2 = scmp.ne.s32.totalorder %s6772_s30, %s5180_s2  ;;  %p5185_p9 = scmp.lt.u32.totalorder %s6772_s30, %s6946_s4 }
0x119c   : > { %p5186_p12 = scmp.lt.u32.totalorder %s5184_s15, %s5180_s2  ;;  %p5188_p4 = scmp.lt.u32.totalorder %s5180_s2, %s6772_s30 }
0x119d   : > { %p5182_p5 = pnand %p5181_p2, %p6947_p7 }
0x119e   : > { %p5187_p8 = por %p5186_p12, %p5185_p9 }
0x119f   : > { %p5183_p10 = pneg %p5182_p5 }
0x11a0   : > { %p5189_p0 = por %p5188_p4, %p5187_p8 }
0x11a2   : > { %p5190_p6 = pnand %p5189_p0, %p5183_p10 }
0x11a4   : > { %5193 = shalt.err (!%p5190_p6)
}
0x11a5   : > { %4609 = dma.vmem_to_hbm [thread:$0]  (%p6947_p7), %s6774_s21, 256, %s6772_s30, %s3514_s27  }
0x11a6 PF: > { %s6948_s0 = sld [smem:[#allocation38_spill]]  ;;  %s6949_s23 = sld [smem:[#allocation31_spill]] }
0x11a7   : > { %s6950_s6 = sld [smem:[#allocation46_spill]] }
0x11ac   : > { %p4653_p1 = scmp.ge.s32.totalorder %s6948_s0, 2  ;;  %s3540_s22 = sand.u32 1, %s6949_s23  }
0x11ad   : > { %p6951_p3 = scmp.ne.s32.totalorder %s6950_s6, 0  ;;  %s3541_s18 = scalar_lea.sflag [#allocation4], %s3540_s22 }
0x11af   : > { %p4649_p13 = pnand %p4653_p1, %p6951_p3 }
0x11b1   : > { %5267 = dma.done.wait (!%p4649_p13), %s3541_s18, 256  }
0x11b2   : > { %5269 = vsyncadd (!%p4649_p13), %s3541_s18, 4294967040  ;;  %s47_s18 = sadd.s32 1, %s6948_s0   ;;  %s6952_s25 = sld [smem:[#allocation32_spill]] }
0x11b3   : > { %p44_p11 = scmp.ge.s32.totalorder %s47_s18, 8   ;;  %s6953_s26 = sld [smem:[#allocation33_spill]] }
0x11b4   : > { %s6954_s27 = sld [smem:[#allocation44_spill]]  ;;  %s6955_s17 = sld [smem:[#allocation34_spill]] }
0x11b5   : > { %s6956_s30 = sld [smem:[#allocation42_spill]]  ;;  %s6957_s15 = sld [smem:[#allocation37_spill]] }
0x11b6   : > { %s6958_s21 = sld [smem:[#allocation40_spill]]  ;;  %s6959_s19 = sld [smem:[#allocation41_spill]] }
0x11b7   : > { %s6960_s28 = smov %s5288_s29  ;;  %s6962_s14 = smov %s5304_s16 }
0x11b8   :  { %46 = sbr.rel (!%p44_p11) target bundleno = 27 (0x1b), region = 257 }
0x11ba   : > { %s6961_s29 = smov %s6955_s17 }
0x11bc   : > { %s6963_s16 = smov %s6958_s21  ;;  %s6964_s17 = smov %s6959_s19 }
0x11bf   :  { %3546 = vsyncpa [#allocation3], 1 }
0x11c0   :  { %3548 = vsyncpa [#allocation3 + $0x1], 1 }
0x11c1   :  { %3549 = vsyncpa [#allocation6], 1 }
0x11c2   :  { %3551 = vsyncpa [#allocation6 + $0x1], 1 }
0x11c3   :  { %3552 = vsyncpa [#allocation9], 1 }
0x11c4   :  { %3554 = vsyncpa [#allocation9 + $0x1], 1 }
0x11c5   :  { %3555 = vsyncpa [#allocation12], 1 }
0x11c6   :  { %3557 = vsyncpa [#allocation12 + $0x1], 1 }
0x11c7   :  { %3558 = vsyncpa [#allocation15], 1 }
0x11c8   :  { %3560 = vsyncpa [#allocation15 + $0x1], 1 }
0x11c9   :  { %3561 = vsyncpa [#allocation18], 1 }
0x11ca   :  { %3563 = vsyncpa [#allocation18 + $0x1], 1 }
0x11cb   :  { %3564 = vsyncpa [#allocation21], 1 }
0x11cc   :  { %3566 = vsyncpa [#allocation21 + $0x1], 1 }
0x11cd   :  { %3567 = vsyncpa [#allocation4], 1 }
0x11ce   :  { %3569 = vsyncpa [#allocation4 + $0x1], 1 }

</bundles_post_ra>
